<compile_context>
chip_gen: v6e
topology: v6e:2x2x1
jax: 0.10.0
libtpu: 0.0.40
codegen_flags: <defaults>
</compile_context>

<pallas_src>
import jax
import jax.numpy as jnp
from jax.experimental import pallas as pl
from jax.experimental.pallas import tpu as pltpu


def encoder_kernel(x_ref, w1_ref, b1_ref, w2_ref, b2_ref, o_ref):
    # Hidden linear layer: (TB, D_in) @ (D_in, D_h) with f32 accumulation.
    h = jnp.dot(x_ref[...], w1_ref[...], preferred_element_type=jnp.float32) + b1_ref[...]

    # dropout(ones) * h with p=0.0 is an exact identity -> elided.
    # TODO(synk): for p>0 in training mode, multiply by a Bernoulli(1-p)/(1-p) mask
    #             drawn with pltpu.prng_random_bits.
    # LeakyReLU (PyTorch default negative_slope=0.01) on the VPU.
    h = jnp.where(h >= 0, h, jnp.float32(0.01) * h)

    # Output linear layer, f32 accumulation.
    c = jnp.dot(h, w2_ref[...], preferred_element_type=jnp.float32) + b2_ref[...]

    # Exact sigmoid: exp on the EUP (not a bottleneck here), exact reciprocal/divide.
    o_ref[...] = 1.0 / (1.0 + jnp.exp(-c))


def encoder_forward(x, w1, b1, w2, b2, tb=None):
    """x: (B, orig_dim) f32; w1: (orig_dim, inter_dim); b1: (1, inter_dim);
    w2: (inter_dim, code_dim); b2: (1, code_dim). Returns (B, code_dim) f32."""
    B, orig_dim = x.shape
    inter_dim = w1.shape[1]
    code_dim = w2.shape[1]

    if tb is None:
        # Single grid step for small/medium batches (one launch, everything resident);
        # 2048-row tiles for large batches (pipelined x DMA, >=2 steps/TC on v7x).
        tb = B if B <= 4096 else 2048
    tb = min(tb, B)
    if tb != B:
        # Sublane-dim tiles must be a multiple of 8 unless they span the full batch.
        tb = max((tb // 8) * 8, 8)
    nb = pl.cdiv(B, tb)  # final partial block (if any) is clipped by Pallas

    return pl.pallas_call(
        encoder_kernel,
        out_shape=jax.ShapeDtypeStruct((B, code_dim), jnp.float32),
        grid_spec=pltpu.PrefetchScalarGridSpec(
            num_scalar_prefetch=0,
            grid=(nb,),
            in_specs=[
                # x is blocked over batch; weights/biases are resident (constant maps).
                pl.BlockSpec((tb, orig_dim), lambda i: (i, 0)),
                pl.BlockSpec((orig_dim, inter_dim), lambda i: (0, 0)),
                pl.BlockSpec((1, inter_dim), lambda i: (0, 0)),
                pl.BlockSpec((inter_dim, code_dim), lambda i: (0, 0)),
                pl.BlockSpec((1, code_dim), lambda i: (0, 0)),
            ],
            out_specs=pl.BlockSpec((tb, code_dim), lambda i: (i, 0)),
        ),
        compiler_params=pltpu.CompilerParams(
            dimension_semantics=("parallel",),   # dual-TC sharding on v7x
        ),
    )(x, w1, b1, w2, b2)


def init_params(key, orig_dim, inter_dim, code_dim):
    """Deterministic init mimicking PyTorch nn.Linear default (uniform +/- 1/sqrt(fan_in))."""
    k1, k2, k3, k4 = jax.random.split(key, 4)
    bound1 = 1.0 / jnp.sqrt(orig_dim)
    bound2 = 1.0 / jnp.sqrt(inter_dim)
    # Stored already transposed: (in_features, out_features)
    w1 = jax.random.uniform(k1, (orig_dim, inter_dim), jnp.float32, -bound1, bound1)
    b1 = jax.random.uniform(k2, (1, inter_dim), jnp.float32, -bound1, bound1)
    w2 = jax.random.uniform(k3, (inter_dim, code_dim), jnp.float32, -bound2, bound2)
    b2 = jax.random.uniform(k4, (1, code_dim), jnp.float32, -bound2, bound2)
    return w1, b1, w2, b2


def _reference(x, w1, b1, w2, b2):
    h = x @ w1 + b1
    h = jnp.where(h >= 0, h, 0.01 * h)
    return jax.nn.sigmoid(h @ w2 + b2)


if __name__ == "__main__":
    orig_dim, inter_dim, code_dim = 32, 64, 16
    batch = 1024

    key = jax.random.PRNGKey(0)
    kx, kp = jax.random.split(key)
    x = jax.random.normal(kx, (batch, orig_dim), jnp.float32)
    w1, b1, w2, b2 = init_params(kp, orig_dim, inter_dim, code_dim)

    # Default path: single grid step, everything resident, no wrapper copies.
    out = encoder_forward(x, w1, b1, w2, b2)
    jax.block_until_ready(out)
    ref = _reference(x, w1, b1, w2, b2)
    assert out.shape == (batch, code_dim)
    assert jnp.allclose(out, ref, atol=1e-5, rtol=1e-5), float(jnp.max(jnp.abs(out - ref)))

    # Ragged small batch (block == full array dims, no padding needed).
    x_small = jax.random.normal(jax.random.PRNGKey(1), (10, orig_dim), jnp.float32)
    out_small = encoder_forward(x_small, w1, b1, w2, b2)
    jax.block_until_ready(out_small)
    ref_small = _reference(x_small, w1, b1, w2, b2)
    assert out_small.shape == (10, code_dim)
    assert jnp.allclose(out_small, ref_small, atol=1e-5, rtol=1e-5)

    # Forced-tiling path: exercises a partial final block handled by Pallas clipping
    # (no jnp.pad / slice in the wrapper).
    x_rag = jax.random.normal(jax.random.PRNGKey(2), (1000, orig_dim), jnp.float32)
    out_rag = encoder_forward(x_rag, w1, b1, w2, b2, tb=256)
    jax.block_until_ready(out_rag)
    ref_rag = _reference(x_rag, w1, b1, w2, b2)
    assert out_rag.shape == (1000, code_dim)
    assert jnp.allclose(out_rag, ref_rag, atol=1e-5, rtol=1e-5)

    print("KERNEL_OK")
</pallas_src>

<mosaic_0001>
module attributes {stable_mosaic.version = 11 : i64} {
  func.func @encoder_kernel(%arg0: i32, %arg1: memref<1024x32xf32, #tpu.memory_space<vmem>>, %arg2: memref<32x64xf32, #tpu.memory_space<vmem>>, %arg3: memref<1x64xf32, #tpu.memory_space<vmem>>, %arg4: memref<64x16xf32, #tpu.memory_space<vmem>>, %arg5: memref<1x16xf32, #tpu.memory_space<vmem>>, %arg6: memref<1024x16xf32, #tpu.memory_space<vmem>>) attributes {dimension_semantics = [#tpu.dimension_semantics<parallel>], iteration_bounds = array<i64: 1>, scalar_prefetch = 0 : i64, scratch_operands = 0 : i64, tpu.core_type = #tpu.core_type<tc>, window_params = [{transform_indices = @transform_0, window_bounds = array<i64: 1024, 32>}, {pipeline_mode = #tpu.pipeline_mode<synchronous>, transform_indices = @transform_1, window_bounds = array<i64: 32, 64>}, {pipeline_mode = #tpu.pipeline_mode<synchronous>, transform_indices = @transform_2, window_bounds = array<i64: 1, 64>}, {pipeline_mode = #tpu.pipeline_mode<synchronous>, transform_indices = @transform_3, window_bounds = array<i64: 64, 16>}, {pipeline_mode = #tpu.pipeline_mode<synchronous>, transform_indices = @transform_4, window_bounds = array<i64: 1, 16>}, {transform_indices = @transform_5, window_bounds = array<i64: 1024, 16>}]} {
    %c0 = arith.constant 0 : index
    %c0_0 = arith.constant 0 : index
    %0 = vector.load %arg1[%c0, %c0_0] : memref<1024x32xf32, #tpu.memory_space<vmem>>, vector<1024x32xf32>
    %c0_1 = arith.constant 0 : index
    %c0_2 = arith.constant 0 : index
    %1 = vector.load %arg2[%c0_1, %c0_2] : memref<32x64xf32, #tpu.memory_space<vmem>>, vector<32x64xf32>
    %cst = arith.constant dense<0.000000e+00> : vector<1024x64xf32>
    %2 = tpu.matmul %0, %1, %cst {dimension_numbers = #tpu.dot_dimension_numbers<[1], [0], [0], [1], [0, 0, 1, 1], [], []>} : vector<1024x32xf32>, vector<32x64xf32>, vector<1024x64xf32> -> vector<1024x64xf32>
    %c0_3 = arith.constant 0 : index
    %c0_4 = arith.constant 0 : index
    %3 = vector.load %arg3[%c0_3, %c0_4] : memref<1x64xf32, #tpu.memory_space<vmem>>, vector<1x64xf32>
    %4 = vector.broadcast %3 : vector<1x64xf32> to vector<1024x64xf32>
    %5 = arith.addf %2, %4 : vector<1024x64xf32>
    %cst_5 = arith.constant 0.000000e+00 : f32
    %6 = vector.broadcast %cst_5 : f32 to vector<1024x64xf32>
    %7 = arith.cmpf oge, %5, %6 : vector<1024x64xf32>
    %cst_6 = arith.constant 0.00999999977 : f32
    %8 = vector.broadcast %cst_6 : f32 to vector<1024x64xf32>
    %9 = arith.mulf %8, %5 : vector<1024x64xf32>
    %10 = arith.select %7, %5, %9 : vector<1024x64xi1>, vector<1024x64xf32>
    %c0_7 = arith.constant 0 : index
    %c0_8 = arith.constant 0 : index
    %11 = vector.load %arg4[%c0_7, %c0_8] : memref<64x16xf32, #tpu.memory_space<vmem>>, vector<64x16xf32>
    %cst_9 = arith.constant dense<0.000000e+00> : vector<1024x16xf32>
    %12 = tpu.matmul %10, %11, %cst_9 {dimension_numbers = #tpu.dot_dimension_numbers<[1], [0], [0], [1], [0, 0, 1, 1], [], []>} : vector<1024x64xf32>, vector<64x16xf32>, vector<1024x16xf32> -> vector<1024x16xf32>
    %c0_10 = arith.constant 0 : index
    %c0_11 = arith.constant 0 : index
    %13 = vector.load %arg5[%c0_10, %c0_11] : memref<1x16xf32, #tpu.memory_space<vmem>>, vector<1x16xf32>
    %14 = vector.broadcast %13 : vector<1x16xf32> to vector<1024x16xf32>
    %15 = arith.addf %12, %14 : vector<1024x16xf32>
    %cst_12 = arith.constant 0.000000e+00 : f32
    %16 = vector.broadcast %cst_12 : f32 to vector<1024x16xf32>
    %17 = arith.subf %16, %15 : vector<1024x16xf32>
    %18 = math.exp %17 : vector<1024x16xf32>
    %cst_13 = arith.constant 1.000000e+00 : f32
    %19 = vector.broadcast %cst_13 : f32 to vector<1024x16xf32>
    %20 = arith.addf %19, %18 : vector<1024x16xf32>
    %cst_14 = arith.constant 1.000000e+00 : f32
    %21 = vector.broadcast %cst_14 : f32 to vector<1024x16xf32>
    %22 = arith.divf %21, %20 : vector<1024x16xf32>
    %c0_15 = arith.constant 0 : index
    %c0_16 = arith.constant 0 : index
    %23 = vector.load %arg6[%c0_15, %c0_16] : memref<1024x16xf32, #tpu.memory_space<vmem>>, vector<1024x16xf32>
    tpu.vector_store %arg6[%c0_15, %c0_16], %22 {strides = array<i32>} : memref<1024x16xf32, #tpu.memory_space<vmem>>, vector<1024x16xf32>,
    return
  }
  func.func @transform_0(%arg0: i32) -> (i32, i32) {
    %c0_i32 = arith.constant 0 : i32
    %c0_i32_0 = arith.constant 0 : i32
    return %arg0, %c0_i32 : i32, i32
  }
  func.func @transform_1(%arg0: i32) -> (i32, i32) {
    %c0_i32 = arith.constant 0 : i32
    %c0_i32_0 = arith.constant 0 : i32
    %c0_i32_1 = arith.constant 0 : i32
    return %c0_i32, %c0_i32_0 : i32, i32
  }
  func.func @transform_2(%arg0: i32) -> (i32, i32) {
    %c0_i32 = arith.constant 0 : i32
    %c0_i32_0 = arith.constant 0 : i32
    %c0_i32_1 = arith.constant 0 : i32
    return %c0_i32, %c0_i32_0 : i32, i32
  }
  func.func @transform_3(%arg0: i32) -> (i32, i32) {
    %c0_i32 = arith.constant 0 : i32
    %c0_i32_0 = arith.constant 0 : i32
    %c0_i32_1 = arith.constant 0 : i32
    return %c0_i32, %c0_i32_0 : i32, i32
  }
  func.func @transform_4(%arg0: i32) -> (i32, i32) {
    %c0_i32 = arith.constant 0 : i32
    %c0_i32_0 = arith.constant 0 : i32
    %c0_i32_1 = arith.constant 0 : i32
    return %c0_i32, %c0_i32_0 : i32, i32
  }
  func.func @transform_5(%arg0: i32) -> (i32, i32) {
    %c0_i32 = arith.constant 0 : i32
    %c0_i32_0 = arith.constant 0 : i32
    return %arg0, %c0_i32 : i32, i32
  }
}

</mosaic_0001>

<bundles_post_ra>
// kernel: tpu_custom_call.1
= control target key start
LH: loop header
LB: loop body
LE: loop exit
PB: predicated region body
PF: predicated region fallthrough
CT: control target
= control target key end

     0   :  { %vm159_vm0 = vcmask 261120   ;;  %vm1648_vm1 = vcmask 523264   ;;  %s6671_s1 = inlined_call_operand.vmem [shape: f32[32,64], index: 1, kind: input, shape index: {}]   ;;  %s6672_s0 = inlined_call_operand.vmem [shape: f32[1024,32], index: 0, kind: input, shape index: {}]   ;;  %s6673_s3 = inlined_call_operand.vmem [shape: f32[64,16], index: 3, kind: input, shape index: {}]   ;;  %s6674_s2 = inlined_call_operand.vmem [shape: f32[1,64], index: 2, kind: input, shape index: {}]   ;;  %s6675_s4 = inlined_call_operand.vmem [shape: f32[1,16], index: 4, kind: input, shape index: {}]   ;;  %s6676_s5 = inlined_call_operand.vmem [shape: f32[1024,16], index: 5, kind: output, shape index: {}]  }
   0x1   :  { %v151_v0 = vld [vmem:[%s6671_s1 + $0x18] sm:$0xff]  ;;  %v150_v1 = vld [vmem:[%s6671_s1 + $0x10] sm:$0xff]  ;;  %v20_v2 = vld [vmem:[%s6672_s0] sm:$0xff] }
   0x2   :  { %4165 = vmatprep.subr.mxu0 %v151_v0  ;;  %v149_v3 = vld [vmem:[%s6671_s1 + $0x8] sm:$0xff]  ;;  %4173 = vmatprep.mubr.msk.f32.mxu0 %vm159_vm0, %v20_v2  ;;  %v148_v4 = vld [vmem:[%s6671_s1] sm:$0xff]  ;;  %v22_v6 = vld [vmem:[%s6672_s0 + $0x10] sm:$0xff] }
   0x3   :  { %4166 = vmatpush3.msra.mxu0 %v151_v0  ;;  %v21_v5 = vld [vmem:[%s6672_s0 + $0x8] sm:$0xff]  ;;  %v23_v7 = vld [vmem:[%s6672_s0 + $0x18] sm:$0xff]  ;;  %v24_v8 = vld [vmem:[%s6672_s0 + $0x20] sm:$0xff] }
   0x4   :  { %4167 = vmatprep.subr.mxu0 %v150_v1  ;;  %v25_v9 = vld [vmem:[%s6672_s0 + $0x28] sm:$0xff]  ;;  %v26_v10 = vld [vmem:[%s6672_s0 + $0x30] sm:$0xff]  ;;  %v27_v11 = vld [vmem:[%s6672_s0 + $0x38] sm:$0xff] }
   0x5   :  { %4168 = vmatpush3.msra.mxu0 %v150_v1  ;;  %v28_v12 = vld [vmem:[%s6672_s0 + $0x40] sm:$0xff]  ;;  %v29_v13 = vld [vmem:[%s6672_s0 + $0x48] sm:$0xff]  ;;  %v30_v14 = vld [vmem:[%s6672_s0 + $0x50] sm:$0xff] }
   0x6   :  { %4169 = vmatprep.subr.mxu0 %v149_v3  ;;  %v31_v15 = vld [vmem:[%s6672_s0 + $0x58] sm:$0xff]  ;;  %v32_v16 = vld [vmem:[%s6672_s0 + $0x60] sm:$0xff]  ;;  %v33_v17 = vld [vmem:[%s6672_s0 + $0x68] sm:$0xff] }
   0x7   :  { %4170 = vmatpush3.msra.mxu0 %v149_v3  ;;  %v34_v18 = vld [vmem:[%s6672_s0 + $0x70] sm:$0xff]  ;;  %v35_v19 = vld [vmem:[%s6672_s0 + $0x78] sm:$0xff]  ;;  %v36_v20 = vld [vmem:[%s6672_s0 + $0x80] sm:$0xff] }
   0x8   :  { %4171 = vmatprep.subr.mxu0 %v148_v4  ;;  %v37_v21 = vld [vmem:[%s6672_s0 + $0x88] sm:$0xff]  ;;  %v38_v22 = vld [vmem:[%s6672_s0 + $0x90] sm:$0xff]  ;;  %v39_v23 = vld [vmem:[%s6672_s0 + $0x98] sm:$0xff] }
   0x9   :  { %4172 = vmatpush3.msra.mxu0 %v148_v4  ;;  %v40_v24 = vld [vmem:[%s6672_s0 + $0xa0] sm:$0xff]  ;;  %v41_v25 = vld [vmem:[%s6672_s0 + $0xa8] sm:$0xff]  ;;  %v42_v26 = vld [vmem:[%s6672_s0 + $0xb0] sm:$0xff] }
   0xa   :  { %4174 = vmatmul.mubr.msk.f32.vlgmr.msra.gmra.mxu0 %vm159_vm0, %v21_v5  ;;  %v43_v27 = vld [vmem:[%s6672_s0 + $0xb8] sm:$0xff]  ;;  %v44_v28 = vld [vmem:[%s6672_s0 + $0xc0] sm:$0xff]  ;;  %v45_v29 = vld [vmem:[%s6672_s0 + $0xc8] sm:$0xff] }
   0xb   :  { %4176 = vmatprep.mubr.msk.f32.mxu0 %vm159_vm0, %v22_v6  ;;  %v46_v30 = vld [vmem:[%s6672_s0 + $0xd0] sm:$0xff]  ;;  %v47_v31 = vld [vmem:[%s6672_s0 + $0xd8] sm:$0xff]  ;;  %v48_v32 = vld [vmem:[%s6672_s0 + $0xe0] sm:$0xff] }
   0xc   :  { %v49_v33 = vld [vmem:[%s6672_s0 + $0xe8] sm:$0xff]  ;;  %v50_v34 = vld [vmem:[%s6672_s0 + $0xf0] sm:$0xff]  ;;  %v51_v35 = vld [vmem:[%s6672_s0 + $0xf8] sm:$0xff] }
   0xd   :  { %v52_v36 = vld [vmem:[%s6672_s0 + $0x100] sm:$0xff]  ;;  %v1640_v37 = vld [vmem:[%s6673_s3 + $0x38] sm:$0xff]  ;;  %v53_v38 = vld [vmem:[%s6672_s0 + $0x108] sm:$0xff] }
   0xe   :  { %4177 = vmatmul.mubr.msk.f32.gmra.mxu0 %vm159_vm0, %v23_v7  ;;  %4573 = vmatprep.subr.mxu1 %v1640_v37  ;;  %v1639_v39 = vld [vmem:[%s6673_s3 + $0x30] sm:$0xff]  ;;  %v1638_v41 = vld [vmem:[%s6673_s3 + $0x28] sm:$0xff]  ;;  %v55_v42 = vld [vmem:[%s6672_s0 + $0x118] sm:$0xff] }
   0xf   :  { %4179 = vmatprep.mubr.msk.f32.mxu0 %vm159_vm0, %v24_v8  ;;  %v54_v40 = vld [vmem:[%s6672_s0 + $0x110] sm:$0xff]  ;;  %4581 = vmatpush3.msra.mxu1 %v1640_v37  ;;  %v56_v43 = vld [vmem:[%s6672_s0 + $0x120] sm:$0xff]  ;;  %v1636_v45 = vld [vmem:[%s6673_s3 + $0x18] sm:$0xff] }
  0x10   :  { %4365 = vmatprep.subr.mxu0 %v1640_v37  ;;  %4574 = vmatprep.subr.mxu1 %v1639_v39  ;;  %v1637_v44 = vld [vmem:[%s6673_s3 + $0x20] sm:$0xff]  ;;  %v57_v46 = vld [vmem:[%s6672_s0 + $0x128] sm:$0xff]  ;;  %v58_v47 = vld [vmem:[%s6672_s0 + $0x130] sm:$0xff] }
  0x11   :  { %4366 = vmatpush3.msra.mxu0 %v1640_v37  ;;  %4582 = vmatpush3.msra.mxu1 %v1639_v39  ;;  %v1635_v48 = vld [vmem:[%s6673_s3 + $0x10] sm:$0xff]  ;;  %v1634_v49 = vld [vmem:[%s6673_s3 + $0x8] sm:$0xff]  ;;  %v59_v50 = vld [vmem:[%s6672_s0 + $0x138] sm:$0xff] }
  0x12   :  { %4180 = vmatmul.mubr.msk.f32.gmra.mxu0 %vm159_vm0, %v25_v9  ;;  %4575 = vmatprep.subr.mxu1 %v1638_v41  ;;  %v60_v51 = vld [vmem:[%s6672_s0 + $0x140] sm:$0xff]  ;;  %v61_v53 = vld [vmem:[%s6672_s0 + $0x148] sm:$0xff]  ;;  %v62_v54 = vld [vmem:[%s6672_s0 + $0x150] sm:$0xff] }
  0x13   :  { %4182 = vmatprep.mubr.msk.f32.mxu0 %vm159_vm0, %v26_v10  ;;  %4583 = vmatpush3.msra.mxu1 %v1638_v41  ;;  %v1633_v52 = vld [vmem:[%s6673_s3] sm:$0xff]  ;;  %v63_v55 = vld [vmem:[%s6672_s0 + $0x158] sm:$0xff]  ;;  %v65_v57 = vld [vmem:[%s6672_s0 + $0x168] sm:$0xff] }
  0x14   :  { %4367 = vmatprep.subr.mxu0 %v1639_v39  ;;  %4576 = vmatprep.subr.mxu1 %v1637_v44  ;;  %v64_v56 = vld [vmem:[%s6672_s0 + $0x160] sm:$0xff]  ;;  %v66_v58 = vld [vmem:[%s6672_s0 + $0x170] sm:$0xff]  ;;  %v67_v59 = vld [vmem:[%s6672_s0 + $0x178] sm:$0xff] }
  0x15   :  { %4368 = vmatpush3.msra.mxu0 %v1639_v39  ;;  %4584 = vmatpush3.msra.mxu1 %v1637_v44  ;;  %v68_v60 = vld [vmem:[%s6672_s0 + $0x180] sm:$0xff]  ;;  %v69_v61 = vld [vmem:[%s6672_s0 + $0x188] sm:$0xff]  ;;  %v70_v62 = vld [vmem:[%s6672_s0 + $0x190] sm:$0xff] }
  0x16   :  { %4183 = vmatmul.mubr.msk.f32.gmra.mxu0 %vm159_vm0, %v27_v11  ;;  %4577 = vmatprep.subr.mxu1 %v1636_v45  ;;  %v71_v63 = vld [vmem:[%s6672_s0 + $0x198] sm:$0xff]  ;;  %v72_v0 = vld [vmem:[%s6672_s0 + $0x1a0] sm:$0xff]  ;;  %v73_v1 = vld [vmem:[%s6672_s0 + $0x1a8] sm:$0xff] }
  0x17   :  { %4185 = vmatprep.mubr.msk.f32.mxu0 %vm159_vm0, %v28_v12  ;;  %4585 = vmatpush3.msra.mxu1 %v1636_v45  ;;  %v74_v2 = vld [vmem:[%s6672_s0 + $0x1b0] sm:$0xff]  ;;  %v75_v3 = vld [vmem:[%s6672_s0 + $0x1b8] sm:$0xff]  ;;  %v76_v4 = vld [vmem:[%s6672_s0 + $0x1c0] sm:$0xff] }
  0x18   :  { %4369 = vmatprep.subr.mxu0 %v1638_v41  ;;  %4578 = vmatprep.subr.mxu1 %v1635_v48  ;;  %v77_v5 = vld [vmem:[%s6672_s0 + $0x1c8] sm:$0xff]  ;;  %v78_v6 = vld [vmem:[%s6672_s0 + $0x1d0] sm:$0xff]  ;;  %v79_v7 = vld [vmem:[%s6672_s0 + $0x1d8] sm:$0xff] }
  0x19   :  { %4370 = vmatpush3.msra.mxu0 %v1638_v41  ;;  %4586 = vmatpush3.msra.mxu1 %v1635_v48  ;;  %v80_v8 = vld [vmem:[%s6672_s0 + $0x1e0] sm:$0xff]  ;;  %v81_v9 = vld [vmem:[%s6672_s0 + $0x1e8] sm:$0xff]  ;;  %v82_v10 = vld [vmem:[%s6672_s0 + $0x1f0] sm:$0xff] }
  0x1a   :  { %4186 = vmatmul.mubr.msk.f32.gmra.mxu0 %vm159_vm0, %v29_v13  ;;  %4579 = vmatprep.subr.mxu1 %v1634_v49  ;;  %v83_v11 = vld [vmem:[%s6672_s0 + $0x1f8] sm:$0xff]  ;;  %v84_v12 = vld [vmem:[%s6672_s0 + $0x200] sm:$0xff]  ;;  %v85_v13 = vld [vmem:[%s6672_s0 + $0x208] sm:$0xff] }
  0x1b   :  { %4188 = vmatprep.mubr.msk.f32.mxu0 %vm159_vm0, %v30_v14  ;;  %4587 = vmatpush3.msra.mxu1 %v1634_v49  ;;  %v86_v14 = vld [vmem:[%s6672_s0 + $0x210] sm:$0xff]  ;;  %v109_v37 = vld [vmem:[%s6672_s0 + $0x2c8] sm:$0xff]  ;;  %v111_v39 = vld [vmem:[%s6672_s0 + $0x2d8] sm:$0xff] }
  0x1c   :  { %4371 = vmatprep.subr.mxu0 %v1637_v44  ;;  %4580 = vmatprep.subr.mxu1 %v1633_v52  ;;  %v113_v41 = vld [vmem:[%s6672_s0 + $0x2e8] sm:$0xff] }
  0x1d   :  { %4372 = vmatpush3.msra.mxu0 %v1637_v44  ;;  %4588 = vmatpush3.msra.mxu1 %v1633_v52  ;;  %v116_v44 = vld [vmem:[%s6672_s0 + $0x300] sm:$0xff] }
  0x1e   :  { %4189 = vmatmul.mubr.msk.f32.gmra.mxu0 %vm159_vm0, %v31_v15  ;;  %4373 = vmatprep.subr.mxu0 %v1636_v45  ;;  %v87_v15 = vld [vmem:[%s6672_s0 + $0x218] sm:$0xff] }
  0x1f   :  { %4191 = vmatprep.mubr.msk.f32.mxu0 %vm159_vm0, %v32_v16  ;;  %4374 = vmatpush3.msra.mxu0 %v1636_v45  ;;  %v88_v16 = vld [vmem:[%s6672_s0 + $0x220] sm:$0xff]  ;;  %v117_v45 = vld [vmem:[%s6672_s0 + $0x308] sm:$0xff] }
  0x20   :  { %4375 = vmatprep.subr.mxu0 %v1635_v48 }
  0x21   :  { %4376 = vmatpush3.msra.mxu0 %v1635_v48  ;;  %v119_v48 = vld [vmem:[%s6672_s0 + $0x318] sm:$0xff] }
  0x22   :  { %4192 = vmatmul.mubr.msk.f32.gmra.mxu0 %vm159_vm0, %v33_v17  ;;  %4377 = vmatprep.subr.mxu0 %v1634_v49  ;;  %v89_v17 = vld [vmem:[%s6672_s0 + $0x228] sm:$0xff] }
  0x23   :  { %4194 = vmatprep.mubr.msk.f32.mxu0 %vm159_vm0, %v34_v18  ;;  %4378 = vmatpush3.msra.mxu0 %v1634_v49  ;;  %v90_v18 = vld [vmem:[%s6672_s0 + $0x230] sm:$0xff] }
  0x24   :  { %4379 = vmatprep.subr.mxu0 %v1633_v52 }
  0x25   :  { %4380 = vmatpush3.msra.mxu0 %v1633_v52 }
  0x26   :  { %4195 = vmatmul.mubr.msk.f32.gmra.mxu0 %vm159_vm0, %v35_v19  ;;  %v91_v19 = vld [vmem:[%s6672_s0 + $0x238] sm:$0xff] }
  0x27   :  { %4197 = vmatprep.mubr.msk.f32.mxu0 %vm159_vm0, %v36_v20  ;;  %v92_v20 = vld [vmem:[%s6672_s0 + $0x240] sm:$0xff] }
  0x2a   :  { %4198 = vmatmul.mubr.msk.f32.gmra.mxu0 %vm159_vm0, %v37_v21  ;;  %v93_v21 = vld [vmem:[%s6672_s0 + $0x248] sm:$0xff] }
  0x2b   :  { %4200 = vmatprep.mubr.msk.f32.mxu0 %vm159_vm0, %v38_v22  ;;  %v94_v22 = vld [vmem:[%s6672_s0 + $0x250] sm:$0xff] }
  0x2e   :  { %4201 = vmatmul.mubr.msk.f32.gmra.mxu0 %vm159_vm0, %v39_v23  ;;  %v95_v23 = vld [vmem:[%s6672_s0 + $0x258] sm:$0xff] }
  0x2f   :  { %4203 = vmatprep.mubr.msk.f32.mxu0 %vm159_vm0, %v40_v24  ;;  %v96_v24 = vld [vmem:[%s6672_s0 + $0x260] sm:$0xff] }
  0x32   :  { %4204 = vmatmul.mubr.msk.f32.gmra.mxu0 %vm159_vm0, %v41_v25  ;;  %v97_v25 = vld [vmem:[%s6672_s0 + $0x268] sm:$0xff] }
  0x33   :  { %4206 = vmatprep.mubr.msk.f32.mxu0 %vm159_vm0, %v42_v26  ;;  %v98_v26 = vld [vmem:[%s6672_s0 + $0x270] sm:$0xff] }
  0x36   :  { %4207 = vmatmul.mubr.msk.f32.gmra.mxu0 %vm159_vm0, %v43_v27  ;;  %v99_v27 = vld [vmem:[%s6672_s0 + $0x278] sm:$0xff] }
  0x37   :  { %4209 = vmatprep.mubr.msk.f32.mxu0 %vm159_vm0, %v44_v28  ;;  %v100_v28 = vld [vmem:[%s6672_s0 + $0x280] sm:$0xff] }
  0x3a   :  { %4210 = vmatmul.mubr.msk.f32.gmra.mxu0 %vm159_vm0, %v45_v29  ;;  %v101_v29 = vld [vmem:[%s6672_s0 + $0x288] sm:$0xff] }
  0x3b   :  { %4212 = vmatprep.mubr.msk.f32.mxu0 %vm159_vm0, %v46_v30  ;;  %v102_v30 = vld [vmem:[%s6672_s0 + $0x290] sm:$0xff] }
  0x3e   :  { %4213 = vmatmul.mubr.msk.f32.gmra.mxu0 %vm159_vm0, %v47_v31  ;;  %v103_v31 = vld [vmem:[%s6672_s0 + $0x298] sm:$0xff] }
  0x3f   :  { %4215 = vmatprep.mubr.msk.f32.mxu0 %vm159_vm0, %v48_v32  ;;  %v104_v32 = vld [vmem:[%s6672_s0 + $0x2a0] sm:$0xff] }
  0x42   :  { %4216 = vmatmul.mubr.msk.f32.gmra.mxu0 %vm159_vm0, %v49_v33  ;;  %v105_v33 = vld [vmem:[%s6672_s0 + $0x2a8] sm:$0xff] }
  0x43   :  { %4218 = vmatprep.mubr.msk.f32.mxu0 %vm159_vm0, %v50_v34  ;;  %v106_v34 = vld [vmem:[%s6672_s0 + $0x2b0] sm:$0xff] }
  0x46   :  { %4219 = vmatmul.mubr.msk.f32.gmra.mxu0 %vm159_vm0, %v51_v35  ;;  %v107_v35 = vld [vmem:[%s6672_s0 + $0x2b8] sm:$0xff] }
  0x47   :  { %4221 = vmatprep.mubr.msk.f32.mxu0 %vm159_vm0, %v52_v36  ;;  %v108_v36 = vld [vmem:[%s6672_s0 + $0x2c0] sm:$0xff] }
  0x4a   :  { %4222 = vmatmul.mubr.msk.f32.gmra.mxu0 %vm159_vm0, %v53_v38  ;;  %v110_v38 = vld [vmem:[%s6672_s0 + $0x2d0] sm:$0xff] }
  0x4b   :  { %4224 = vmatprep.mubr.msk.f32.mxu0 %vm159_vm0, %v54_v40  ;;  %v112_v40 = vld [vmem:[%s6672_s0 + $0x2e0] sm:$0xff] }
  0x4e   :  { %4225 = vmatmul.mubr.msk.f32.gmra.mxu0 %vm159_vm0, %v55_v42  ;;  %v114_v42 = vld [vmem:[%s6672_s0 + $0x2f0] sm:$0xff] }
  0x4f   :  { %4227 = vmatprep.mubr.msk.f32.mxu0 %vm159_vm0, %v56_v43  ;;  %v115_v43 = vld [vmem:[%s6672_s0 + $0x2f8] sm:$0xff] }
  0x52   :  { %4228 = vmatmul.mubr.msk.f32.gmra.mxu0 %vm159_vm0, %v57_v46  ;;  %v118_v46 = vld [vmem:[%s6672_s0 + $0x310] sm:$0xff] }
  0x53   :  { %4230 = vmatprep.mubr.msk.f32.mxu0 %vm159_vm0, %v58_v47 }
  0x56   :  { %4231 = vmatmul.mubr.msk.f32.gmra.mxu0 %vm159_vm0, %v59_v50  ;;  %v120_v50 = vld [vmem:[%s6672_s0 + $0x320] sm:$0xff] }
  0x57   :  { %4233 = vmatprep.mubr.msk.f32.mxu0 %vm159_vm0, %v60_v51  ;;  %v5579_v51 = vld [vmem:[%s6674_s2] ss:$0 sm:$0xff] }
  0x5a   :  { %4234 = vmatmul.mubr.msk.f32.gmra.mxu0 %vm159_vm0, %v61_v53 }
  0x5b   :  { %4236 = vmatprep.mubr.msk.f32.mxu0 %vm159_vm0, %v62_v54  ;;  %v121_v54 = vld [vmem:[%s6672_s0 + $0x328] sm:$0xff] }
  0x5e   :  { %4237 = vmatmul.mubr.msk.f32.gmra.mxu0 %vm159_vm0, %v63_v55 }
  0x5f   :  { %4239 = vmatprep.mubr.msk.f32.mxu0 %vm159_vm0, %v64_v56  ;;  %v122_v56 = vld [vmem:[%s6672_s0 + $0x330] sm:$0xff] }
  0x62   :  { %4240 = vmatmul.mubr.msk.f32.gmra.mxu0 %vm159_vm0, %v65_v57 }
  0x63   :  { %4242 = vmatprep.mubr.msk.f32.mxu0 %vm159_vm0, %v66_v58 }
  0x66   :  { %4243 = vmatmul.mubr.msk.f32.gmra.mxu0 %vm159_vm0, %v67_v59 }
  0x67   :  { %4245 = vmatprep.mubr.msk.f32.mxu0 %vm159_vm0, %v68_v60 }
  0x6a   :  { %4246 = vmatmul.mubr.msk.f32.gmra.mxu0 %vm159_vm0, %v69_v61  ;;  %v123_v61 = vld [vmem:[%s6672_s0 + $0x338] sm:$0xff] }
  0x6b   :  { %4248 = vmatprep.mubr.msk.f32.mxu0 %vm159_vm0, %v70_v62 }
  0x6e   :  { %4249 = vmatmul.mubr.msk.f32.gmra.mxu0 %vm159_vm0, %v71_v63 }
  0x6f   :  { %4251 = vmatprep.mubr.msk.f32.mxu0 %vm159_vm0, %v72_v0  ;;  %v124_v0 = vld [vmem:[%s6672_s0 + $0x340] sm:$0xff] }
  0x72   :  { %4252 = vmatmul.mubr.msk.f32.gmra.mxu0 %vm159_vm0, %v73_v1 }
  0x73   :  { %4254 = vmatprep.mubr.msk.f32.mxu0 %vm159_vm0, %v74_v2 }
  0x76   :  { %4255 = vmatmul.mubr.msk.f32.gmra.mxu0 %vm159_vm0, %v75_v3 }
  0x77   :  { %4257 = vmatprep.mubr.msk.f32.mxu0 %vm159_vm0, %v76_v4 }
  0x7a   :  { %4258 = vmatmul.mubr.msk.f32.gmra.mxu0 %vm159_vm0, %v77_v5 }
  0x7b   :  { %4260 = vmatprep.mubr.msk.f32.mxu0 %vm159_vm0, %v78_v6 }
  0x7e   :  { %4261 = vmatmul.mubr.msk.f32.gmra.mxu0 %vm159_vm0, %v79_v7 }
  0x7f   :  { %4263 = vmatprep.mubr.msk.f32.mxu0 %vm159_vm0, %v80_v8  ;;  %v125_v8 = vld [vmem:[%s6672_s0 + $0x348] sm:$0xff] }
  0x82   :  { %4264 = vmatmul.mubr.msk.f32.gmra.mxu0 %vm159_vm0, %v81_v9 }
  0x83   :  { %4266 = vmatprep.mubr.msk.f32.mxu0 %vm159_vm0, %v82_v10  ;;  %v126_v10 = vld [vmem:[%s6672_s0 + $0x350] sm:$0xff] }
  0x86   :  { %4267 = vmatmul.mubr.msk.f32.gmra.mxu0 %vm159_vm0, %v83_v11 }
  0x87   :  { %4269 = vmatprep.mubr.msk.f32.mxu0 %vm159_vm0, %v84_v12 }
  0x8a   :  { %4270 = vmatmul.mubr.msk.f32.gmra.mxu0 %vm159_vm0, %v85_v13 }
  0x8b   :  { %4272 = vmatprep.mubr.msk.f32.mxu0 %vm159_vm0, %v86_v14 }
  0x8e   :  { %4273 = vmatmul.mubr.msk.f32.gmra.mxu0 %vm159_vm0, %v87_v15 }
  0x8f   :  { %4275 = vmatprep.mubr.msk.f32.mxu0 %vm159_vm0, %v88_v16 }
  0x92   :  { %4276 = vmatmul.mubr.msk.f32.gmra.mxu0 %vm159_vm0, %v89_v17 }
  0x93   :  { %4278 = vmatprep.mubr.msk.f32.mxu0 %vm159_vm0, %v90_v18  ;;  %v127_v18 = vld [vmem:[%s6672_s0 + $0x358] sm:$0xff] }
  0x96   :  { %4279 = vmatmul.mubr.msk.f32.gmra.mxu0 %vm159_vm0, %v91_v19 }
  0x97   :  { %4281 = vmatprep.mubr.msk.f32.mxu0 %vm159_vm0, %v92_v20  ;;  %v128_v20 = vld [vmem:[%s6672_s0 + $0x360] sm:$0xff] }
  0x9a   :  { %4282 = vmatmul.mubr.msk.f32.gmra.mxu0 %vm159_vm0, %v93_v21 }
  0x9b   :  { %4284 = vmatprep.mubr.msk.f32.mxu0 %vm159_vm0, %v94_v22 }
  0x9e   :  { %4285 = vmatmul.mubr.msk.f32.gmra.mxu0 %vm159_vm0, %v95_v23 }
  0x9f   :  { %4287 = vmatprep.mubr.msk.f32.mxu0 %vm159_vm0, %v96_v24 }
  0xa2   :  { %4288 = vmatmul.mubr.msk.f32.gmra.mxu0 %vm159_vm0, %v97_v25 }
  0xa3   :  { %4290 = vmatprep.mubr.msk.f32.mxu0 %vm159_vm0, %v98_v26 }
  0xa6   :  { %4291 = vmatmul.mubr.msk.f32.gmra.mxu0 %vm159_vm0, %v99_v27 }
  0xa7   :  { %4293 = vmatprep.mubr.msk.f32.mxu0 %vm159_vm0, %v100_v28  ;;  %v129_v28 = vld [vmem:[%s6672_s0 + $0x368] sm:$0xff] }
  0xaa   :  { %4294 = vmatmul.mubr.msk.f32.gmra.mxu0 %vm159_vm0, %v101_v29 }
  0xab   :  { %4296 = vmatprep.mubr.msk.f32.mxu0 %vm159_vm0, %v102_v30  ;;  %v130_v30 = vld [vmem:[%s6672_s0 + $0x370] sm:$0xff] }
  0xae   :  { %4297 = vmatmul.mubr.msk.f32.gmra.mxu0 %vm159_vm0, %v103_v31 }
  0xaf   :  { %4299 = vmatprep.mubr.msk.f32.mxu0 %vm159_vm0, %v104_v32 }
  0xb2   :  { %4300 = vmatmul.mubr.msk.f32.gmra.mxu0 %vm159_vm0, %v105_v33 }
  0xb3   :  { %4302 = vmatprep.mubr.msk.f32.mxu0 %vm159_vm0, %v106_v34 }
  0xb6   :  { %4303 = vmatmul.mubr.msk.f32.gmra.mxu0 %vm159_vm0, %v107_v35 }
  0xb7   :  { %4305 = vmatprep.mubr.msk.f32.mxu0 %vm159_vm0, %v108_v36 }
  0xba   :  { %4306 = vmatmul.mubr.msk.f32.gmra.mxu0 %vm159_vm0, %v109_v37 }
  0xbb   :  { %4308 = vmatprep.mubr.msk.f32.mxu0 %vm159_vm0, %v110_v38  ;;  %v131_v38 = vld [vmem:[%s6672_s0 + $0x378] sm:$0xff] }
  0xbe   :  { %4309 = vmatmul.mubr.msk.f32.gmra.mxu0 %vm159_vm0, %v111_v39 }
  0xbf   :  { %4311 = vmatprep.mubr.msk.f32.mxu0 %vm159_vm0, %v112_v40  ;;  %v132_v40 = vld [vmem:[%s6672_s0 + $0x380] sm:$0xff] }
  0xc2   :  { %4312 = vmatmul.mubr.msk.f32.gmra.mxu0 %vm159_vm0, %v113_v41 }
  0xc3   :  { %4314 = vmatprep.mubr.msk.f32.mxu0 %vm159_vm0, %v114_v42 }
  0xc6   :  { %4315 = vmatmul.mubr.msk.f32.gmra.mxu0 %vm159_vm0, %v115_v43 }
  0xc7   :  { %4317 = vmatprep.mubr.msk.f32.mxu0 %vm159_vm0, %v116_v44 }
  0xca   :  { %v5564_v47 = vpop.f32.mrf.mxu0  ;;  %4318 = vmatmul.mubr.msk.f32.gmra.mxu0 %vm159_vm0, %v117_v45 }
  0xcb   :  { %4320 = vmatprep.mubr.msk.f32.mxu0 %vm159_vm0, %v118_v46 }
  0xcc   :  { %v5571_v49 = vpop.f32.mrf.mxu0 }
  0xce   :  { %v4178_v52 = vpop.f32.mrf.mxu0  ;;  %4321 = vmatmul.mubr.msk.f32.gmra.mxu0 %vm159_vm0, %v119_v48 }
  0xcf   :  { %v626_v53 = vadd.f32 %v4178_v52, %v5579_v51  ;;  %4323 = vmatprep.mubr.msk.f32.mxu0 %vm159_vm0, %v120_v50  ;;  %v133_v50 = vld [vmem:[%s6672_s0 + $0x388] sm:$0xff] }
  0xd0   :  { %v620_v55 = vpop.f32.mrf.mxu0 }
  0xd1   :  { %v621_v57 = vadd.f32 %v5579_v51, %v620_v55  ;;  %v1380_v58 = vmul.f32 0.01, %v626_v53  ;;  %vm1252_vm2 = vcmp.ge.f32.partialorder %v626_v53, 0.0 }
  0xd2   :  { %v4181_v59 = vpop.f32.mrf.mxu0  ;;  %4324 = vmatmul.mubr.msk.f32.gmra.mxu0 %vm159_vm0, %v121_v54 }
  0xd3   :  { %v636_v60 = vadd.f32 %v4181_v59, %v5579_v51  ;;  %4326 = vmatprep.mubr.msk.f32.mxu0 %vm159_vm0, %v122_v56  ;;  %vm1251_vm3 = vcmp.ge.f32.partialorder %v621_v57, 0.0  ;;  %v1379_v62 = vmul.f32 0.01, %v621_v57  ;;  %v1508_v5 = vsel %vm1252_vm2, %v626_v53, %v1380_v58  ;;  %v134_v53 = vld [vmem:[%s6672_s0 + $0x390] sm:$0xff] }
  0xd4   :  { %v630_v63 = vpop.f32.mrf.mxu0 }
  0xd5   :  { %v631_v1 = vadd.f32 %v5579_v51, %v630_v63  ;;  %v1507_v2 = vsel %vm1251_vm3, %v621_v57, %v1379_v62  ;;  %v1382_v3 = vmul.f32 0.01, %v636_v60  ;;  %vm1254_vm4 = vcmp.ge.f32.partialorder %v636_v60, 0.0  ;;  %v136_v63 = vld [vmem:[%s6672_s0 + $0x3a0] sm:$0xff] }
  0xd6   :  { %v4184_v4 = vpop.f32.mrf.mxu0  ;;  %4327 = vmatmul.mubr.msk.f32.gmra.mxu0 %vm159_vm0, %v123_v61  ;;  %4384 = vmatprep.mubr.msk.f32.mxu1 %vm1648_vm1, %v1507_v2  ;;  %v135_v61 = vld [vmem:[%s6672_s0 + $0x398] sm:$0xff] }
  0xd7   :  { %v1381_v6 = vmul.f32 0.01, %v631_v1  ;;  %v646_v7 = vadd.f32 %v4184_v4, %v5579_v51  ;;  %4385 = vmatmul.mubr.msk.f32.vlgmr.msra.gmra.mxu1 %vm1648_vm1, %v1508_v5  ;;  %4329 = vmatprep.mubr.msk.f32.mxu0 %vm159_vm0, %v124_v0  ;;  %vm1253_vm5 = vcmp.ge.f32.partialorder %v631_v1, 0.0  ;;  %v1510_v15 = vsel %vm1254_vm4, %v636_v60, %v1382_v3 }
  0xd8   :  { %v640_v9 = vpop.f32.mrf.mxu0 }
  0xd9   :  { %v641_v11 = vadd.f32 %v5579_v51, %v640_v9  ;;  %v1509_v12 = vsel %vm1253_vm5, %v631_v1, %v1381_v6  ;;  %v1384_v13 = vmul.f32 0.01, %v646_v7  ;;  %vm1256_vm6 = vcmp.ge.f32.partialorder %v646_v7, 0.0  ;;  %v138_v9 = vld [vmem:[%s6672_s0 + $0x3b0] sm:$0xff] }
  0xda   :  { %v4187_v14 = vpop.f32.mrf.mxu0  ;;  %4330 = vmatmul.mubr.msk.f32.gmra.mxu0 %vm159_vm0, %v125_v8  ;;  %4387 = vmatprep.mubr.msk.f32.mxu1 %vm1648_vm1, %v1509_v12 }
  0xdb   :  { %v1383_v16 = vmul.f32 0.01, %v641_v11  ;;  %v656_v17 = vadd.f32 %v4187_v14, %v5579_v51  ;;  %4388 = vmatmul.mubr.msk.f32.gmra.mxu1 %vm1648_vm1, %v1510_v15  ;;  %4332 = vmatprep.mubr.msk.f32.mxu0 %vm159_vm0, %v126_v10  ;;  %vm1255_vm7 = vcmp.ge.f32.partialorder %v641_v11, 0.0  ;;  %v1512_v25 = vsel %vm1256_vm6, %v646_v7, %v1384_v13  ;;  %v137_v7 = vld [vmem:[%s6672_s0 + $0x3a8] sm:$0xff] }
  0xdc   :  { %v650_v19 = vpop.f32.mrf.mxu0 }
  0xdd   :  { %v651_v21 = vadd.f32 %v5579_v51, %v650_v19  ;;  %v1511_v22 = vsel %vm1255_vm7, %v641_v11, %v1383_v16  ;;  %v1386_v23 = vmul.f32 0.01, %v656_v17  ;;  %vm1258_vm8 = vcmp.ge.f32.partialorder %v656_v17, 0.0  ;;  %v140_v19 = vld [vmem:[%s6672_s0 + $0x3c0] sm:$0xff] }
  0xde   :  { %v4190_v24 = vpop.f32.mrf.mxu0  ;;  %4333 = vmatmul.mubr.msk.f32.gmra.mxu0 %vm159_vm0, %v127_v18  ;;  %4390 = vmatprep.mubr.msk.f32.mxu1 %vm1648_vm1, %v1511_v22 }
  0xdf   :  { %v1385_v26 = vmul.f32 0.01, %v651_v21  ;;  %v666_v27 = vadd.f32 %v4190_v24, %v5579_v51  ;;  %4391 = vmatmul.mubr.msk.f32.gmra.mxu1 %vm1648_vm1, %v1512_v25  ;;  %4335 = vmatprep.mubr.msk.f32.mxu0 %vm159_vm0, %v128_v20  ;;  %vm1257_vm9 = vcmp.ge.f32.partialorder %v651_v21, 0.0  ;;  %v1514_v35 = vsel %vm1258_vm8, %v656_v17, %v1386_v23  ;;  %v139_v17 = vld [vmem:[%s6672_s0 + $0x3b8] sm:$0xff] }
  0xe0   :  { %v660_v29 = vpop.f32.mrf.mxu0 }
  0xe1   :  { %v661_v31 = vadd.f32 %v5579_v51, %v660_v29  ;;  %v1513_v32 = vsel %vm1257_vm9, %v651_v21, %v1385_v26  ;;  %v1388_v33 = vmul.f32 0.01, %v666_v27  ;;  %vm1260_vm10 = vcmp.ge.f32.partialorder %v666_v27, 0.0  ;;  %v142_v29 = vld [vmem:[%s6672_s0 + $0x3d0] sm:$0xff] }
  0xe2   :  { %v4193_v34 = vpop.f32.mrf.mxu0  ;;  %4336 = vmatmul.mubr.msk.f32.gmra.mxu0 %vm159_vm0, %v129_v28  ;;  %4393 = vmatprep.mubr.msk.f32.mxu1 %vm1648_vm1, %v1513_v32 }
  0xe3   :  { %v1387_v36 = vmul.f32 0.01, %v661_v31  ;;  %v676_v37 = vadd.f32 %v4193_v34, %v5579_v51  ;;  %4394 = vmatmul.mubr.msk.f32.gmra.mxu1 %vm1648_vm1, %v1514_v35  ;;  %4338 = vmatprep.mubr.msk.f32.mxu0 %vm159_vm0, %v130_v30  ;;  %vm1259_vm11 = vcmp.ge.f32.partialorder %v661_v31, 0.0  ;;  %v1516_v45 = vsel %vm1260_vm10, %v666_v27, %v1388_v33  ;;  %v141_v27 = vld [vmem:[%s6672_s0 + $0x3c8] sm:$0xff] }
  0xe4   :  { %v670_v39 = vpop.f32.mrf.mxu0 }
  0xe5   :  { %v671_v41 = vadd.f32 %v5579_v51, %v670_v39  ;;  %v1515_v42 = vsel %vm1259_vm11, %v661_v31, %v1387_v36  ;;  %v1390_v43 = vmul.f32 0.01, %v676_v37  ;;  %vm1262_vm12 = vcmp.ge.f32.partialorder %v676_v37, 0.0  ;;  %v144_v39 = vld [vmem:[%s6672_s0 + $0x3e0] sm:$0xff] }
  0xe6   :  { %v4196_v44 = vpop.f32.mrf.mxu0  ;;  %4339 = vmatmul.mubr.msk.f32.gmra.mxu0 %vm159_vm0, %v131_v38  ;;  %4396 = vmatprep.mubr.msk.f32.mxu1 %vm1648_vm1, %v1515_v42  ;;  %v611_v42 = vadd.f32 %v5579_v51, %v5571_v49  ;;  %v145_v49 = vld [vmem:[%s6672_s0 + $0x3e8] sm:$0xff] }
  0xe7   :  { %v1389_v46 = vmul.f32 0.01, %v671_v41  ;;  %v686_v48 = vadd.f32 %v4196_v44, %v5579_v51  ;;  %4397 = vmatmul.mubr.msk.f32.gmra.mxu1 %vm1648_vm1, %v1516_v45  ;;  %4341 = vmatprep.mubr.msk.f32.mxu0 %vm159_vm0, %v132_v40  ;;  %vm1261_vm13 = vcmp.ge.f32.partialorder %v671_v41, 0.0  ;;  %v1518_v58 = vsel %vm1262_vm12, %v676_v37, %v1390_v43  ;;  %v143_v37 = vld [vmem:[%s6672_s0 + $0x3d8] sm:$0xff] }
  0xe8   :  { %v680_v52 = vpop.f32.mrf.mxu0  ;;  %vm1249_vm12 = vcmp.ge.f32.partialorder %v611_v42, 0.0 }
  0xe9   :  { %v681_v54 = vadd.f32 %v5579_v51, %v680_v52  ;;  %v1517_v55 = vsel %vm1261_vm13, %v671_v41, %v1389_v46  ;;  %v1392_v56 = vmul.f32 0.01, %v686_v48  ;;  %vm1264_vm14 = vcmp.ge.f32.partialorder %v686_v48, 0.0  ;;  %v146_v52 = vld [vmem:[%s6672_s0 + $0x3f0] sm:$0xff] }
  0xea   :  { %v4199_v57 = vpop.f32.mrf.mxu0  ;;  %4342 = vmatmul.mubr.msk.f32.gmra.mxu0 %vm159_vm0, %v133_v50  ;;  %4399 = vmatprep.mubr.msk.f32.mxu1 %vm1648_vm1, %v1517_v55 }
  0xeb   :  { %v1391_v59 = vmul.f32 0.01, %v681_v54  ;;  %v696_v60 = vadd.f32 %v4199_v57, %v5579_v51  ;;  %4400 = vmatmul.mubr.msk.f32.gmra.mxu1 %vm1648_vm1, %v1518_v58  ;;  %4344 = vmatprep.mubr.msk.f32.mxu0 %vm159_vm0, %v134_v53  ;;  %vm1263_vm15 = vcmp.ge.f32.partialorder %v681_v54, 0.0  ;;  %v1520_v4 = vsel %vm1264_vm14, %v686_v48, %v1392_v56 }
  0xec   :  { %v690_v62 = vpop.f32.mrf.mxu0  ;;  %v616_v53 = vadd.f32 %v5564_v47, %v5579_v51  ;;  %v1377_v56 = vmul.f32 0.01, %v611_v42  ;;  %v147_v47 = vld [vmem:[%s6672_s0 + $0x3f8] sm:$0xff] }
  0xed   :  { %v691_v0 = vadd.f32 %v5579_v51, %v690_v62  ;;  %v1519_v1 = vsel %vm1263_vm15, %v681_v54, %v1391_v59  ;;  %v1394_v2 = vmul.f32 0.01, %v696_v60  ;;  %vm1266_vm2 = vcmp.ge.f32.partialorder %v696_v60, 0.0 }
  0xee   :  { %v4202_v3 = vpop.f32.mrf.mxu0  ;;  %4345 = vmatmul.mubr.msk.f32.gmra.mxu0 %vm159_vm0, %v135_v61  ;;  %4402 = vmatprep.mubr.msk.f32.mxu1 %vm1648_vm1, %v1519_v1  ;;  %vm1250_vm15 = vcmp.ge.f32.partialorder %v616_v53, 0.0 }
  0xef   :  { %v1393_v5 = vmul.f32 0.01, %v691_v0  ;;  %v706_v6 = vadd.f32 %v4202_v3, %v5579_v51  ;;  %4403 = vmatmul.mubr.msk.f32.gmra.mxu1 %vm1648_vm1, %v1520_v4  ;;  %4347 = vmatprep.mubr.msk.f32.mxu0 %vm159_vm0, %v136_v63  ;;  %vm1265_vm3 = vcmp.ge.f32.partialorder %v691_v0, 0.0  ;;  %v1522_v14 = vsel %vm1266_vm2, %v696_v60, %v1394_v2 }
  0xf0   :  { %v700_v8 = vpop.f32.mrf.mxu0  ;;  %v1378_v63 = vmul.f32 0.01, %v616_v53  ;;  %v1505_v4 = vsel %vm1249_vm12, %v611_v42, %v1377_v56 }
  0xf1   :  { %v701_v10 = vadd.f32 %v5579_v51, %v700_v8  ;;  %v1521_v11 = vsel %vm1265_vm3, %v691_v0, %v1393_v5  ;;  %v1396_v12 = vmul.f32 0.01, %v706_v6  ;;  %vm1268_vm4 = vcmp.ge.f32.partialorder %v706_v6, 0.0 }
  0xf2   :  { %v4205_v13 = vpop.f32.mrf.mxu0  ;;  %4348 = vmatmul.mubr.msk.f32.gmra.mxu0 %vm159_vm0, %v137_v7  ;;  %4405 = vmatprep.mubr.msk.f32.mxu1 %vm1648_vm1, %v1521_v11 }
  0xf3   :  { %vm1267_vm5 = vcmp.ge.f32.partialorder %v701_v10, 0.0  ;;  %v1395_v15 = vmul.f32 0.01, %v701_v10  ;;  %v716_v16 = vadd.f32 %v4205_v13, %v5579_v51  ;;  %4406 = vmatmul.mubr.msk.f32.gmra.mxu1 %vm1648_vm1, %v1522_v14  ;;  %4350 = vmatprep.mubr.msk.f32.mxu0 %vm159_vm0, %v138_v9  ;;  %v1524_v24 = vsel %vm1268_vm4, %v706_v6, %v1396_v12 }
  0xf4   :  { %v710_v18 = vpop.f32.mrf.mxu0  ;;  %v1506_v9 = vsel %vm1250_vm15, %v616_v53, %v1378_v63 }
  0xf5   :  { %v711_v20 = vadd.f32 %v5579_v51, %v710_v18  ;;  %v1523_v21 = vsel %vm1267_vm5, %v701_v10, %v1395_v15  ;;  %v1398_v22 = vmul.f32 0.01, %v716_v16  ;;  %vm1270_vm6 = vcmp.ge.f32.partialorder %v716_v16, 0.0 }
  0xf6   :  { %v4208_v23 = vpop.f32.mrf.mxu0  ;;  %4351 = vmatmul.mubr.msk.f32.gmra.mxu0 %vm159_vm0, %v139_v17  ;;  %4408 = vmatprep.mubr.msk.f32.mxu1 %vm1648_vm1, %v1523_v21 }
  0xf7   :  { %vm1269_vm7 = vcmp.ge.f32.partialorder %v711_v20, 0.0  ;;  %v1397_v25 = vmul.f32 0.01, %v711_v20  ;;  %v726_v26 = vadd.f32 %v4208_v23, %v5579_v51  ;;  %4409 = vmatmul.mubr.msk.f32.gmra.mxu1 %vm1648_vm1, %v1524_v24  ;;  %4353 = vmatprep.mubr.msk.f32.mxu0 %vm159_vm0, %v140_v19  ;;  %v1526_v34 = vsel %vm1270_vm6, %v716_v16, %v1398_v22 }
  0xf8   :  { %v720_v28 = vpop.f32.mrf.mxu0 }
  0xf9   :  { %v721_v30 = vadd.f32 %v5579_v51, %v720_v28  ;;  %v1525_v31 = vsel %vm1269_vm7, %v711_v20, %v1397_v25  ;;  %v1400_v32 = vmul.f32 0.01, %v726_v26  ;;  %vm1272_vm8 = vcmp.ge.f32.partialorder %v726_v26, 0.0 }
  0xfa   :  { %v4211_v33 = vpop.f32.mrf.mxu0  ;;  %4354 = vmatmul.mubr.msk.f32.gmra.mxu0 %vm159_vm0, %v141_v27  ;;  %4411 = vmatprep.mubr.msk.f32.mxu1 %vm1648_vm1, %v1525_v31 }
  0xfb   :  { %vm1271_vm9 = vcmp.ge.f32.partialorder %v721_v30, 0.0  ;;  %v1399_v35 = vmul.f32 0.01, %v721_v30  ;;  %v736_v36 = vadd.f32 %v4211_v33, %v5579_v51  ;;  %4412 = vmatmul.mubr.msk.f32.gmra.mxu1 %vm1648_vm1, %v1526_v34  ;;  %4356 = vmatprep.mubr.msk.f32.mxu0 %vm159_vm0, %v142_v29  ;;  %v1528_v45 = vsel %vm1272_vm8, %v726_v26, %v1400_v32 }
  0xfc   :  { %v730_v38 = vpop.f32.mrf.mxu0 }
  0xfd   :  { %v731_v40 = vadd.f32 %v5579_v51, %v730_v38  ;;  %v1527_v41 = vsel %vm1271_vm9, %v721_v30, %v1399_v35  ;;  %v1402_v43 = vmul.f32 0.01, %v736_v36  ;;  %vm1274_vm10 = vcmp.ge.f32.partialorder %v736_v36, 0.0 }
  0xfe   :  { %v4214_v44 = vpop.f32.mrf.mxu0  ;;  %4357 = vmatmul.mubr.msk.f32.gmra.mxu0 %vm159_vm0, %v143_v37  ;;  %4414 = vmatprep.mubr.msk.f32.mxu1 %vm1648_vm1, %v1527_v41 }
  0xff   :  { %vm1273_vm11 = vcmp.ge.f32.partialorder %v731_v40, 0.0  ;;  %v1401_v46 = vmul.f32 0.01, %v731_v40  ;;  %v746_v48 = vadd.f32 %v4214_v44, %v5579_v51  ;;  %4415 = vmatmul.mubr.msk.f32.gmra.mxu1 %vm1648_vm1, %v1528_v45  ;;  %4359 = vmatprep.mubr.msk.f32.mxu0 %vm159_vm0, %v144_v39  ;;  %v1530_v59 = vsel %vm1274_vm10, %v736_v36, %v1402_v43 }
 0x100   :  { %v740_v50 = vpop.f32.mrf.mxu0 }
 0x101   :  { %v741_v54 = vadd.f32 %v5579_v51, %v740_v50  ;;  %v1529_v55 = vsel %vm1273_vm11, %v731_v40, %v1401_v46  ;;  %v1404_v57 = vmul.f32 0.01, %v746_v48  ;;  %vm1276_vm13 = vcmp.ge.f32.partialorder %v746_v48, 0.0 }
 0x102   :  { %v4217_v58 = vpop.f32.mrf.mxu0  ;;  %4360 = vmatmul.mubr.msk.f32.gmra.mxu0 %vm159_vm0, %v145_v49  ;;  %4417 = vmatprep.mubr.msk.f32.mxu1 %vm1648_vm1, %v1529_v55 }
 0x103   :  { %vm1275_vm14 = vcmp.ge.f32.partialorder %v741_v54, 0.0  ;;  %v1403_v60 = vmul.f32 0.01, %v741_v54  ;;  %v756_v61 = vadd.f32 %v4217_v58, %v5579_v51  ;;  %4418 = vmatmul.mubr.msk.f32.gmra.mxu1 %vm1648_vm1, %v1530_v59  ;;  %4362 = vmatprep.mubr.msk.f32.mxu0 %vm159_vm0, %v146_v52  ;;  %v1532_v5 = vsel %vm1276_vm13, %v746_v48, %v1404_v57 }
 0x104   :  { %v750_v62 = vpop.f32.mrf.mxu0 }
 0x105   :  { %v751_v0 = vadd.f32 %v5579_v51, %v750_v62  ;;  %v1531_v1 = vsel %vm1275_vm14, %v741_v54, %v1403_v60  ;;  %v1406_v2 = vmul.f32 0.01, %v756_v61  ;;  %vm1278_vm2 = vcmp.ge.f32.partialorder %v756_v61, 0.0 }
 0x106   :  { %v4220_v3 = vpop.f32.mrf.mxu0  ;;  %4363 = vmatmul.mubr.msk.f32.gmra.mxu0 %vm159_vm0, %v147_v47  ;;  %4420 = vmatprep.mubr.msk.f32.mxu1 %vm1648_vm1, %v1531_v1 }
 0x107   :  { %vm1277_vm3 = vcmp.ge.f32.partialorder %v751_v0, 0.0  ;;  %v1405_v6 = vmul.f32 0.01, %v751_v0  ;;  %v766_v7 = vadd.f32 %v4220_v3, %v5579_v51  ;;  %4381 = vmatprep.mubr.msk.f32.mxu0 %vm1648_vm1, %v1505_v4  ;;  %4421 = vmatmul.mubr.msk.f32.gmra.mxu1 %vm1648_vm1, %v1532_v5  ;;  %v1534_v14 = vsel %vm1278_vm2, %v756_v61, %v1406_v2 }
 0x108   :  { %v760_v8 = vpop.f32.mrf.mxu0 }
 0x109   :  { %v761_v10 = vadd.f32 %v5579_v51, %v760_v8  ;;  %v1533_v11 = vsel %vm1277_vm3, %v751_v0, %v1405_v6  ;;  %v1408_v12 = vmul.f32 0.01, %v766_v7  ;;  %vm1280_vm0 = vcmp.ge.f32.partialorder %v766_v7, 0.0 }
 0x10a   :  { %v4223_v13 = vpop.f32.mrf.mxu0  ;;  %4382 = vmatmul.mubr.msk.f32.vlgmr.msra.gmra.mxu0 %vm1648_vm1, %v1506_v9  ;;  %4423 = vmatprep.mubr.msk.f32.mxu1 %vm1648_vm1, %v1533_v11 }
 0x10b   :  { %vm1279_vm4 = vcmp.ge.f32.partialorder %v761_v10, 0.0  ;;  %v1407_v15 = vmul.f32 0.01, %v761_v10  ;;  %v776_v16 = vadd.f32 %v4223_v13, %v5579_v51  ;;  %4424 = vmatmul.mubr.msk.f32.gmra.mxu1 %vm1648_vm1, %v1534_v14  ;;  %v1536_v22 = vsel %vm1280_vm0, %v766_v7, %v1408_v12 }
 0x10c   :  { %v770_v17 = vpop.f32.mrf.mxu0 }
 0x10d   :  { %v771_v18 = vadd.f32 %v5579_v51, %v770_v17  ;;  %v1535_v19 = vsel %vm1279_vm4, %v761_v10, %v1407_v15  ;;  %v1410_v20 = vmul.f32 0.01, %v776_v16  ;;  %vm1282_vm5 = vcmp.ge.f32.partialorder %v776_v16, 0.0 }
 0x10e   :  { %v4226_v21 = vpop.f32.mrf.mxu0  ;;  %4426 = vmatprep.mubr.msk.f32.mxu1 %vm1648_vm1, %v1535_v19 }
 0x10f   :  { %vm1281_vm6 = vcmp.ge.f32.partialorder %v771_v18, 0.0  ;;  %v1409_v23 = vmul.f32 0.01, %v771_v18  ;;  %v786_v24 = vadd.f32 %v4226_v21, %v5579_v51  ;;  %4427 = vmatmul.mubr.msk.f32.gmra.mxu1 %vm1648_vm1, %v1536_v22  ;;  %v1538_v30 = vsel %vm1282_vm5, %v776_v16, %v1410_v20 }
 0x110   :  { %v780_v25 = vpop.f32.mrf.mxu0 }
 0x111   :  { %v781_v26 = vadd.f32 %v5579_v51, %v780_v25  ;;  %v1537_v27 = vsel %vm1281_vm6, %v771_v18, %v1409_v23  ;;  %v1412_v28 = vmul.f32 0.01, %v786_v24  ;;  %vm1284_vm7 = vcmp.ge.f32.partialorder %v786_v24, 0.0 }
 0x112   :  { %v4229_v29 = vpop.f32.mrf.mxu0  ;;  %4429 = vmatprep.mubr.msk.f32.mxu1 %vm1648_vm1, %v1537_v27 }
 0x113   :  { %vm1283_vm8 = vcmp.ge.f32.partialorder %v781_v26, 0.0  ;;  %v1411_v31 = vmul.f32 0.01, %v781_v26  ;;  %v796_v32 = vadd.f32 %v4229_v29, %v5579_v51  ;;  %4430 = vmatmul.mubr.msk.f32.gmra.mxu1 %vm1648_vm1, %v1538_v30  ;;  %v1540_v38 = vsel %vm1284_vm7, %v786_v24, %v1412_v28 }
 0x114   :  { %v790_v33 = vpop.f32.mrf.mxu0 }
 0x115   :  { %v791_v34 = vadd.f32 %v5579_v51, %v790_v33  ;;  %v1539_v35 = vsel %vm1283_vm8, %v781_v26, %v1411_v31  ;;  %v1414_v36 = vmul.f32 0.01, %v796_v32  ;;  %vm1286_vm9 = vcmp.ge.f32.partialorder %v796_v32, 0.0 }
 0x116   :  { %v4232_v37 = vpop.f32.mrf.mxu0  ;;  %4432 = vmatprep.mubr.msk.f32.mxu1 %vm1648_vm1, %v1539_v35 }
 0x117   :  { %vm1285_vm10 = vcmp.ge.f32.partialorder %v791_v34, 0.0  ;;  %v1413_v39 = vmul.f32 0.01, %v791_v34  ;;  %v806_v40 = vadd.f32 %v4232_v37, %v5579_v51  ;;  %4433 = vmatmul.mubr.msk.f32.gmra.mxu1 %vm1648_vm1, %v1540_v38  ;;  %v1542_v46 = vsel %vm1286_vm9, %v796_v32, %v1414_v36 }
 0x118   :  { %v800_v41 = vpop.f32.mrf.mxu0 }
 0x119   :  { %v801_v42 = vadd.f32 %v5579_v51, %v800_v41  ;;  %v1541_v43 = vsel %vm1285_vm10, %v791_v34, %v1413_v39  ;;  %v1416_v44 = vmul.f32 0.01, %v806_v40  ;;  %vm1288_vm11 = vcmp.ge.f32.partialorder %v806_v40, 0.0 }
 0x11a   :  { %v4235_v45 = vpop.f32.mrf.mxu0  ;;  %4435 = vmatprep.mubr.msk.f32.mxu1 %vm1648_vm1, %v1541_v43 }
 0x11b   :  { %vm1287_vm12 = vcmp.ge.f32.partialorder %v801_v42, 0.0  ;;  %v1415_v48 = vmul.f32 0.01, %v801_v42  ;;  %v816_v49 = vadd.f32 %v4235_v45, %v5579_v51  ;;  %4436 = vmatmul.mubr.msk.f32.gmra.mxu1 %vm1648_vm1, %v1542_v46  ;;  %v1544_v56 = vsel %vm1288_vm11, %v806_v40, %v1416_v44 }
 0x11c   :  { %v810_v50 = vpop.f32.mrf.mxu0 }
 0x11d   :  { %v811_v52 = vadd.f32 %v5579_v51, %v810_v50  ;;  %v1543_v53 = vsel %vm1287_vm12, %v801_v42, %v1415_v48  ;;  %v1418_v54 = vmul.f32 0.01, %v816_v49  ;;  %vm1290_vm13 = vcmp.ge.f32.partialorder %v816_v49, 0.0 }
 0x11e   :  { %v4238_v55 = vpop.f32.mrf.mxu0  ;;  %4438 = vmatprep.mubr.msk.f32.mxu1 %vm1648_vm1, %v1543_v53 }
 0x11f   :  { %vm1289_vm14 = vcmp.ge.f32.partialorder %v811_v52, 0.0  ;;  %v1417_v57 = vmul.f32 0.01, %v811_v52  ;;  %v826_v58 = vadd.f32 %v4238_v55, %v5579_v51  ;;  %4439 = vmatmul.mubr.msk.f32.gmra.mxu1 %vm1648_vm1, %v1544_v56  ;;  %v1546_v63 = vsel %vm1290_vm13, %v816_v49, %v1418_v54 }
 0x120   :  { %v820_v59 = vpop.f32.mrf.mxu0 }
 0x121   :  { %v821_v60 = vadd.f32 %v5579_v51, %v820_v59  ;;  %v1545_v61 = vsel %vm1289_vm14, %v811_v52, %v1417_v57  ;;  %v1420_v47 = vmul.f32 0.01, %v826_v58  ;;  %vm1292_vm15 = vcmp.ge.f32.partialorder %v826_v58, 0.0 }
 0x122   :  { %v4241_v62 = vpop.f32.mrf.mxu0  ;;  %4441 = vmatprep.mubr.msk.f32.mxu1 %vm1648_vm1, %v1545_v61 }
 0x123   :  { %vm1291_vm2 = vcmp.ge.f32.partialorder %v821_v60, 0.0  ;;  %v1419_v0 = vmul.f32 0.01, %v821_v60  ;;  %v836_v1 = vadd.f32 %v4241_v62, %v5579_v51  ;;  %4442 = vmatmul.mubr.msk.f32.gmra.mxu1 %vm1648_vm1, %v1546_v63  ;;  %v1548_v7 = vsel %vm1292_vm15, %v826_v58, %v1420_v47 }
 0x124   :  { %v830_v2 = vpop.f32.mrf.mxu0 }
 0x125   :  { %v831_v3 = vadd.f32 %v5579_v51, %v830_v2  ;;  %v1547_v4 = vsel %vm1291_vm2, %v821_v60, %v1419_v0  ;;  %v1422_v5 = vmul.f32 0.01, %v836_v1  ;;  %vm1294_vm3 = vcmp.ge.f32.partialorder %v836_v1, 0.0 }
 0x126   :  { %v4244_v6 = vpop.f32.mrf.mxu0  ;;  %4444 = vmatprep.mubr.msk.f32.mxu1 %vm1648_vm1, %v1547_v4 }
 0x127   :  { %vm1293_vm0 = vcmp.ge.f32.partialorder %v831_v3, 0.0  ;;  %v1421_v8 = vmul.f32 0.01, %v831_v3  ;;  %v846_v9 = vadd.f32 %v4244_v6, %v5579_v51  ;;  %4445 = vmatmul.mubr.msk.f32.gmra.mxu1 %vm1648_vm1, %v1548_v7  ;;  %v1550_v15 = vsel %vm1294_vm3, %v836_v1, %v1422_v5 }
 0x128   :  { %v840_v10 = vpop.f32.mrf.mxu0 }
 0x129   :  { %v841_v11 = vadd.f32 %v5579_v51, %v840_v10  ;;  %v1549_v12 = vsel %vm1293_vm0, %v831_v3, %v1421_v8  ;;  %v1424_v13 = vmul.f32 0.01, %v846_v9  ;;  %vm1296_vm4 = vcmp.ge.f32.partialorder %v846_v9, 0.0 }
 0x12a   :  { %v4247_v14 = vpop.f32.mrf.mxu0  ;;  %4447 = vmatprep.mubr.msk.f32.mxu1 %vm1648_vm1, %v1549_v12 }
 0x12b   :  { %vm1295_vm5 = vcmp.ge.f32.partialorder %v841_v11, 0.0  ;;  %v1423_v16 = vmul.f32 0.01, %v841_v11  ;;  %v856_v17 = vadd.f32 %v4247_v14, %v5579_v51  ;;  %4448 = vmatmul.mubr.msk.f32.gmra.mxu1 %vm1648_vm1, %v1550_v15  ;;  %v1552_v23 = vsel %vm1296_vm4, %v846_v9, %v1424_v13 }
 0x12c   :  { %v850_v18 = vpop.f32.mrf.mxu0 }
 0x12d   :  { %v851_v19 = vadd.f32 %v5579_v51, %v850_v18  ;;  %v1551_v20 = vsel %vm1295_vm5, %v841_v11, %v1423_v16  ;;  %v1426_v21 = vmul.f32 0.01, %v856_v17  ;;  %vm1298_vm6 = vcmp.ge.f32.partialorder %v856_v17, 0.0 }
 0x12e   :  { %v4250_v22 = vpop.f32.mrf.mxu0  ;;  %4450 = vmatprep.mubr.msk.f32.mxu1 %vm1648_vm1, %v1551_v20 }
 0x12f   :  { %vm1297_vm7 = vcmp.ge.f32.partialorder %v851_v19, 0.0  ;;  %v1425_v24 = vmul.f32 0.01, %v851_v19  ;;  %v866_v25 = vadd.f32 %v4250_v22, %v5579_v51  ;;  %4451 = vmatmul.mubr.msk.f32.gmra.mxu1 %vm1648_vm1, %v1552_v23  ;;  %v1554_v31 = vsel %vm1298_vm6, %v856_v17, %v1426_v21 }
 0x130   :  { %v860_v26 = vpop.f32.mrf.mxu0 }
 0x131   :  { %v861_v27 = vadd.f32 %v5579_v51, %v860_v26  ;;  %v1553_v28 = vsel %vm1297_vm7, %v851_v19, %v1425_v24  ;;  %v1428_v29 = vmul.f32 0.01, %v866_v25  ;;  %vm1300_vm8 = vcmp.ge.f32.partialorder %v866_v25, 0.0 }
 0x132   :  { %v4253_v30 = vpop.f32.mrf.mxu0  ;;  %4453 = vmatprep.mubr.msk.f32.mxu1 %vm1648_vm1, %v1553_v28 }
 0x133   :  { %vm1299_vm9 = vcmp.ge.f32.partialorder %v861_v27, 0.0  ;;  %v1427_v32 = vmul.f32 0.01, %v861_v27  ;;  %v876_v33 = vadd.f32 %v4253_v30, %v5579_v51  ;;  %4454 = vmatmul.mubr.msk.f32.gmra.mxu1 %vm1648_vm1, %v1554_v31  ;;  %v1556_v39 = vsel %vm1300_vm8, %v866_v25, %v1428_v29 }
 0x134   :  { %v870_v34 = vpop.f32.mrf.mxu0 }
 0x135   :  { %v871_v35 = vadd.f32 %v5579_v51, %v870_v34  ;;  %v1555_v36 = vsel %vm1299_vm9, %v861_v27, %v1427_v32  ;;  %v1430_v37 = vmul.f32 0.01, %v876_v33  ;;  %vm1302_vm10 = vcmp.ge.f32.partialorder %v876_v33, 0.0 }
 0x136   :  { %v4256_v38 = vpop.f32.mrf.mxu0  ;;  %4456 = vmatprep.mubr.msk.f32.mxu1 %vm1648_vm1, %v1555_v36 }
 0x137   :  { %vm1301_vm11 = vcmp.ge.f32.partialorder %v871_v35, 0.0  ;;  %v1429_v40 = vmul.f32 0.01, %v871_v35  ;;  %v886_v41 = vadd.f32 %v4256_v38, %v5579_v51  ;;  %4457 = vmatmul.mubr.msk.f32.gmra.mxu1 %vm1648_vm1, %v1556_v39  ;;  %v1558_v48 = vsel %vm1302_vm10, %v876_v33, %v1430_v37 }
 0x138   :  { %v880_v42 = vpop.f32.mrf.mxu0 }
 0x139   :  { %v881_v43 = vadd.f32 %v5579_v51, %v880_v42  ;;  %v1557_v44 = vsel %vm1301_vm11, %v871_v35, %v1429_v40  ;;  %v1432_v45 = vmul.f32 0.01, %v886_v41  ;;  %vm1304_vm12 = vcmp.ge.f32.partialorder %v886_v41, 0.0 }
 0x13a   :  { %v4259_v46 = vpop.f32.mrf.mxu0  ;;  %4459 = vmatprep.mubr.msk.f32.mxu1 %vm1648_vm1, %v1557_v44 }
 0x13b   :  { %vm1303_vm13 = vcmp.ge.f32.partialorder %v881_v43, 0.0  ;;  %v1431_v49 = vmul.f32 0.01, %v881_v43  ;;  %v896_v50 = vadd.f32 %v4259_v46, %v5579_v51  ;;  %4460 = vmatmul.mubr.msk.f32.gmra.mxu1 %vm1648_vm1, %v1558_v48  ;;  %v1560_v57 = vsel %vm1304_vm12, %v886_v41, %v1432_v45 }
 0x13c   :  { %v890_v52 = vpop.f32.mrf.mxu0 }
 0x13d   :  { %v891_v53 = vadd.f32 %v5579_v51, %v890_v52  ;;  %v1559_v54 = vsel %vm1303_vm13, %v881_v43, %v1431_v49  ;;  %v1434_v55 = vmul.f32 0.01, %v896_v50  ;;  %vm1306_vm14 = vcmp.ge.f32.partialorder %v896_v50, 0.0 }
 0x13e   :  { %v4262_v56 = vpop.f32.mrf.mxu0  ;;  %4462 = vmatprep.mubr.msk.f32.mxu1 %vm1648_vm1, %v1559_v54 }
 0x13f   :  { %vm1305_vm15 = vcmp.ge.f32.partialorder %v891_v53, 0.0  ;;  %v1433_v58 = vmul.f32 0.01, %v891_v53  ;;  %v906_v59 = vadd.f32 %v4262_v56, %v5579_v51  ;;  %4463 = vmatmul.mubr.msk.f32.gmra.mxu1 %vm1648_vm1, %v1560_v57  ;;  %v1562_v0 = vsel %vm1306_vm14, %v896_v50, %v1434_v55 }
 0x140   :  { %v900_v60 = vpop.f32.mrf.mxu0 }
 0x141   :  { %v901_v61 = vadd.f32 %v5579_v51, %v900_v60  ;;  %v1561_v47 = vsel %vm1305_vm15, %v891_v53, %v1433_v58  ;;  %v1436_v62 = vmul.f32 0.01, %v906_v59  ;;  %vm1308_vm2 = vcmp.ge.f32.partialorder %v906_v59, 0.0 }
 0x142   :  { %v4265_v63 = vpop.f32.mrf.mxu0  ;;  %4465 = vmatprep.mubr.msk.f32.mxu1 %vm1648_vm1, %v1561_v47 }
 0x143   :  { %vm1307_vm3 = vcmp.ge.f32.partialorder %v901_v61, 0.0  ;;  %v1435_v1 = vmul.f32 0.01, %v901_v61  ;;  %v916_v2 = vadd.f32 %v4265_v63, %v5579_v51  ;;  %4466 = vmatmul.mubr.msk.f32.gmra.mxu1 %vm1648_vm1, %v1562_v0  ;;  %v1564_v8 = vsel %vm1308_vm2, %v906_v59, %v1436_v62 }
 0x144   :  { %v910_v3 = vpop.f32.mrf.mxu0 }
 0x145   :  { %v911_v4 = vadd.f32 %v5579_v51, %v910_v3  ;;  %v1563_v5 = vsel %vm1307_vm3, %v901_v61, %v1435_v1  ;;  %v1438_v6 = vmul.f32 0.01, %v916_v2  ;;  %vm1310_vm0 = vcmp.ge.f32.partialorder %v916_v2, 0.0 }
 0x146   :  { %v4268_v7 = vpop.f32.mrf.mxu0  ;;  %4468 = vmatprep.mubr.msk.f32.mxu1 %vm1648_vm1, %v1563_v5 }
 0x147   :  { %vm1309_vm4 = vcmp.ge.f32.partialorder %v911_v4, 0.0  ;;  %v1437_v9 = vmul.f32 0.01, %v911_v4  ;;  %v926_v10 = vadd.f32 %v4268_v7, %v5579_v51  ;;  %4469 = vmatmul.mubr.msk.f32.gmra.mxu1 %vm1648_vm1, %v1564_v8  ;;  %v1566_v16 = vsel %vm1310_vm0, %v916_v2, %v1438_v6 }
 0x148   :  { %v920_v11 = vpop.f32.mrf.mxu0 }
 0x149   :  { %v921_v12 = vadd.f32 %v5579_v51, %v920_v11  ;;  %v1565_v13 = vsel %vm1309_vm4, %v911_v4, %v1437_v9  ;;  %v1440_v14 = vmul.f32 0.01, %v926_v10  ;;  %vm1312_vm5 = vcmp.ge.f32.partialorder %v926_v10, 0.0  ;;  %v5853_v11 = vld [vmem:[%s6674_s2] ss:$0 sm:$0xff] }
 0x14a   :  { %v4271_v15 = vpop.f32.mrf.mxu0  ;;  %4471 = vmatprep.mubr.msk.f32.mxu1 %vm1648_vm1, %v1565_v13 }
 0x14b   :  { %vm1311_vm6 = vcmp.ge.f32.partialorder %v921_v12, 0.0  ;;  %v1439_v17 = vmul.f32 0.01, %v921_v12  ;;  %v936_v18 = vadd.f32 %v4271_v15, %v5579_v51  ;;  %4472 = vmatmul.mubr.msk.f32.gmra.mxu1 %vm1648_vm1, %v1566_v16  ;;  %v1568_v24 = vsel %vm1312_vm5, %v926_v10, %v1440_v14 }
 0x14c   :  { %v930_v19 = vpop.f32.mrf.mxu0 }
 0x14d   :  { %v931_v20 = vadd.f32 %v5579_v51, %v930_v19  ;;  %v1567_v21 = vsel %vm1311_vm6, %v921_v12, %v1439_v17  ;;  %v1442_v22 = vmul.f32 0.01, %v936_v18  ;;  %vm1314_vm7 = vcmp.ge.f32.partialorder %v936_v18, 0.0 }
 0x14e   :  { %v4274_v23 = vpop.f32.mrf.mxu0  ;;  %4474 = vmatprep.mubr.msk.f32.mxu1 %vm1648_vm1, %v1567_v21 }
 0x14f   :  { %vm1313_vm8 = vcmp.ge.f32.partialorder %v931_v20, 0.0  ;;  %v1441_v25 = vmul.f32 0.01, %v931_v20  ;;  %v946_v26 = vadd.f32 %v4274_v23, %v5579_v51  ;;  %4475 = vmatmul.mubr.msk.f32.gmra.mxu1 %vm1648_vm1, %v1568_v24  ;;  %v1570_v32 = vsel %vm1314_vm7, %v936_v18, %v1442_v22 }
 0x150   :  { %v940_v27 = vpop.f32.mrf.mxu0 }
 0x151   :  { %v941_v28 = vadd.f32 %v5579_v51, %v940_v27  ;;  %v1569_v29 = vsel %vm1313_vm8, %v931_v20, %v1441_v25  ;;  %v1444_v30 = vmul.f32 0.01, %v946_v26  ;;  %vm1316_vm9 = vcmp.ge.f32.partialorder %v946_v26, 0.0 }
 0x152   :  { %v4277_v31 = vpop.f32.mrf.mxu0  ;;  %4477 = vmatprep.mubr.msk.f32.mxu1 %vm1648_vm1, %v1569_v29 }
 0x153   :  { %vm1315_vm10 = vcmp.ge.f32.partialorder %v941_v28, 0.0  ;;  %v1443_v33 = vmul.f32 0.01, %v941_v28  ;;  %v956_v34 = vadd.f32 %v4277_v31, %v5579_v51  ;;  %4478 = vmatmul.mubr.msk.f32.gmra.mxu1 %vm1648_vm1, %v1570_v32  ;;  %v1572_v40 = vsel %vm1316_vm9, %v946_v26, %v1444_v30 }
 0x154   :  { %v950_v35 = vpop.f32.mrf.mxu0 }
 0x155   :  { %v951_v36 = vadd.f32 %v5579_v51, %v950_v35  ;;  %v1571_v37 = vsel %vm1315_vm10, %v941_v28, %v1443_v33  ;;  %v1446_v38 = vmul.f32 0.01, %v956_v34  ;;  %vm1318_vm11 = vcmp.ge.f32.partialorder %v956_v34, 0.0 }
 0x156   :  { %v4280_v39 = vpop.f32.mrf.mxu0  ;;  %4480 = vmatprep.mubr.msk.f32.mxu1 %vm1648_vm1, %v1571_v37 }
 0x157   :  { %vm1317_vm12 = vcmp.ge.f32.partialorder %v951_v36, 0.0  ;;  %v1445_v41 = vmul.f32 0.01, %v951_v36  ;;  %v966_v42 = vadd.f32 %v4280_v39, %v5579_v51  ;;  %4481 = vmatmul.mubr.msk.f32.gmra.mxu1 %vm1648_vm1, %v1572_v40  ;;  %v1574_v49 = vsel %vm1318_vm11, %v956_v34, %v1446_v38 }
 0x158   :  { %v960_v43 = vpop.f32.mrf.mxu0 }
 0x159   :  { %v961_v44 = vadd.f32 %v5579_v51, %v960_v43  ;;  %v1573_v45 = vsel %vm1317_vm12, %v951_v36, %v1445_v41  ;;  %v1448_v46 = vmul.f32 0.01, %v966_v42  ;;  %vm1320_vm13 = vcmp.ge.f32.partialorder %v966_v42, 0.0 }
 0x15a   :  { %v4283_v48 = vpop.f32.mrf.mxu0  ;;  %4483 = vmatprep.mubr.msk.f32.mxu1 %vm1648_vm1, %v1573_v45 }
 0x15b   :  { %vm1319_vm14 = vcmp.ge.f32.partialorder %v961_v44, 0.0  ;;  %v1447_v50 = vmul.f32 0.01, %v961_v44  ;;  %v976_v52 = vadd.f32 %v4283_v48, %v5579_v51  ;;  %4484 = vmatmul.mubr.msk.f32.gmra.mxu1 %vm1648_vm1, %v1574_v49  ;;  %v1576_v58 = vsel %vm1320_vm13, %v966_v42, %v1448_v46 }
 0x15c   :  { %v970_v53 = vpop.f32.mrf.mxu0 }
 0x15d   :  { %v971_v54 = vadd.f32 %v5579_v51, %v970_v53  ;;  %v1575_v55 = vsel %vm1319_vm14, %v961_v44, %v1447_v50  ;;  %v1450_v56 = vmul.f32 0.01, %v976_v52  ;;  %vm1322_vm15 = vcmp.ge.f32.partialorder %v976_v52, 0.0 }
 0x15e   :  { %v4286_v57 = vpop.f32.mrf.mxu0  ;;  %4486 = vmatprep.mubr.msk.f32.mxu1 %vm1648_vm1, %v1575_v55 }
 0x15f   :  { %vm1321_vm2 = vcmp.ge.f32.partialorder %v971_v54, 0.0  ;;  %v1449_v59 = vmul.f32 0.01, %v971_v54  ;;  %v986_v60 = vadd.f32 %v4286_v57, %v5579_v51  ;;  %4487 = vmatmul.mubr.msk.f32.gmra.mxu1 %vm1648_vm1, %v1576_v58  ;;  %v1578_v1 = vsel %vm1322_vm15, %v976_v52, %v1450_v56 }
 0x160   :  { %v980_v61 = vpop.f32.mrf.mxu0 }
 0x161   :  { %v981_v47 = vadd.f32 %v5579_v51, %v980_v61  ;;  %v1577_v62 = vsel %vm1321_vm2, %v971_v54, %v1449_v59  ;;  %v1452_v63 = vmul.f32 0.01, %v986_v60  ;;  %vm1324_vm3 = vcmp.ge.f32.partialorder %v986_v60, 0.0 }
 0x162   :  { %v4289_v0 = vpop.f32.mrf.mxu0  ;;  %4489 = vmatprep.mubr.msk.f32.mxu1 %vm1648_vm1, %v1577_v62 }
 0x163   :  { %vm1323_vm0 = vcmp.ge.f32.partialorder %v981_v47, 0.0  ;;  %v1451_v2 = vmul.f32 0.01, %v981_v47  ;;  %v996_v3 = vadd.f32 %v4289_v0, %v5579_v51  ;;  %4490 = vmatmul.mubr.msk.f32.gmra.mxu1 %vm1648_vm1, %v1578_v1  ;;  %v1580_v9 = vsel %vm1324_vm3, %v986_v60, %v1452_v63 }
 0x164   :  { %v990_v4 = vpop.f32.mrf.mxu0 }
 0x165   :  { %v991_v5 = vadd.f32 %v5579_v51, %v990_v4  ;;  %v1579_v6 = vsel %vm1323_vm0, %v981_v47, %v1451_v2  ;;  %v1454_v7 = vmul.f32 0.01, %v996_v3  ;;  %vm1326_vm4 = vcmp.ge.f32.partialorder %v996_v3, 0.0 }
 0x166   :  { %v4292_v8 = vpop.f32.mrf.mxu0  ;;  %4492 = vmatprep.mubr.msk.f32.mxu1 %vm1648_vm1, %v1579_v6 }
 0x167   :  { %vm1325_vm5 = vcmp.ge.f32.partialorder %v991_v5, 0.0  ;;  %v1453_v10 = vmul.f32 0.01, %v991_v5  ;;  %v1006_v12 = vadd.f32 %v5853_v11, %v4292_v8  ;;  %4493 = vmatmul.mubr.msk.f32.gmra.mxu1 %vm1648_vm1, %v1580_v9  ;;  %v1582_v17 = vsel %vm1326_vm4, %v996_v3, %v1454_v7 }
 0x168   :  { %v1000_v13 = vpop.f32.mrf.mxu0 }
 0x169   :  { %v1001_v51 = vadd.f32 %v5853_v11, %v1000_v13  ;;  %v1581_v14 = vsel %vm1325_vm5, %v991_v5, %v1453_v10  ;;  %v1456_v15 = vmul.f32 0.01, %v1006_v12  ;;  %vm1328_vm6 = vcmp.ge.f32.partialorder %v1006_v12, 0.0 }
 0x16a   :  { %v4295_v16 = vpop.f32.mrf.mxu0  ;;  %4495 = vmatprep.mubr.msk.f32.mxu1 %vm1648_vm1, %v1581_v14 }
 0x16b   :  { %vm1327_vm7 = vcmp.ge.f32.partialorder %v1001_v51, 0.0  ;;  %v1455_v18 = vmul.f32 0.01, %v1001_v51  ;;  %v1016_v19 = vadd.f32 %v5853_v11, %v4295_v16  ;;  %4496 = vmatmul.mubr.msk.f32.gmra.mxu1 %vm1648_vm1, %v1582_v17  ;;  %v1584_v25 = vsel %vm1328_vm6, %v1006_v12, %v1456_v15 }
 0x16c   :  { %v1010_v20 = vpop.f32.mrf.mxu0 }
 0x16d   :  { %v1011_v21 = vadd.f32 %v5853_v11, %v1010_v20  ;;  %v1583_v22 = vsel %vm1327_vm7, %v1001_v51, %v1455_v18  ;;  %v1458_v23 = vmul.f32 0.01, %v1016_v19  ;;  %vm1330_vm8 = vcmp.ge.f32.partialorder %v1016_v19, 0.0 }
 0x16e   :  { %v4298_v24 = vpop.f32.mrf.mxu0  ;;  %4498 = vmatprep.mubr.msk.f32.mxu1 %vm1648_vm1, %v1583_v22 }
 0x16f   :  { %vm1329_vm9 = vcmp.ge.f32.partialorder %v1011_v21, 0.0  ;;  %v1457_v26 = vmul.f32 0.01, %v1011_v21  ;;  %v1026_v27 = vadd.f32 %v5853_v11, %v4298_v24  ;;  %4499 = vmatmul.mubr.msk.f32.gmra.mxu1 %vm1648_vm1, %v1584_v25  ;;  %v1586_v33 = vsel %vm1330_vm8, %v1016_v19, %v1458_v23 }
 0x170   :  { %v1020_v28 = vpop.f32.mrf.mxu0 }
 0x171   :  { %v1021_v29 = vadd.f32 %v5853_v11, %v1020_v28  ;;  %v1585_v30 = vsel %vm1329_vm9, %v1011_v21, %v1457_v26  ;;  %v1460_v31 = vmul.f32 0.01, %v1026_v27  ;;  %vm1332_vm10 = vcmp.ge.f32.partialorder %v1026_v27, 0.0 }
 0x172   :  { %v4301_v32 = vpop.f32.mrf.mxu0  ;;  %4501 = vmatprep.mubr.msk.f32.mxu1 %vm1648_vm1, %v1585_v30 }
 0x173   :  { %vm1331_vm11 = vcmp.ge.f32.partialorder %v1021_v29, 0.0  ;;  %v1459_v34 = vmul.f32 0.01, %v1021_v29  ;;  %v1036_v35 = vadd.f32 %v5853_v11, %v4301_v32  ;;  %4502 = vmatmul.mubr.msk.f32.gmra.mxu1 %vm1648_vm1, %v1586_v33  ;;  %v1588_v41 = vsel %vm1332_vm10, %v1026_v27, %v1460_v31 }
 0x174   :  { %v1030_v36 = vpop.f32.mrf.mxu0 }
 0x175   :  { %v1031_v37 = vadd.f32 %v5853_v11, %v1030_v36  ;;  %v1587_v38 = vsel %vm1331_vm11, %v1021_v29, %v1459_v34  ;;  %v1462_v39 = vmul.f32 0.01, %v1036_v35  ;;  %vm1334_vm12 = vcmp.ge.f32.partialorder %v1036_v35, 0.0 }
 0x176   :  { %v4304_v40 = vpop.f32.mrf.mxu0  ;;  %4504 = vmatprep.mubr.msk.f32.mxu1 %vm1648_vm1, %v1587_v38 }
 0x177   :  { %vm1333_vm13 = vcmp.ge.f32.partialorder %v1031_v37, 0.0  ;;  %v1461_v42 = vmul.f32 0.01, %v1031_v37  ;;  %v1046_v43 = vadd.f32 %v5853_v11, %v4304_v40  ;;  %4505 = vmatmul.mubr.msk.f32.gmra.mxu1 %vm1648_vm1, %v1588_v41  ;;  %v1590_v50 = vsel %vm1334_vm12, %v1036_v35, %v1462_v39  ;;  %v5905_v40 = vld [vmem:[%s6675_s4] ss:$0 sm:$0xff] }
 0x178   :  { %v1040_v44 = vpop.f32.mrf.mxu0 }
 0x179   :  { %v1041_v45 = vadd.f32 %v5853_v11, %v1040_v44  ;;  %v1589_v46 = vsel %vm1333_vm13, %v1031_v37, %v1461_v42  ;;  %v1464_v48 = vmul.f32 0.01, %v1046_v43  ;;  %vm1336_vm14 = vcmp.ge.f32.partialorder %v1046_v43, 0.0 }
 0x17a   :  { %v4307_v49 = vpop.f32.mrf.mxu0  ;;  %4507 = vmatprep.mubr.msk.f32.mxu1 %vm1648_vm1, %v1589_v46 }
 0x17b   :  { %vm1335_vm15 = vcmp.ge.f32.partialorder %v1041_v45, 0.0  ;;  %v1463_v52 = vmul.f32 0.01, %v1041_v45  ;;  %v1056_v53 = vadd.f32 %v5853_v11, %v4307_v49  ;;  %4508 = vmatmul.mubr.msk.f32.gmra.mxu1 %vm1648_vm1, %v1590_v50  ;;  %v1592_v59 = vsel %vm1336_vm14, %v1046_v43, %v1464_v48 }
 0x17c   :  { %v1050_v54 = vpop.f32.mrf.mxu0 }
 0x17d   :  { %v1051_v55 = vadd.f32 %v5853_v11, %v1050_v54  ;;  %v1591_v56 = vsel %vm1335_vm15, %v1041_v45, %v1463_v52  ;;  %v1466_v57 = vmul.f32 0.01, %v1056_v53  ;;  %vm1338_vm2 = vcmp.ge.f32.partialorder %v1056_v53, 0.0 }
 0x17e   :  { %v4310_v58 = vpop.f32.mrf.mxu0  ;;  %4510 = vmatprep.mubr.msk.f32.mxu1 %vm1648_vm1, %v1591_v56 }
 0x17f   :  { %vm1337_vm3 = vcmp.ge.f32.partialorder %v1051_v55, 0.0  ;;  %v1465_v60 = vmul.f32 0.01, %v1051_v55  ;;  %v1066_v61 = vadd.f32 %v5853_v11, %v4310_v58  ;;  %4511 = vmatmul.mubr.msk.f32.gmra.mxu1 %vm1648_vm1, %v1592_v59  ;;  %v1594_v2 = vsel %vm1338_vm2, %v1056_v53, %v1466_v57 }
 0x180   :  { %v1060_v47 = vpop.f32.mrf.mxu0 }
 0x181   :  { %v1061_v62 = vadd.f32 %v5853_v11, %v1060_v47  ;;  %v1593_v63 = vsel %vm1337_vm3, %v1051_v55, %v1465_v60  ;;  %v1468_v0 = vmul.f32 0.01, %v1066_v61  ;;  %vm1340_vm0 = vcmp.ge.f32.partialorder %v1066_v61, 0.0 }
 0x182   :  { %v4313_v1 = vpop.f32.mrf.mxu0  ;;  %4513 = vmatprep.mubr.msk.f32.mxu1 %vm1648_vm1, %v1593_v63 }
 0x183   :  { %vm1339_vm4 = vcmp.ge.f32.partialorder %v1061_v62, 0.0  ;;  %v1467_v3 = vmul.f32 0.01, %v1061_v62  ;;  %v1076_v4 = vadd.f32 %v5853_v11, %v4313_v1  ;;  %4514 = vmatmul.mubr.msk.f32.gmra.mxu1 %vm1648_vm1, %v1594_v2  ;;  %v1596_v10 = vsel %vm1340_vm0, %v1066_v61, %v1468_v0 }
 0x184   :  { %v1070_v5 = vpop.f32.mrf.mxu0 }
 0x185   :  { %v1071_v6 = vadd.f32 %v5853_v11, %v1070_v5  ;;  %v1595_v7 = vsel %vm1339_vm4, %v1061_v62, %v1467_v3  ;;  %v1470_v8 = vmul.f32 0.01, %v1076_v4  ;;  %vm1342_vm5 = vcmp.ge.f32.partialorder %v1076_v4, 0.0 }
 0x186   :  { %v4316_v9 = vpop.f32.mrf.mxu0  ;;  %4516 = vmatprep.mubr.msk.f32.mxu1 %vm1648_vm1, %v1595_v7 }
 0x187   :  { %vm1341_vm6 = vcmp.ge.f32.partialorder %v1071_v6, 0.0  ;;  %v1469_v12 = vmul.f32 0.01, %v1071_v6  ;;  %v1086_v13 = vadd.f32 %v5853_v11, %v4316_v9  ;;  %4517 = vmatmul.mubr.msk.f32.gmra.mxu1 %vm1648_vm1, %v1596_v10  ;;  %v1598_v18 = vsel %vm1342_vm5, %v1076_v4, %v1470_v8 }
 0x188   :  { %v1080_v51 = vpop.f32.mrf.mxu0 }
 0x189   :  { %v1081_v14 = vadd.f32 %v5853_v11, %v1080_v51  ;;  %v1597_v15 = vsel %vm1341_vm6, %v1071_v6, %v1469_v12  ;;  %v1472_v16 = vmul.f32 0.01, %v1086_v13  ;;  %vm1344_vm7 = vcmp.ge.f32.partialorder %v1086_v13, 0.0 }
 0x18a   :  { %v4319_v17 = vpop.f32.mrf.mxu0  ;;  %4519 = vmatprep.mubr.msk.f32.mxu1 %vm1648_vm1, %v1597_v15 }
 0x18b   :  { %vm1343_vm8 = vcmp.ge.f32.partialorder %v1081_v14, 0.0  ;;  %v1471_v19 = vmul.f32 0.01, %v1081_v14  ;;  %v1096_v20 = vadd.f32 %v5853_v11, %v4319_v17  ;;  %4520 = vmatmul.mubr.msk.f32.gmra.mxu1 %vm1648_vm1, %v1598_v18  ;;  %v1600_v26 = vsel %vm1344_vm7, %v1086_v13, %v1472_v16 }
 0x18c   :  { %v1090_v21 = vpop.f32.mrf.mxu0 }
 0x18d   :  { %v1091_v22 = vadd.f32 %v5853_v11, %v1090_v21  ;;  %v1599_v23 = vsel %vm1343_vm8, %v1081_v14, %v1471_v19  ;;  %v1474_v24 = vmul.f32 0.01, %v1096_v20  ;;  %vm1346_vm9 = vcmp.ge.f32.partialorder %v1096_v20, 0.0 }
 0x18e   :  { %v4322_v25 = vpop.f32.mrf.mxu0  ;;  %4522 = vmatprep.mubr.msk.f32.mxu1 %vm1648_vm1, %v1599_v23 }
 0x18f   :  { %vm1345_vm10 = vcmp.ge.f32.partialorder %v1091_v22, 0.0  ;;  %v1473_v27 = vmul.f32 0.01, %v1091_v22  ;;  %v1106_v28 = vadd.f32 %v5853_v11, %v4322_v25  ;;  %4523 = vmatmul.mubr.msk.f32.gmra.mxu1 %vm1648_vm1, %v1600_v26  ;;  %v1602_v34 = vsel %vm1346_vm9, %v1096_v20, %v1474_v24 }
 0x190   :  { %v1100_v29 = vpop.f32.mrf.mxu0 }
 0x191   :  { %v1101_v30 = vadd.f32 %v5853_v11, %v1100_v29  ;;  %v1601_v31 = vsel %vm1345_vm10, %v1091_v22, %v1473_v27  ;;  %v1476_v32 = vmul.f32 0.01, %v1106_v28  ;;  %vm1348_vm11 = vcmp.ge.f32.partialorder %v1106_v28, 0.0 }
 0x192   :  { %v4325_v33 = vpop.f32.mrf.mxu0  ;;  %4525 = vmatprep.mubr.msk.f32.mxu1 %vm1648_vm1, %v1601_v31 }
 0x193   :  { %vm1347_vm12 = vcmp.ge.f32.partialorder %v1101_v30, 0.0  ;;  %v1475_v35 = vmul.f32 0.01, %v1101_v30  ;;  %v1116_v36 = vadd.f32 %v5853_v11, %v4325_v33  ;;  %4526 = vmatmul.mubr.msk.f32.gmra.mxu1 %vm1648_vm1, %v1602_v34  ;;  %v1604_v43 = vsel %vm1348_vm11, %v1106_v28, %v1476_v32 }
 0x194   :  { %v1110_v37 = vpop.f32.mrf.mxu0 }
 0x195   :  { %v1111_v38 = vadd.f32 %v5853_v11, %v1110_v37  ;;  %v1603_v39 = vsel %vm1347_vm12, %v1101_v30, %v1475_v35  ;;  %v1478_v41 = vmul.f32 0.01, %v1116_v36  ;;  %vm1350_vm13 = vcmp.ge.f32.partialorder %v1116_v36, 0.0 }
 0x196   :  { %v4328_v42 = vpop.f32.mrf.mxu0  ;;  %4528 = vmatprep.mubr.msk.f32.mxu1 %vm1648_vm1, %v1603_v39  ;;  %vm3506_vm12 = vcmask 130048  }
 0x197   :  { %vm1349_vm14 = vcmp.ge.f32.partialorder %v1111_v38, 0.0  ;;  %v1477_v44 = vmul.f32 0.01, %v1111_v38  ;;  %v1126_v45 = vadd.f32 %v5853_v11, %v4328_v42  ;;  %v4386_v46 = vpop.f32.mrf.mxu1  ;;  %4529 = vmatmul.mubr.msk.f32.gmra.mxu1 %vm1648_vm1, %v1604_v43  ;;  %v1606_v58 = vsel %vm1350_vm13, %v1116_v36, %v1478_v41 }
 0x198   :  { %v2115_v48 = vadd.f32 %v4386_v46, %v5905_v40  ;;  %v1120_v49 = vpop.f32.mrf.mxu0 }
 0x199   :  { %vm1352_vm15 = vcmp.ge.f32.partialorder %v1126_v45, 0.0  ;;  %v1480_v50 = vmul.f32 0.01, %v1126_v45  ;;  %v1121_v52 = vadd.f32 %v5853_v11, %v1120_v49  ;;  %v2109_v53 = vpop.f32.mrf.mxu1  ;;  %v1605_v54 = vsel %vm1349_vm14, %v1111_v38, %v1477_v44 }
 0x19a   :  { %v2741_v55 = vsub.f32 0.0, %v2115_v48  ;;  %v2110_v56 = vadd.f32 %v5905_v40, %v2109_v53  ;;  %v4331_v57 = vpop.f32.mrf.mxu0  ;;  %4531 = vmatprep.mubr.msk.f32.mxu1 %vm1648_vm1, %v1605_v54 }
 0x19b   :  { %vm1351_vm2 = vcmp.ge.f32.partialorder %v1121_v52, 0.0  ;;  %v1479_v59 = vmul.f32 0.01, %v1121_v52  ;;  %v1136_v60 = vadd.f32 %v5853_v11, %v4331_v57  ;;  %v4389_v61 = vpop.f32.mrf.mxu1  ;;  %4532 = vmatmul.mubr.msk.f32.gmra.mxu1 %vm1648_vm1, %v1606_v58  ;;  %v1608_v1 = vsel %vm1352_vm15, %v1126_v45, %v1480_v50 }
 0x19c   :  { %v2872_v47 = vmul.f32 1.442695, %v2741_v55  ;;  %v2740_v62 = vsub.f32 0.0, %v2110_v56  ;;  %v2125_v63 = vadd.f32 %v4389_v61, %v5905_v40  ;;  %v1130_v0 = vpop.f32.mrf.mxu0 }
 0x19d   :  { %vm1354_vm3 = vcmp.ge.f32.partialorder %v1136_v60, 0.0  ;;  %v1482_v2 = vmul.f32 0.01, %v1136_v60  ;;  %v1131_v3 = vadd.f32 %v5853_v11, %v1130_v0  ;;  %v2119_v4 = vpop.f32.mrf.mxu1  ;;  %v1607_v5 = vsel %vm1351_vm2, %v1121_v52, %v1479_v59 }
 0x19e   :  { %4589 = vpow2.f32 %v2872_v47  ;;  %v2870_v6 = vmul.f32 1.442695, %v2740_v62  ;;  %v2743_v7 = vsub.f32 0.0, %v2125_v63  ;;  %v2120_v8 = vadd.f32 %v5905_v40, %v2119_v4  ;;  %v4334_v9 = vpop.f32.mrf.mxu0  ;;  %4534 = vmatprep.mubr.msk.f32.mxu1 %vm1648_vm1, %v1607_v5 }
 0x19f   :  { %vm1353_vm0 = vcmp.ge.f32.partialorder %v1131_v3, 0.0  ;;  %v1481_v10 = vmul.f32 0.01, %v1131_v3  ;;  %v1146_v12 = vadd.f32 %v5853_v11, %v4334_v9  ;;  %v4392_v13 = vpop.f32.mrf.mxu1  ;;  %4535 = vmatmul.mubr.msk.f32.gmra.mxu1 %vm1648_vm1, %v1608_v1  ;;  %v1610_v51 = vsel %vm1354_vm3, %v1136_v60, %v1482_v2 }
 0x1a0   :  { %4591 = vpow2.f32 %v2870_v6  ;;  %v2876_v14 = vmul.f32 1.442695, %v2743_v7  ;;  %v2742_v15 = vsub.f32 0.0, %v2120_v8  ;;  %v2135_v16 = vadd.f32 %v4392_v13, %v5905_v40  ;;  %v1140_v17 = vpop.f32.mrf.mxu0 }
 0x1a1   :  { %vm1356_vm4 = vcmp.ge.f32.partialorder %v1146_v12, 0.0  ;;  %v1484_v18 = vmul.f32 0.01, %v1146_v12  ;;  %v1141_v19 = vadd.f32 %v5853_v11, %v1140_v17  ;;  %v2129_v20 = vpop.f32.mrf.mxu1  ;;  %v1609_v21 = vsel %vm1353_vm0, %v1131_v3, %v1481_v10 }
 0x1a2   :  { %4593 = vpow2.f32 %v2876_v14  ;;  %v2874_v22 = vmul.f32 1.442695, %v2742_v15  ;;  %v2745_v23 = vsub.f32 0.0, %v2135_v16  ;;  %v2130_v24 = vadd.f32 %v5905_v40, %v2129_v20  ;;  %v4337_v25 = vpop.f32.mrf.mxu0  ;;  %4537 = vmatprep.mubr.msk.f32.mxu1 %vm1648_vm1, %v1609_v21 }
 0x1a3   :  { %vm1355_vm5 = vcmp.ge.f32.partialorder %v1141_v19, 0.0  ;;  %v1483_v26 = vmul.f32 0.01, %v1141_v19  ;;  %v1156_v27 = vadd.f32 %v5853_v11, %v4337_v25  ;;  %v4395_v28 = vpop.f32.mrf.mxu1  ;;  %4538 = vmatmul.mubr.msk.f32.gmra.mxu1 %vm1648_vm1, %v1610_v51  ;;  %v1612_v29 = vsel %vm1356_vm4, %v1146_v12, %v1484_v18 }
 0x1a4   :  { %4595 = vpow2.f32 %v2874_v22  ;;  %v2880_v30 = vmul.f32 1.442695, %v2745_v23  ;;  %v2744_v31 = vsub.f32 0.0, %v2130_v24  ;;  %v2145_v32 = vadd.f32 %v4395_v28, %v5905_v40  ;;  %v1150_v33 = vpop.f32.mrf.mxu0 }
 0x1a5   :  { %vm1358_vm6 = vcmp.ge.f32.partialorder %v1156_v27, 0.0  ;;  %v1486_v34 = vmul.f32 0.01, %v1156_v27  ;;  %v1151_v35 = vadd.f32 %v5853_v11, %v1150_v33  ;;  %v2139_v36 = vpop.f32.mrf.mxu1  ;;  %v1611_v37 = vsel %vm1355_vm5, %v1141_v19, %v1483_v26 }
 0x1a6   :  { %4597 = vpow2.f32 %v2880_v30  ;;  %v2878_v38 = vmul.f32 1.442695, %v2744_v31  ;;  %v2747_v39 = vsub.f32 0.0, %v2145_v32  ;;  %v2140_v41 = vadd.f32 %v5905_v40, %v2139_v36  ;;  %v4340_v42 = vpop.f32.mrf.mxu0  ;;  %4540 = vmatprep.mubr.msk.f32.mxu1 %vm1648_vm1, %v1611_v37 }
 0x1a7   :  { %vm1357_vm7 = vcmp.ge.f32.partialorder %v1151_v35, 0.0  ;;  %v1485_v43 = vmul.f32 0.01, %v1151_v35  ;;  %v1166_v44 = vadd.f32 %v5853_v11, %v4340_v42  ;;  %v4398_v45 = vpop.f32.mrf.mxu1  ;;  %4541 = vmatmul.mubr.msk.f32.gmra.mxu1 %vm1648_vm1, %v1612_v29  ;;  %v1614_v46 = vsel %vm1358_vm6, %v1156_v27, %v1486_v34 }
 0x1a8   :  { %4599 = vpow2.f32 %v2878_v38  ;;  %v2884_v48 = vmul.f32 1.442695, %v2747_v39  ;;  %v2746_v49 = vsub.f32 0.0, %v2140_v41  ;;  %v2155_v50 = vadd.f32 %v4398_v45, %v5905_v40  ;;  %v1160_v52 = vpop.f32.mrf.mxu0 }
 0x1a9   :  { %vm1360_vm8 = vcmp.ge.f32.partialorder %v1166_v44, 0.0  ;;  %v1488_v53 = vmul.f32 0.01, %v1166_v44  ;;  %v1161_v54 = vadd.f32 %v5853_v11, %v1160_v52  ;;  %v2149_v55 = vpop.f32.mrf.mxu1  ;;  %v1613_v56 = vsel %vm1357_vm7, %v1151_v35, %v1485_v43 }
 0x1aa   :  { %4601 = vpow2.f32 %v2884_v48  ;;  %v2882_v57 = vmul.f32 1.442695, %v2746_v49  ;;  %v2749_v58 = vsub.f32 0.0, %v2155_v50  ;;  %v2150_v59 = vadd.f32 %v5905_v40, %v2149_v55  ;;  %v4343_v60 = vpop.f32.mrf.mxu0  ;;  %4543 = vmatprep.mubr.msk.f32.mxu1 %vm1648_vm1, %v1613_v56 }
 0x1ab   :  { %v4590_v61 = vpop.eup %4589  ;;  %vm1359_vm9 = vcmp.ge.f32.partialorder %v1161_v54, 0.0  ;;  %v1487_v47 = vmul.f32 0.01, %v1161_v54  ;;  %v5944_v62 = vadd.f32 %v5853_v11, %v4343_v60  ;;  %v4401_v63 = vpop.f32.mrf.mxu1  ;;  %4544 = vmatmul.mubr.msk.f32.gmra.mxu1 %vm1648_vm1, %v1614_v46  ;;  %v1616_v9 = vsel %vm1360_vm8, %v1166_v44, %v1488_v53 }
 0x1ac   :  { %v3125_v0 = vadd.f32 1.0, %v4590_v61  ;;  %4603 = vpow2.f32 %v2882_v57  ;;  %v2888_v1 = vmul.f32 1.442695, %v2749_v58  ;;  %v2748_v2 = vsub.f32 0.0, %v2150_v59  ;;  %v1170_v3 = vpop.f32.mrf.mxu0 }
 0x1ad   :  { %v4592_v4 = vpop.eup %4591  ;;  %v5948_v5 = vmul.f32 0.01, %v5944_v62  ;;  %v2165_v6 = vadd.f32 %v4401_v63, %v5905_v40  ;;  %v1171_v7 = vadd.f32 %v5853_v11, %v1170_v3  ;;  %v2159_v8 = vpop.f32.mrf.mxu1  ;;  %vm1362_vm10 = vcmp.ge.f32.partialorder %v5944_v62, 0.0 }
 0x1ae   :  { %4605 = vrcp.f32 %v3125_v0  ;;  %v3124_v10 = vadd.f32 1.0, %v4592_v4  ;;  %v2886_v12 = vmul.f32 1.442695, %v2748_v2  ;;  %v2160_v13 = vadd.f32 %v5905_v40, %v2159_v8  ;;  %v4346_v51 = vpop.f32.mrf.mxu0 }
 0x1af   :  { %v4594_v14 = vpop.eup %4593  ;;  %4607 = vpow2.f32 %v2888_v1  ;;  %v2751_v15 = vsub.f32 0.0, %v2165_v6  ;;  %vm1361_vm11 = vcmp.ge.f32.partialorder %v1171_v7, 0.0  ;;  %v1489_v16 = vmul.f32 0.01, %v1171_v7  ;;  %v4404_v17 = vpop.f32.mrf.mxu1 }
 0x1b0   :  { %4609 = vrcp.f32 %v3124_v10  ;;  %v3127_v18 = vadd.f32 1.0, %v4594_v14  ;;  %v2750_v19 = vsub.f32 0.0, %v2160_v13  ;;  %v1186_v20 = vadd.f32 %v5853_v11, %v4346_v51  ;;  %v1180_v21 = vpop.f32.mrf.mxu0 }
 0x1b1   :  { %v4596_v22 = vpop.eup %4595  ;;  %4611 = vpow2.f32 %v2886_v12  ;;  %v2892_v23 = vmul.f32 1.442695, %v2751_v15  ;;  %v1615_v24 = vsel %vm1359_vm9, %v1161_v54, %v1487_v47  ;;  %v2175_v25 = vadd.f32 %v4404_v17, %v5905_v40  ;;  %v2169_v26 = vpop.f32.mrf.mxu1 }
 0x1b2   :  { %4613 = vrcp.f32 %v3127_v18  ;;  %v3126_v27 = vadd.f32 1.0, %v4596_v22  ;;  %v2890_v28 = vmul.f32 1.442695, %v2750_v19  ;;  %vm1364_vm13 = vcmp.ge.f32.partialorder %v1186_v20, 0.0  ;;  %4546 = vmatprep.mubr.msk.f32.mxu1 %vm1648_vm1, %v1615_v24  ;;  %v4349_v29 = vpop.f32.mrf.mxu0 }
 0x1b3   :  { %v4598_v30 = vpop.eup %4597  ;;  %4615 = vpow2.f32 %v2892_v23  ;;  %v1492_v31 = vmul.f32 0.01, %v1186_v20  ;;  %v2753_v32 = vsub.f32 0.0, %v2175_v25  ;;  %4547 = vmatmul.mubr.msk.f32.gmra.mxu1 %vm1648_vm1, %v1616_v9  ;;  %v1181_v33 = vadd.f32 %v5853_v11, %v1180_v21  ;;  %v4407_v34 = vpop.f32.mrf.mxu1 }
 0x1b4   :  { %4617 = vrcp.f32 %v3126_v27  ;;  %v3129_v35 = vadd.f32 1.0, %v4598_v30  ;;  %v2170_v36 = vadd.f32 %v5905_v40, %v2169_v26  ;;  %v1196_v37 = vadd.f32 %v5853_v11, %v4349_v29  ;;  %v1190_v38 = vpop.f32.mrf.mxu0 }
 0x1b5   :  { %v4600_v39 = vpop.eup %4599  ;;  %4619 = vpow2.f32 %v2890_v28  ;;  %v5964_v41 = vsel %vm1364_vm13, %v1186_v20, %v1492_v31  ;;  %v2896_v42 = vmul.f32 1.442695, %v2753_v32  ;;  %vm1363_vm14 = vcmp.ge.f32.partialorder %v1181_v33, 0.0  ;;  %v2179_v43 = vpop.f32.mrf.mxu1 }
 0x1b6   :  { %4621 = vrcp.f32 %v3129_v35  ;;  %v3128_v44 = vadd.f32 1.0, %v4600_v39  ;;  %v1491_v45 = vmul.f32 0.01, %v1181_v33  ;;  %v2752_v46 = vsub.f32 0.0, %v2170_v36  ;;  %v4352_v48 = vpop.f32.mrf.mxu0 }
 0x1b7   :  { %v4602_v49 = vpop.eup %4601  ;;  %4623 = vpow2.f32 %v2896_v42  ;;  %vm1366_vm15 = vcmp.ge.f32.partialorder %v1196_v37, 0.0  ;;  %v1494_v50 = vmul.f32 0.01, %v1196_v37  ;;  %v1617_v52 = vsel %vm1361_vm11, %v1171_v7, %v1489_v16  ;;  %v4410_v53 = vpop.f32.mrf.mxu1 }
 0x1b8   :  { %4625 = vrcp.f32 %v3128_v44  ;;  %v3131_v54 = vadd.f32 1.0, %v4602_v49  ;;  %v2894_v55 = vmul.f32 1.442695, %v2752_v46  ;;  %4549 = vmatprep.mubr.msk.f32.mxu1 %vm1648_vm1, %v1617_v52  ;;  %v2185_v56 = vadd.f32 %v4407_v34, %v5905_v40  ;;  %v1200_v57 = vpop.f32.mrf.mxu0 }
 0x1b9   :  { %v4604_v58 = vpop.eup %4603  ;;  %v5969_v59 = vsel %vm1366_vm15, %v1196_v37, %v1494_v50  ;;  %v1618_v60 = vsel %vm1362_vm10, %v5944_v62, %v5948_v5  ;;  %v1191_v61 = vadd.f32 %v5853_v11, %v1190_v38  ;;  %v2180_v47 = vadd.f32 %v5905_v40, %v2179_v43  ;;  %v2189_v63 = vpop.f32.mrf.mxu1 }
 0x1ba   :  { %4627 = vrcp.f32 %v3131_v54  ;;  %v3130_v0 = vadd.f32 1.0, %v4604_v58  ;;  %v2755_v1 = vsub.f32 0.0, %v2185_v56  ;;  %4550 = vmatmul.mubr.msk.f32.gmra.mxu1 %vm1648_vm1, %v1618_v60  ;;  %v1206_v2 = vadd.f32 %v5853_v11, %v4352_v48  ;;  %v4355_v3 = vpop.f32.mrf.mxu0 }
 0x1bb   :  { %v4606_v4 = vpop.eup %4605  ;;  %4629 = vpow2.f32 %v2894_v55  ;;  %vm1365_vm2 = vcmp.ge.f32.partialorder %v1191_v61, 0.0  ;;  %v1493_v6 = vmul.f32 0.01, %v1191_v61  ;;  %v2754_v7 = vsub.f32 0.0, %v2180_v47  ;;  %v4413_v8 = vpop.f32.mrf.mxu1 }
 0x1bc   :  { %v4608_v62 = vpop.eup %4607  ;;  %3510 = vst.msk [vmem:[%s6676_s5 + $0x18] sm:$0xff] %vm3506_vm12, %v4606_v4  ;;  %4631 = vrcp.f32 %v3130_v0  ;;  %v2900_v5 = vmul.f32 1.442695, %v2755_v1  ;;  %vm1368_vm3 = vcmp.ge.f32.partialorder %v1206_v2, 0.0  ;;  %v1496_v9 = vmul.f32 0.01, %v1206_v2  ;;  %v1210_v10 = vpop.f32.mrf.mxu0 }
 0x1bd   :  { %v4610_v12 = vpop.eup %4609  ;;  %v3133_v13 = vadd.f32 1.0, %v4608_v62  ;;  %v2898_v51 = vmul.f32 1.442695, %v2754_v7  ;;  %v1619_v14 = vsel %vm1363_vm14, %v1181_v33, %v1491_v45  ;;  %v2195_v15 = vadd.f32 %v4410_v53, %v5905_v40  ;;  %v2199_v16 = vpop.f32.mrf.mxu1 }
 0x1be   :  { %v4612_v17 = vpop.eup %4611  ;;  %3509 = vst.msk [vmem:[%s6676_s5 + $0x10] sm:$0xff] %vm3506_vm12, %v4610_v12  ;;  %4633 = vpow2.f32 %v2900_v5  ;;  %v5989_v18 = vsel %vm1368_vm3, %v1206_v2, %v1496_v9  ;;  %4552 = vmatprep.mubr.msk.f32.mxu1 %vm1648_vm1, %v1619_v14  ;;  %v1201_v19 = vadd.f32 %v5853_v11, %v1200_v57  ;;  %v2190_v20 = vadd.f32 %v5905_v40, %v2189_v63  ;;  %v4358_v21 = vpop.f32.mrf.mxu0 }
 0x1bf   :  { %v4614_v22 = vpop.eup %4613  ;;  %4635 = vrcp.f32 %v3133_v13  ;;  %v3132_v23 = vadd.f32 1.0, %v4612_v17  ;;  %v2757_v24 = vsub.f32 0.0, %v2195_v15  ;;  %4553 = vmatmul.mubr.msk.f32.gmra.mxu1 %vm1648_vm1, %v5964_v41  ;;  %v1216_v25 = vadd.f32 %v5853_v11, %v4355_v3  ;;  %v4416_v26 = vpop.f32.mrf.mxu1 }
 0x1c0   :  { %v4616_v27 = vpop.eup %4615  ;;  %3512 = vst.msk [vmem:[%s6676_s5 + $0x28] sm:$0xff] %vm3506_vm12, %v4614_v22  ;;  %4637 = vpow2.f32 %v2898_v51  ;;  %vm1367_vm0 = vcmp.ge.f32.partialorder %v1201_v19, 0.0  ;;  %v1495_v28 = vmul.f32 0.01, %v1201_v19  ;;  %v2756_v29 = vsub.f32 0.0, %v2190_v20  ;;  %v1220_v30 = vpop.f32.mrf.mxu0 }
 0x1c1   :  { %v4618_v31 = vpop.eup %4617  ;;  %4639 = vrcp.f32 %v3132_v23  ;;  %v3135_v32 = vadd.f32 1.0, %v4616_v27  ;;  %v2904_v33 = vmul.f32 1.442695, %v2757_v24  ;;  %vm1370_vm4 = vcmp.ge.f32.partialorder %v1216_v25, 0.0  ;;  %v2209_v34 = vpop.f32.mrf.mxu1 }
 0x1c2   :  { %v4620_v35 = vpop.eup %4619  ;;  %3511 = vst.msk [vmem:[%s6676_s5 + $0x20] sm:$0xff] %vm3506_vm12, %v4618_v31  ;;  %v2902_v36 = vmul.f32 1.442695, %v2756_v29  ;;  %v1498_v37 = vmul.f32 0.01, %v1216_v25  ;;  %v1621_v38 = vsel %vm1365_vm2, %v1191_v61, %v1493_v6  ;;  %v2205_v39 = vadd.f32 %v4413_v8, %v5905_v40  ;;  %v4361_v41 = vpop.f32.mrf.mxu0 }
 0x1c3   :  { %v4622_v42 = vpop.eup %4621  ;;  %4641 = vrcp.f32 %v3135_v32  ;;  %v3134_v43 = vadd.f32 1.0, %v4620_v35  ;;  %4555 = vmatprep.mubr.msk.f32.mxu1 %vm1648_vm1, %v1621_v38  ;;  %v1211_v44 = vadd.f32 %v5853_v11, %v1210_v10  ;;  %v2200_v45 = vadd.f32 %v5905_v40, %v2199_v16  ;;  %v4419_v46 = vpop.f32.mrf.mxu1 }
 0x1c4   :  { %v4624_v48 = vpop.eup %4623  ;;  %3514 = vst.msk [vmem:[%s6676_s5 + $0x38] sm:$0xff] %vm3506_vm12, %v4622_v42  ;;  %4643 = vpow2.f32 %v2904_v33  ;;  %v6015_v49 = vsel %vm1370_vm4, %v1216_v25, %v1498_v37  ;;  %v2759_v50 = vsub.f32 0.0, %v2205_v39  ;;  %4556 = vmatmul.mubr.msk.f32.gmra.mxu1 %vm1648_vm1, %v5969_v59  ;;  %v1226_v52 = vadd.f32 %v5853_v11, %v4358_v21  ;;  %v1230_v53 = vpop.f32.mrf.mxu0 }
 0x1c5   :  { %v4626_v54 = vpop.eup %4625  ;;  %4645 = vrcp.f32 %v3134_v43  ;;  %v3137_v55 = vadd.f32 1.0, %v4624_v48  ;;  %vm1369_vm5 = vcmp.ge.f32.partialorder %v1211_v44, 0.0  ;;  %v1497_v56 = vmul.f32 0.01, %v1211_v44  ;;  %v2219_v57 = vpop.f32.mrf.mxu1 }
 0x1c6   :  { %3513 = vst.msk [vmem:[%s6676_s5 + $0x30] sm:$0xff] %vm3506_vm12, %v4626_v54  ;;  %4647 = vpow2.f32 %v2902_v36  ;;  %v2908_v58 = vmul.f32 1.442695, %v2759_v50  ;;  %v2758_v60 = vsub.f32 0.0, %v2200_v45  ;;  %vm1372_vm6 = vcmp.ge.f32.partialorder %v1226_v52, 0.0  ;;  %v4364_v61 = vpop.f32.mrf.mxu0 }
 0x1c7   :  { %v4628_v59 = vpop.eup %4627  ;;  %4649 = vrcp.f32 %v3137_v55  ;;  %v1500_v47 = vmul.f32 0.01, %v1226_v52  ;;  %v1623_v63 = vsel %vm1367_vm0, %v1201_v19, %v1495_v28  ;;  %v2215_v0 = vadd.f32 %v4416_v26, %v5905_v40  ;;  %v6026_v1 = vpop.f32.mrf.mxu1 }
 0x1c8   :  { %v4630_v2 = vpop.eup %4629  ;;  %3516 = vst.msk [vmem:[%s6676_s5 + $0x48] sm:$0xff] %vm3506_vm12, %v4628_v59  ;;  %4651 = vpow2.f32 %v2908_v58  ;;  %v2906_v3 = vmul.f32 1.442695, %v2758_v60  ;;  %4558 = vmatprep.mubr.msk.f32.mxu1 %vm1648_vm1, %v1623_v63  ;;  %v1221_v4 = vadd.f32 %v5853_v11, %v1220_v30  ;;  %v2210_v6 = vadd.f32 %v5905_v40, %v2209_v34  ;;  %v1240_v51 = vpop.f32.mrf.mxu0 }
 0x1c9   :  { %v4632_v7 = vpop.eup %4631  ;;  %v3136_v8 = vadd.f32 1.0, %v4630_v2  ;;  %v6036_v62 = vsel %vm1372_vm6, %v1226_v52, %v1500_v47  ;;  %v2761_v5 = vsub.f32 0.0, %v2215_v0  ;;  %4559 = vmatmul.mubr.msk.f32.gmra.mxu1 %vm1648_vm1, %v5989_v18  ;;  %v1236_v9 = vadd.f32 %v5853_v11, %v4361_v41  ;;  %v2229_v10 = vpop.f32.mrf.mxu1 }
 0x1ca   :  { %3515 = vst.msk [vmem:[%s6676_s5 + $0x40] sm:$0xff] %vm3506_vm12, %v4632_v7  ;;  %4653 = vpow2.f32 %v2906_v3  ;;  %vm1371_vm7 = vcmp.ge.f32.partialorder %v1221_v4, 0.0  ;;  %v1499_v12 = vmul.f32 0.01, %v1221_v4  ;;  %v2760_v13 = vsub.f32 0.0, %v2210_v6  ;;  %v4383_v32 = vpop.f32.mrf.mxu0 }
 0x1cb   :  { %v4634_v14 = vpop.eup %4633  ;;  %4655 = vrcp.f32 %v3136_v8  ;;  %v2912_v15 = vmul.f32 1.442695, %v2761_v5  ;;  %vm1374_vm8 = vcmp.ge.f32.partialorder %v1236_v9, 0.0  ;;  %v1502_v16 = vmul.f32 0.01, %v1236_v9  ;;  %v6045_v17 = vpop.f32.mrf.mxu1 }
 0x1cc   :  { %v4636_v18 = vpop.eup %4635  ;;  %v3139_v19 = vadd.f32 1.0, %v4634_v14  ;;  %v2910_v20 = vmul.f32 1.442695, %v2760_v13  ;;  %v1625_v21 = vsel %vm1369_vm5, %v1211_v44, %v1497_v56  ;;  %v2225_v22 = vadd.f32 %v4419_v46, %v5905_v40  ;;  %v2099_v52 = vpop.f32.mrf.mxu0 }
 0x1cd   :  { %v4638_v23 = vpop.eup %4637  ;;  %3518 = vst.msk [vmem:[%s6676_s5 + $0x58] sm:$0xff] %vm3506_vm12, %v4636_v18  ;;  %4657 = vpow2.f32 %v2912_v15  ;;  %v6053_v24 = vsel %vm1374_vm8, %v1236_v9, %v1502_v16  ;;  %4561 = vmatprep.mubr.msk.f32.mxu1 %vm1648_vm1, %v1625_v21  ;;  %v1231_v25 = vadd.f32 %v5853_v11, %v1230_v53  ;;  %v2220_v26 = vadd.f32 %v5905_v40, %v2219_v57  ;;  %v6058_v27 = vpop.f32.mrf.mxu1 }
 0x1ce   :  { %v4640_v28 = vpop.eup %4639  ;;  %4659 = vrcp.f32 %v3139_v19  ;;  %v3138_v29 = vadd.f32 1.0, %v4638_v23  ;;  %v2763_v30 = vsub.f32 0.0, %v2225_v22  ;;  %4562 = vmatmul.mubr.msk.f32.gmra.mxu1 %vm1648_vm1, %v6015_v49  ;;  %v1246_v31 = vadd.f32 %v5853_v11, %v4364_v61 }
 0x1cf   :  { %3517 = vst.msk [vmem:[%s6676_s5 + $0x50] sm:$0xff] %vm3506_vm12, %v4640_v28  ;;  %4661 = vpow2.f32 %v2910_v20  ;;  %vm1373_vm9 = vcmp.ge.f32.partialorder %v1231_v25, 0.0  ;;  %v1501_v33 = vmul.f32 0.01, %v1231_v25  ;;  %v2762_v34 = vsub.f32 0.0, %v2220_v26  ;;  %v6067_v35 = vpop.f32.mrf.mxu1 }
 0x1d0   :  { %v4642_v36 = vpop.eup %4641  ;;  %4663 = vrcp.f32 %v3138_v29  ;;  %v2916_v37 = vmul.f32 1.442695, %v2763_v30  ;;  %vm1376_vm10 = vcmp.ge.f32.partialorder %v1246_v31, 0.0  ;;  %v1504_v38 = vmul.f32 0.01, %v1246_v31 }
 0x1d1   :  { %v4644_v39 = vpop.eup %4643  ;;  %3520 = vst.msk [vmem:[%s6676_s5 + $0x68] sm:$0xff] %vm3506_vm12, %v4642_v36  ;;  %v2914_v41 = vmul.f32 1.442695, %v2762_v34  ;;  %v1627_v42 = vsel %vm1371_vm7, %v1221_v4, %v1499_v12  ;;  %v2235_v43 = vadd.f32 %v6026_v1, %v5905_v40  ;;  %v1241_v44 = vadd.f32 %v5853_v11, %v1240_v51  ;;  %v2249_v45 = vpop.f32.mrf.mxu1 }
 0x1d2   :  { %v4646_v46 = vpop.eup %4645  ;;  %v3141_v48 = vadd.f32 1.0, %v4644_v39  ;;  %4665 = vpow2.f32 %v2916_v37  ;;  %v1632_v49 = vsel %vm1376_vm10, %v1246_v31, %v1504_v38  ;;  %4564 = vmatprep.mubr.msk.f32.mxu1 %vm1648_vm1, %v1627_v42  ;;  %v2230_v50 = vadd.f32 %v5905_v40, %v2229_v10 }
 0x1d3   :  { %v4648_v53 = vpop.eup %4647  ;;  %3519 = vst.msk [vmem:[%s6676_s5 + $0x60] sm:$0xff] %vm3506_vm12, %v4646_v46  ;;  %4667 = vpow2.f32 %v2914_v41  ;;  %v2765_v54 = vsub.f32 0.0, %v2235_v43  ;;  %4565 = vmatmul.mubr.msk.f32.gmra.mxu1 %vm1648_vm1, %v6036_v62  ;;  %vm1375_vm11 = vcmp.ge.f32.partialorder %v1241_v44, 0.0  ;;  %v1503_v11 = vmul.f32 0.01, %v1241_v44  ;;  %v4431_v55 = vpop.f32.mrf.mxu1 }
 0x1d4   :  { %v4650_v56 = vpop.eup %4649  ;;  %4669 = vrcp.f32 %v3141_v48  ;;  %v3140_v57 = vadd.f32 1.0, %v4648_v53  ;;  %v2764_v58 = vsub.f32 0.0, %v2230_v50  ;;  %v2105_v60 = vadd.f32 %v4383_v32, %v5905_v40 }
 0x1d5   :  { %v4652_v61 = vpop.eup %4651  ;;  %3522 = vst.msk [vmem:[%s6676_s5 + $0x78] sm:$0xff] %vm3506_vm12, %v4650_v56  ;;  %v2920_v59 = vmul.f32 1.442695, %v2765_v54  ;;  %v1629_v47 = vsel %vm1373_vm9, %v1231_v25, %v1501_v33  ;;  %v2245_v63 = vadd.f32 %v6045_v17, %v5905_v40  ;;  %v2100_v0 = vadd.f32 %v5905_v40, %v2099_v52  ;;  %v2259_v1 = vpop.f32.mrf.mxu1 }
 0x1d6   :  { %4671 = vrcp.f32 %v3140_v57  ;;  %v3143_v2 = vadd.f32 1.0, %v4652_v61  ;;  %v2918_v3 = vmul.f32 1.442695, %v2764_v58  ;;  %v2739_v4 = vsub.f32 0.0, %v2105_v60  ;;  %4567 = vmatprep.mubr.msk.f32.mxu1 %vm1648_vm1, %v1629_v47 }
 0x1d7   :  { %v4654_v6 = vpop.eup %4653  ;;  %4673 = vpow2.f32 %v2920_v59  ;;  %v2767_v7 = vsub.f32 0.0, %v2245_v63  ;;  %4568 = vmatmul.mubr.msk.f32.gmra.mxu1 %vm1648_vm1, %v6053_v24  ;;  %v2738_v8 = vsub.f32 0.0, %v2100_v0  ;;  %v2240_v62 = vadd.f32 %v5905_v40, %v6058_v27  ;;  %v4434_v5 = vpop.f32.mrf.mxu1 }
 0x1d8   :  { %v4656_v9 = vpop.eup %4655  ;;  %4675 = vrcp.f32 %v3143_v2  ;;  %v3142_v10 = vadd.f32 1.0, %v4654_v6  ;;  %v2868_v12 = vmul.f32 1.442695, %v2739_v4  ;;  %v1631_v13 = vsel %vm1375_vm11, %v1241_v44, %v1503_v11 }
 0x1d9   :  { %3521 = vst.msk [vmem:[%s6676_s5 + $0x70] sm:$0xff] %vm3506_vm12, %v4656_v9  ;;  %4677 = vpow2.f32 %v2918_v3  ;;  %v2924_v51 = vmul.f32 1.442695, %v2767_v7  ;;  %v2866_v14 = vmul.f32 1.442695, %v2738_v8  ;;  %v2766_v15 = vsub.f32 0.0, %v2240_v62  ;;  %4570 = vmatprep.mubr.msk.f32.mxu1 %vm1648_vm1, %v1631_v13  ;;  %v2269_v16 = vpop.f32.mrf.mxu1 }
 0x1da   :  { %v4658_v17 = vpop.eup %4657  ;;  %4679 = vrcp.f32 %v3142_v10  ;;  %v2255_v18 = vadd.f32 %v6067_v35, %v5905_v40  ;;  %v2250_v19 = vadd.f32 %v5905_v40, %v2249_v45  ;;  %v2265_v20 = vadd.f32 %v4431_v55, %v5905_v40 }
 0x1db   :  { %v4660_v21 = vpop.eup %4659  ;;  %v3145_v22 = vadd.f32 1.0, %v4658_v17  ;;  %4681 = vpow2.f32 %v2868_v12  ;;  %4571 = vmatmul.mubr.msk.f32.gmra.mxu1 %vm1648_vm1, %v1632_v49  ;;  %v2260_v23 = vadd.f32 %v5905_v40, %v2259_v1  ;;  %v4437_v24 = vpop.f32.mrf.mxu1  ;;  %v2922_v26 = vmul.f32 1.442695, %v2766_v15 }
 0x1dc   :  { %v4662_v25 = vpop.eup %4661  ;;  %3524 = vst.msk [vmem:[%s6676_s5 + $0x88] sm:$0xff] %vm3506_vm12, %v4660_v21  ;;  %4683 = vpow2.f32 %v2924_v51  ;;  %v2769_v27 = vsub.f32 0.0, %v2255_v18  ;;  %v2768_v28 = vsub.f32 0.0, %v2250_v19  ;;  %v2771_v31 = vsub.f32 0.0, %v2265_v20 }
 0x1dd   :  { %v4664_v29 = vpop.eup %4663  ;;  %4685 = vrcp.f32 %v3145_v22  ;;  %v3144_v30 = vadd.f32 1.0, %v4662_v25  ;;  %v2275_v32 = vadd.f32 %v4434_v5, %v5905_v40  ;;  %v2279_v33 = vpop.f32.mrf.mxu1  ;;  %v2770_v35 = vsub.f32 0.0, %v2260_v23 }
 0x1de   :  { %3523 = vst.msk [vmem:[%s6676_s5 + $0x80] sm:$0xff] %vm3506_vm12, %v4664_v29  ;;  %4687 = vpow2.f32 %v2866_v14  ;;  %v2928_v34 = vmul.f32 1.442695, %v2769_v27  ;;  %v2270_v37 = vadd.f32 %v5905_v40, %v2269_v16  ;;  %v2926_v42 = vmul.f32 1.442695, %v2768_v28 }
 0x1df   :  { %v4666_v36 = vpop.eup %4665  ;;  %4689 = vrcp.f32 %v3144_v30  ;;  %v4440_v38 = vpop.f32.mrf.mxu1  ;;  %v2773_v43 = vsub.f32 0.0, %v2275_v32  ;;  %v2932_v46 = vmul.f32 1.442695, %v2771_v31  ;;  %v2285_v48 = vadd.f32 %v4437_v24, %v5905_v40  ;;  %v6154_v29 = vld [vmem:[%s6675_s4] ss:$0 sm:$0xff] }
 0x1e0   :  { %v4668_v39 = vpop.eup %4667  ;;  %v3147_v41 = vadd.f32 1.0, %v4666_v36  ;;  %4691 = vpow2.f32 %v2922_v26  ;;  %v2930_v50 = vmul.f32 1.442695, %v2770_v35  ;;  %v2772_v52 = vsub.f32 0.0, %v2270_v37 }
 0x1e1   :  { %v4670_v44 = vpop.eup %4669  ;;  %v3146_v45 = vadd.f32 1.0, %v4668_v39  ;;  %4693 = vpow2.f32 %v2928_v34  ;;  %v2289_v49 = vpop.f32.mrf.mxu1  ;;  %v2280_v54 = vadd.f32 %v5905_v40, %v2279_v33  ;;  %v2936_v56 = vmul.f32 1.442695, %v2773_v43 }
 0x1e2   :  { %3526 = vst.msk [vmem:[%s6676_s5 + $0x98] sm:$0xff] %vm3506_vm12, %v4670_v44  ;;  %4695 = vrcp.f32 %v3147_v41  ;;  %v2775_v60 = vsub.f32 0.0, %v2285_v48  ;;  %v2295_v61 = vadd.f32 %v4440_v38, %v5905_v40  ;;  %v2934_v63 = vmul.f32 1.442695, %v2772_v52 }
 0x1e3   :  { %v4672_v53 = vpop.eup %4671  ;;  %4697 = vrcp.f32 %v3146_v45  ;;  %v4443_v11 = vpop.f32.mrf.mxu1  ;;  %v2290_v0 = vadd.f32 %v5905_v40, %v2289_v49  ;;  %v2774_v3 = vsub.f32 0.0, %v2280_v54 }
 0x1e4   :  { %v4674_v55 = vpop.eup %4673  ;;  %3525 = vst.msk [vmem:[%s6676_s5 + $0x90] sm:$0xff] %vm3506_vm12, %v4672_v53  ;;  %4699 = vpow2.f32 %v2926_v42  ;;  %v2940_v62 = vmul.f32 1.442695, %v2775_v60  ;;  %v2777_v5 = vsub.f32 0.0, %v2295_v61  ;;  %v2305_v51 = vadd.f32 %v4443_v11, %v5905_v40 }
 0x1e5   :  { %v4676_v57 = vpop.eup %4675  ;;  %v3149_v58 = vadd.f32 1.0, %v4674_v55  ;;  %4701 = vpow2.f32 %v2932_v46  ;;  %v2299_v59 = vpop.f32.mrf.mxu1  ;;  %v2776_v13 = vsub.f32 0.0, %v2290_v0  ;;  %v2938_v15 = vmul.f32 1.442695, %v2774_v3 }
 0x1e6   :  { %v4678_v47 = vpop.eup %4677  ;;  %3528 = vst.msk [vmem:[%s6676_s5 + $0xa8] sm:$0xff] %vm3506_vm12, %v4676_v57  ;;  %4703 = vpow2.f32 %v2930_v50  ;;  %v2944_v20 = vmul.f32 1.442695, %v2777_v5  ;;  %v2300_v21 = vadd.f32 %v5905_v40, %v2299_v59  ;;  %v2779_v26 = vsub.f32 0.0, %v2305_v51 }
 0x1e7   :  { %v4680_v1 = vpop.eup %4679  ;;  %4705 = vrcp.f32 %v3149_v58  ;;  %v3148_v2 = vadd.f32 1.0, %v4678_v47  ;;  %v4446_v4 = vpop.f32.mrf.mxu1  ;;  %v2942_v25 = vmul.f32 1.442695, %v2776_v13 }
 0x1e8   :  { %v4682_v6 = vpop.eup %4681  ;;  %3527 = vst.msk [vmem:[%s6676_s5 + $0xa0] sm:$0xff] %vm3506_vm12, %v4680_v1  ;;  %4707 = vpow2.f32 %v2936_v56  ;;  %v2315_v30 = vadd.f32 %v6154_v29, %v4446_v4  ;;  %v2778_v34 = vsub.f32 0.0, %v2300_v21  ;;  %v2948_v38 = vmul.f32 1.442695, %v2779_v26 }
 0x1e9   :  { %v4684_v7 = vpop.eup %4683  ;;  %4709 = vrcp.f32 %v3148_v2  ;;  %v3123_v8 = vadd.f32 1.0, %v4682_v6  ;;  %v2309_v9 = vpop.f32.mrf.mxu1 }
 0x1ea   :  { %v4686_v10 = vpop.eup %4685  ;;  %v3151_v12 = vadd.f32 1.0, %v4684_v7  ;;  %4711 = vpow2.f32 %v2934_v63  ;;  %v2310_v31 = vadd.f32 %v6154_v29, %v2309_v9  ;;  %v2781_v43 = vsub.f32 0.0, %v2315_v30 }
 0x1eb   :  { %v4688_v14 = vpop.eup %4687  ;;  %3530 = vst.msk [vmem:[%s6676_s5 + $0xb8] sm:$0xff] %vm3506_vm12, %v4686_v10  ;;  %4713 = vrcp.f32 %v3123_v8  ;;  %v4449_v16 = vpop.f32.mrf.mxu1  ;;  %v2946_v52 = vmul.f32 1.442695, %v2778_v34 }
 0x1ec   :  { %v4690_v17 = vpop.eup %4689  ;;  %4715 = vrcp.f32 %v3151_v12  ;;  %v3122_v18 = vadd.f32 1.0, %v4688_v14  ;;  %v2325_v39 = vadd.f32 %v6154_v29, %v4449_v16  ;;  %v2780_v44 = vsub.f32 0.0, %v2310_v31 }
 0x1ed   :  { %v4692_v19 = vpop.eup %4691  ;;  %3529 = vst.msk [vmem:[%s6676_s5 + $0xb0] sm:$0xff] %vm3506_vm12, %v4690_v17  ;;  %4717 = vpow2.f32 %v2940_v62  ;;  %v2319_v22 = vpop.f32.mrf.mxu1  ;;  %v2952_v58 = vmul.f32 1.442695, %v2781_v43 }
 0x1ee   :  { %v4694_v23 = vpop.eup %4693  ;;  %4719 = vrcp.f32 %v3122_v18  ;;  %v3150_v24 = vadd.f32 1.0, %v4692_v19  ;;  %v2320_v49 = vadd.f32 %v6154_v29, %v2319_v22  ;;  %v2783_v56 = vsub.f32 0.0, %v2325_v39 }
 0x1ef   :  { %v4696_v27 = vpop.eup %4695  ;;  %v3153_v28 = vadd.f32 1.0, %v4694_v23  ;;  %4721 = vpow2.f32 %v2938_v15  ;;  %v4452_v32 = vpop.f32.mrf.mxu1  ;;  %v2950_v60 = vmul.f32 1.442695, %v2780_v44 }
 0x1f0   :  { %v4698_v40 = vpop.eup %4697  ;;  %3532 = vst.msk [vmem:[%s6676_s5 + $0xc8] sm:$0xff] %vm3506_vm12, %v4696_v27  ;;  %4723 = vrcp.f32 %v3150_v24  ;;  %v2335_v53 = vadd.f32 %v6154_v29, %v4452_v32  ;;  %v2782_v63 = vsub.f32 0.0, %v2320_v49  ;;  %v2956_v7 = vmul.f32 1.442695, %v2783_v56 }
 0x1f1   :  { %v4700_v33 = vpop.eup %4699  ;;  %3531 = vst.msk [vmem:[%s6676_s5 + $0xc0] sm:$0xff] %vm3506_vm12, %v4698_v40  ;;  %4725 = vrcp.f32 %v3153_v28  ;;  %v2329_v35 = vpop.f32.mrf.mxu1 }
 0x1f2   :  { %v4702_v36 = vpop.eup %4701  ;;  %v3152_v37 = vadd.f32 1.0, %v4700_v33  ;;  %4727 = vpow2.f32 %v2944_v20  ;;  %v2330_v0 = vadd.f32 %v6154_v29, %v2329_v35  ;;  %v2785_v2 = vsub.f32 0.0, %v2335_v53 }
 0x1f3   :  { %v4704_v41 = vpop.eup %4703  ;;  %v3155_v42 = vadd.f32 1.0, %v4702_v36  ;;  %4729 = vpow2.f32 %v2942_v25  ;;  %v4455_v45 = vpop.f32.mrf.mxu1  ;;  %v2954_v12 = vmul.f32 1.442695, %v2782_v63 }
 0x1f4   :  { %v4706_v46 = vpop.eup %4705  ;;  %4731 = vrcp.f32 %v3152_v37  ;;  %v3154_v48 = vadd.f32 1.0, %v4704_v41  ;;  %v2345_v3 = vadd.f32 %v6154_v29, %v4455_v45  ;;  %v2784_v13 = vsub.f32 0.0, %v2330_v0 }
 0x1f5   :  { %v4708_v50 = vpop.eup %4707  ;;  %3534 = vst.msk [vmem:[%s6676_s5 + $0xd8] sm:$0xff] %vm3506_vm12, %v4706_v46  ;;  %4733 = vrcp.f32 %v3155_v42  ;;  %v2339_v54 = vpop.f32.mrf.mxu1  ;;  %v2960_v16 = vmul.f32 1.442695, %v2785_v2 }
 0x1f6   :  { %v4710_v11 = vpop.eup %4709  ;;  %4735 = vrcp.f32 %v3154_v48  ;;  %v3157_v55 = vadd.f32 1.0, %v4708_v50  ;;  %v2340_v8 = vadd.f32 %v6154_v29, %v2339_v54  ;;  %v2787_v17 = vsub.f32 0.0, %v2345_v3 }
 0x1f7   :  { %v4712_v57 = vpop.eup %4711  ;;  %3533 = vst.msk [vmem:[%s6676_s5 + $0xd0] sm:$0xff] %vm3506_vm12, %v4710_v11  ;;  %4737 = vpow2.f32 %v2948_v38  ;;  %v4458_v61 = vpop.f32.mrf.mxu1  ;;  %v2958_v26 = vmul.f32 1.442695, %v2784_v13 }
 0x1f8   :  { %v4714_v59 = vpop.eup %4713  ;;  %4739 = vrcp.f32 %v3157_v55  ;;  %v3156_v47 = vadd.f32 1.0, %v4712_v57  ;;  %v2355_v51 = vadd.f32 %v6154_v29, %v4458_v61  ;;  %v2786_v20 = vsub.f32 0.0, %v2340_v8 }
 0x1f9   :  { %v4716_v1 = vpop.eup %4715  ;;  %3508 = vst.msk [vmem:[%s6676_s5 + $0x8] sm:$0xff] %vm3506_vm12, %v4714_v59  ;;  %4741 = vpow2.f32 %v2946_v52  ;;  %v2349_v4 = vpop.f32.mrf.mxu1  ;;  %v2964_v31 = vmul.f32 1.442695, %v2787_v17 }
 0x1fa   :  { %v4718_v6 = vpop.eup %4717  ;;  %3536 = vst.msk [vmem:[%s6676_s5 + $0xe8] sm:$0xff] %vm3506_vm12, %v4716_v1  ;;  %4743 = vrcp.f32 %v3156_v47  ;;  %v2350_v21 = vadd.f32 %v6154_v29, %v2349_v4  ;;  %v2789_v27 = vsub.f32 0.0, %v2355_v51  ;;  %v2962_v34 = vmul.f32 1.442695, %v2786_v20 }
 0x1fb   :  { %v4720_v62 = vpop.eup %4719  ;;  %v3159_v5 = vadd.f32 1.0, %v4718_v6  ;;  %4745 = vpow2.f32 %v2952_v58  ;;  %v4461_v9 = vpop.f32.mrf.mxu1 }
 0x1fc   :  { %v4722_v10 = vpop.eup %4721  ;;  %3507 = vst.msk [vmem:[%s6676_s5] sm:$0xff] %vm3506_vm12, %v4720_v62  ;;  %4747 = vpow2.f32 %v2950_v60  ;;  %v2365_v32 = vadd.f32 %v6154_v29, %v4461_v9  ;;  %v2788_v35 = vsub.f32 0.0, %v2350_v21  ;;  %v2968_v41 = vmul.f32 1.442695, %v2789_v27 }
 0x1fd   :  { %v4724_v14 = vpop.eup %4723  ;;  %4749 = vrcp.f32 %v3159_v5  ;;  %v3158_v15 = vadd.f32 1.0, %v4722_v10  ;;  %v2359_v18 = vpop.f32.mrf.mxu1 }
 0x1fe   :  { %v4726_v19 = vpop.eup %4725  ;;  %3535 = vst.msk [vmem:[%s6676_s5 + $0xe0] sm:$0xff] %vm3506_vm12, %v4724_v14  ;;  %4751 = vpow2.f32 %v2956_v7  ;;  %v2360_v37 = vadd.f32 %v6154_v29, %v2359_v18  ;;  %v2791_v44 = vsub.f32 0.0, %v2365_v32  ;;  %v2966_v49 = vmul.f32 1.442695, %v2788_v35 }
 0x1ff   :  { %v4728_v22 = vpop.eup %4727  ;;  %3538 = vst.msk [vmem:[%s6676_s5 + $0xf8] sm:$0xff] %vm3506_vm12, %v4726_v19  ;;  %4753 = vrcp.f32 %v3158_v15  ;;  %v4464_v23 = vpop.f32.mrf.mxu1 }
 0x200   :  { %v4730_v24 = vpop.eup %4729  ;;  %v3161_v25 = vadd.f32 1.0, %v4728_v22  ;;  %4755 = vpow2.f32 %v2954_v12  ;;  %v2375_v45 = vadd.f32 %v6154_v29, %v4464_v23  ;;  %v2790_v54 = vsub.f32 0.0, %v2360_v37 }
 0x201   :  { %v4732_v28 = vpop.eup %4731  ;;  %v3160_v30 = vadd.f32 1.0, %v4730_v24  ;;  %4757 = vpow2.f32 %v2960_v16  ;;  %v2369_v40 = vpop.f32.mrf.mxu1  ;;  %v2972_v58 = vmul.f32 1.442695, %v2791_v44 }
 0x202   :  { %v4734_v33 = vpop.eup %4733  ;;  %3537 = vst.msk [vmem:[%s6676_s5 + $0xf0] sm:$0xff] %vm3506_vm12, %v4732_v28  ;;  %4759 = vrcp.f32 %v3161_v25  ;;  %v2370_v50 = vadd.f32 %v6154_v29, %v2369_v40  ;;  %v2793_v60 = vsub.f32 0.0, %v2375_v45  ;;  %v2970_v2 = vmul.f32 1.442695, %v2790_v54 }
 0x203   :  { %v4736_v36 = vpop.eup %4735  ;;  %3540 = vst.msk [vmem:[%s6676_s5 + $0x108] sm:$0xff] %vm3506_vm12, %v4734_v33  ;;  %4761 = vrcp.f32 %v3160_v30  ;;  %v4467_v38 = vpop.f32.mrf.mxu1 }
 0x204   :  { %v4738_v39 = vpop.eup %4737  ;;  %3539 = vst.msk [vmem:[%s6676_s5 + $0x100] sm:$0xff] %vm3506_vm12, %v4736_v36  ;;  %4763 = vpow2.f32 %v2958_v26  ;;  %v2792_v63 = vsub.f32 0.0, %v2370_v50  ;;  %v2385_v0 = vadd.f32 %v6154_v29, %v4467_v38  ;;  %v2976_v8 = vmul.f32 1.442695, %v2793_v60 }
 0x205   :  { %v4740_v42 = vpop.eup %4739  ;;  %v3163_v43 = vadd.f32 1.0, %v4738_v39  ;;  %4765 = vpow2.f32 %v2964_v31  ;;  %v2379_v46 = vpop.f32.mrf.mxu1 }
 0x206   :  { %v4742_v48 = vpop.eup %4741  ;;  %3542 = vst.msk [vmem:[%s6676_s5 + $0x118] sm:$0xff] %vm3506_vm12, %v4740_v42  ;;  %4767 = vpow2.f32 %v2962_v34  ;;  %v2380_v62 = vadd.f32 %v6154_v29, %v2379_v46  ;;  %v2974_v12 = vmul.f32 1.442695, %v2792_v63  ;;  %v2795_v13 = vsub.f32 0.0, %v2385_v0 }
 0x207   :  { %v4744_v52 = vpop.eup %4743  ;;  %4769 = vrcp.f32 %v3163_v43  ;;  %v3162_v53 = vadd.f32 1.0, %v4742_v48  ;;  %v4470_v11 = vpop.f32.mrf.mxu1 }
 0x208   :  { %v4746_v55 = vpop.eup %4745  ;;  %3541 = vst.msk [vmem:[%s6676_s5 + $0x110] sm:$0xff] %vm3506_vm12, %v4744_v52  ;;  %4771 = vpow2.f32 %v2968_v41  ;;  %v2395_v15 = vadd.f32 %v6154_v29, %v4470_v11  ;;  %v2794_v20 = vsub.f32 0.0, %v2380_v62  ;;  %v2980_v24 = vmul.f32 1.442695, %v2795_v13 }
 0x209   :  { %v4748_v56 = vpop.eup %4747  ;;  %4773 = vrcp.f32 %v3162_v53  ;;  %v3165_v57 = vadd.f32 1.0, %v4746_v55  ;;  %v2389_v61 = vpop.f32.mrf.mxu1 }
 0x20a   :  { %v4750_v59 = vpop.eup %4749  ;;  %v3164_v47 = vadd.f32 1.0, %v4748_v56  ;;  %4775 = vpow2.f32 %v2966_v49  ;;  %v2390_v16 = vadd.f32 %v6154_v29, %v2389_v61  ;;  %v2797_v28 = vsub.f32 0.0, %v2395_v15 }
 0x20b   :  { %v4752_v1 = vpop.eup %4751  ;;  %3544 = vst.msk [vmem:[%s6676_s5 + $0x128] sm:$0xff] %vm3506_vm12, %v4750_v59  ;;  %4777 = vrcp.f32 %v3165_v57  ;;  %v4473_v3 = vpop.f32.mrf.mxu1  ;;  %v2978_v35 = vmul.f32 1.442695, %v2794_v20 }
 0x20c   :  { %v4754_v4 = vpop.eup %4753  ;;  %4779 = vrcp.f32 %v3164_v47  ;;  %v3167_v6 = vadd.f32 1.0, %v4752_v1  ;;  %v2405_v25 = vadd.f32 %v6154_v29, %v4473_v3  ;;  %v2796_v30 = vsub.f32 0.0, %v2390_v16 }
 0x20d   :  { %v4756_v7 = vpop.eup %4755  ;;  %3543 = vst.msk [vmem:[%s6676_s5 + $0x120] sm:$0xff] %vm3506_vm12, %v4754_v4  ;;  %4781 = vpow2.f32 %v2972_v58  ;;  %v2399_v5 = vpop.f32.mrf.mxu1  ;;  %v2984_v43 = vmul.f32 1.442695, %v2797_v28 }
 0x20e   :  { %v4758_v9 = vpop.eup %4757  ;;  %4783 = vrcp.f32 %v3167_v6  ;;  %v3166_v10 = vadd.f32 1.0, %v4756_v7  ;;  %v2400_v33 = vadd.f32 %v6154_v29, %v2399_v5  ;;  %v2799_v41 = vsub.f32 0.0, %v2405_v25 }
 0x20f   :  { %v4760_v51 = vpop.eup %4759  ;;  %v3169_v14 = vadd.f32 1.0, %v4758_v9  ;;  %4785 = vpow2.f32 %v2970_v2  ;;  %v4476_v17 = vpop.f32.mrf.mxu1  ;;  %v2982_v44 = vmul.f32 1.442695, %v2796_v30 }
 0x210   :  { %v4762_v18 = vpop.eup %4761  ;;  %3546 = vst.msk [vmem:[%s6676_s5 + $0x138] sm:$0xff] %vm3506_vm12, %v4760_v51  ;;  %4787 = vrcp.f32 %v3166_v10  ;;  %v2415_v36 = vadd.f32 %v6154_v29, %v4476_v17  ;;  %v2798_v49 = vsub.f32 0.0, %v2400_v33  ;;  %v2988_v56 = vmul.f32 1.442695, %v2799_v41 }
 0x211   :  { %v4764_v19 = vpop.eup %4763  ;;  %3545 = vst.msk [vmem:[%s6676_s5 + $0x130] sm:$0xff] %vm3506_vm12, %v4762_v18  ;;  %4789 = vrcp.f32 %v3169_v14  ;;  %v2409_v21 = vpop.f32.mrf.mxu1 }
 0x212   :  { %v4766_v22 = vpop.eup %4765  ;;  %v3168_v23 = vadd.f32 1.0, %v4764_v19  ;;  %4791 = vpow2.f32 %v2976_v8  ;;  %v2410_v50 = vadd.f32 %v6154_v29, %v2409_v21  ;;  %v2801_v53 = vsub.f32 0.0, %v2415_v36 }
 0x213   :  { %v4768_v26 = vpop.eup %4767  ;;  %v3171_v27 = vadd.f32 1.0, %v4766_v22  ;;  %4793 = vpow2.f32 %v2974_v12  ;;  %v4479_v31 = vpop.f32.mrf.mxu1  ;;  %v2986_v47 = vmul.f32 1.442695, %v2798_v49 }
 0x214   :  { %v4770_v32 = vpop.eup %4769  ;;  %4795 = vrcp.f32 %v3168_v23  ;;  %v3170_v40 = vadd.f32 1.0, %v4768_v26  ;;  %v2425_v54 = vadd.f32 %v6154_v29, %v4479_v31  ;;  %v2800_v63 = vsub.f32 0.0, %v2410_v50 }
 0x215   :  { %v4772_v34 = vpop.eup %4771  ;;  %3548 = vst.msk [vmem:[%s6676_s5 + $0x148] sm:$0xff] %vm3506_vm12, %v4770_v32  ;;  %4797 = vrcp.f32 %v3171_v27  ;;  %v2419_v37 = vpop.f32.mrf.mxu1  ;;  %v2992_v3 = vmul.f32 1.442695, %v2801_v53 }
 0x216   :  { %v4774_v38 = vpop.eup %4773  ;;  %4799 = vrcp.f32 %v3170_v40  ;;  %v3173_v39 = vadd.f32 1.0, %v4772_v34  ;;  %v2420_v57 = vadd.f32 %v6154_v29, %v2419_v37  ;;  %v2803_v4 = vsub.f32 0.0, %v2425_v54 }
 0x217   :  { %v4776_v42 = vpop.eup %4775  ;;  %3547 = vst.msk [vmem:[%s6676_s5 + $0x140] sm:$0xff] %vm3506_vm12, %v4774_v38  ;;  %4801 = vpow2.f32 %v2980_v24  ;;  %v4482_v45 = vpop.f32.mrf.mxu1  ;;  %v2990_v13 = vmul.f32 1.442695, %v2800_v63 }
 0x218   :  { %v4778_v46 = vpop.eup %4777  ;;  %4803 = vrcp.f32 %v3173_v39  ;;  %v3172_v48 = vadd.f32 1.0, %v4776_v42  ;;  %v2435_v0 = vadd.f32 %v6154_v29, %v4482_v45  ;;  %v2802_v8 = vsub.f32 0.0, %v2420_v57 }
 0x219   :  { %v4780_v52 = vpop.eup %4779  ;;  %3550 = vst.msk [vmem:[%s6676_s5 + $0x158] sm:$0xff] %vm3506_vm12, %v4778_v46  ;;  %4805 = vpow2.f32 %v2978_v35  ;;  %v2429_v11 = vpop.f32.mrf.mxu1  ;;  %v2996_v16 = vmul.f32 1.442695, %v2803_v4 }
 0x21a   :  { %v4782_v55 = vpop.eup %4781  ;;  %3549 = vst.msk [vmem:[%s6676_s5 + $0x150] sm:$0xff] %vm3506_vm12, %v4780_v52  ;;  %4807 = vrcp.f32 %v3172_v48  ;;  %v2430_v62 = vadd.f32 %v6154_v29, %v2429_v11  ;;  %v2805_v51 = vsub.f32 0.0, %v2435_v0  ;;  %v2994_v20 = vmul.f32 1.442695, %v2802_v8 }
 0x21b   :  { %v4784_v58 = vpop.eup %4783  ;;  %v3175_v60 = vadd.f32 1.0, %v4782_v55  ;;  %4809 = vpow2.f32 %v2984_v43  ;;  %v4485_v61 = vpop.f32.mrf.mxu1 }
 0x21c   :  { %v4786_v59 = vpop.eup %4785  ;;  %3552 = vst.msk [vmem:[%s6676_s5 + $0x168] sm:$0xff] %vm3506_vm12, %v4784_v58  ;;  %4811 = vpow2.f32 %v2982_v44  ;;  %v2445_v17 = vadd.f32 %v6154_v29, %v4485_v61  ;;  %v2804_v21 = vsub.f32 0.0, %v2430_v62  ;;  %v3000_v26 = vmul.f32 1.442695, %v2805_v51 }
 0x21d   :  { %v4788_v1 = vpop.eup %4787  ;;  %4813 = vrcp.f32 %v3175_v60  ;;  %v3174_v2 = vadd.f32 1.0, %v4786_v59  ;;  %v2439_v6 = vpop.f32.mrf.mxu1 }
 0x21e   :  { %v4790_v7 = vpop.eup %4789  ;;  %3551 = vst.msk [vmem:[%s6676_s5 + $0x160] sm:$0xff] %vm3506_vm12, %v4788_v1  ;;  %4815 = vpow2.f32 %v2988_v56  ;;  %v2440_v23 = vadd.f32 %v6154_v29, %v2439_v6  ;;  %v2807_v30 = vsub.f32 0.0, %v2445_v17  ;;  %v2998_v33 = vmul.f32 1.442695, %v2804_v21 }
 0x21f   :  { %v4792_v5 = vpop.eup %4791  ;;  %3554 = vst.msk [vmem:[%s6676_s5 + $0x178] sm:$0xff] %vm3506_vm12, %v4790_v7  ;;  %4817 = vrcp.f32 %v3174_v2  ;;  %v4488_v9 = vpop.f32.mrf.mxu1 }
 0x220   :  { %v4794_v10 = vpop.eup %4793  ;;  %v3177_v12 = vadd.f32 1.0, %v4792_v5  ;;  %4819 = vpow2.f32 %v2986_v47  ;;  %v2455_v31 = vadd.f32 %v6154_v29, %v4488_v9  ;;  %v2806_v37 = vsub.f32 0.0, %v2440_v23 }
 0x221   :  { %v4796_v14 = vpop.eup %4795  ;;  %v3176_v15 = vadd.f32 1.0, %v4794_v10  ;;  %4821 = vpow2.f32 %v2992_v3  ;;  %v2449_v18 = vpop.f32.mrf.mxu1  ;;  %v3004_v43 = vmul.f32 1.442695, %v2807_v30 }
 0x222   :  { %v4798_v19 = vpop.eup %4797  ;;  %3553 = vst.msk [vmem:[%s6676_s5 + $0x170] sm:$0xff] %vm3506_vm12, %v4796_v14  ;;  %4823 = vrcp.f32 %v3177_v12  ;;  %v2450_v34 = vadd.f32 %v6154_v29, %v2449_v18  ;;  %v2809_v44 = vsub.f32 0.0, %v2455_v31  ;;  %v3002_v53 = vmul.f32 1.442695, %v2806_v37 }
 0x223   :  { %v4800_v22 = vpop.eup %4799  ;;  %3556 = vst.msk [vmem:[%s6676_s5 + $0x188] sm:$0xff] %vm3506_vm12, %v4798_v19  ;;  %4825 = vrcp.f32 %v3176_v15  ;;  %v4491_v24 = vpop.f32.mrf.mxu1 }
 0x224   :  { %v4802_v25 = vpop.eup %4801  ;;  %3555 = vst.msk [vmem:[%s6676_s5 + $0x180] sm:$0xff] %vm3506_vm12, %v4800_v22  ;;  %4827 = vpow2.f32 %v2990_v13  ;;  %v2808_v49 = vsub.f32 0.0, %v2450_v34  ;;  %v2465_v50 = vadd.f32 %v6154_v29, %v4491_v24  ;;  %v3008_v57 = vmul.f32 1.442695, %v2809_v44 }
 0x225   :  { %v4804_v27 = vpop.eup %4803  ;;  %v3179_v28 = vadd.f32 1.0, %v4802_v25  ;;  %4829 = vpow2.f32 %v2996_v16  ;;  %v2459_v32 = vpop.f32.mrf.mxu1 }
 0x226   :  { %v4806_v40 = vpop.eup %4805  ;;  %3558 = vst.msk [vmem:[%s6676_s5 + $0x198] sm:$0xff] %vm3506_vm12, %v4804_v27  ;;  %4831 = vpow2.f32 %v2994_v20  ;;  %v2460_v58 = vadd.f32 %v6154_v29, %v2459_v32  ;;  %v3006_v47 = vmul.f32 1.442695, %v2808_v49  ;;  %v2811_v63 = vsub.f32 0.0, %v2465_v50 }
 0x227   :  { %v4808_v35 = vpop.eup %4807  ;;  %4833 = vrcp.f32 %v3179_v28  ;;  %v3178_v36 = vadd.f32 1.0, %v4806_v40  ;;  %v4494_v38 = vpop.f32.mrf.mxu1 }
 0x228   :  { %v4810_v39 = vpop.eup %4809  ;;  %3557 = vst.msk [vmem:[%s6676_s5 + $0x190] sm:$0xff] %vm3506_vm12, %v4808_v35  ;;  %4835 = vpow2.f32 %v3000_v26  ;;  %v2475_v2 = vadd.f32 %v6154_v29, %v4494_v38  ;;  %v2810_v8 = vsub.f32 0.0, %v2460_v58  ;;  %v3012_v10 = vmul.f32 1.442695, %v2811_v63 }
 0x229   :  { %v4812_v41 = vpop.eup %4811  ;;  %4837 = vrcp.f32 %v3178_v36  ;;  %v3181_v42 = vadd.f32 1.0, %v4810_v39  ;;  %v2469_v45 = vpop.f32.mrf.mxu1 }
 0x22a   :  { %v4814_v46 = vpop.eup %4813  ;;  %v3180_v48 = vadd.f32 1.0, %v4812_v41  ;;  %4839 = vpow2.f32 %v2998_v33  ;;  %v2470_v3 = vadd.f32 %v6154_v29, %v2469_v45  ;;  %v2813_v14 = vsub.f32 0.0, %v2475_v2 }
 0x22b   :  { %v4816_v52 = vpop.eup %4815  ;;  %3560 = vst.msk [vmem:[%s6676_s5 + $0x1a8] sm:$0xff] %vm3506_vm12, %v4814_v46  ;;  %4841 = vrcp.f32 %v3181_v42  ;;  %v4497_v54 = vpop.f32.mrf.mxu1  ;;  %v3010_v21 = vmul.f32 1.442695, %v2810_v8 }
 0x22c   :  { %v4818_v11 = vpop.eup %4817  ;;  %4843 = vrcp.f32 %v3180_v48  ;;  %v3183_v55 = vadd.f32 1.0, %v4816_v52  ;;  %v2485_v12 = vadd.f32 %v6154_v29, %v4497_v54  ;;  %v2812_v15 = vsub.f32 0.0, %v2470_v3 }
 0x22d   :  { %v4820_v56 = vpop.eup %4819  ;;  %3559 = vst.msk [vmem:[%s6676_s5 + $0x1a0] sm:$0xff] %vm3506_vm12, %v4818_v11  ;;  %4845 = vpow2.f32 %v3004_v43  ;;  %v2479_v60 = vpop.f32.mrf.mxu1  ;;  %v3016_v28 = vmul.f32 1.442695, %v2813_v14 }
 0x22e   :  { %v4822_v61 = vpop.eup %4821  ;;  %4847 = vrcp.f32 %v3183_v55  ;;  %v3182_v59 = vadd.f32 1.0, %v4820_v56  ;;  %v2480_v19 = vadd.f32 %v6154_v29, %v2479_v60  ;;  %v2815_v26 = vsub.f32 0.0, %v2485_v12 }
 0x22f   :  { %v4824_v0 = vpop.eup %4823  ;;  %v3185_v1 = vadd.f32 1.0, %v4822_v61  ;;  %4849 = vpow2.f32 %v3002_v53  ;;  %v4500_v4 = vpop.f32.mrf.mxu1  ;;  %v3014_v30 = vmul.f32 1.442695, %v2812_v15 }
 0x230   :  { %v4826_v6 = vpop.eup %4825  ;;  %3562 = vst.msk [vmem:[%s6676_s5 + $0x1b8] sm:$0xff] %vm3506_vm12, %v4824_v0  ;;  %4851 = vrcp.f32 %v3182_v59  ;;  %v2495_v22 = vadd.f32 %v6154_v29, %v4500_v4  ;;  %v2814_v33 = vsub.f32 0.0, %v2480_v19  ;;  %v3020_v41 = vmul.f32 1.442695, %v2815_v26 }
 0x231   :  { %v4828_v7 = vpop.eup %4827  ;;  %3561 = vst.msk [vmem:[%s6676_s5 + $0x1b0] sm:$0xff] %vm3506_vm12, %v4826_v6  ;;  %4853 = vrcp.f32 %v3185_v1  ;;  %v2489_v62 = vpop.f32.mrf.mxu1 }
 0x232   :  { %v4830_v5 = vpop.eup %4829  ;;  %v3184_v9 = vadd.f32 1.0, %v4828_v7  ;;  %4855 = vpow2.f32 %v3008_v57  ;;  %v2490_v34 = vadd.f32 %v6154_v29, %v2489_v62  ;;  %v2817_v36 = vsub.f32 0.0, %v2495_v22 }
 0x233   :  { %v4832_v13 = vpop.eup %4831  ;;  %v3187_v51 = vadd.f32 1.0, %v4830_v5  ;;  %4857 = vpow2.f32 %v3006_v47  ;;  %v4503_v16 = vpop.f32.mrf.mxu1  ;;  %v3018_v48 = vmul.f32 1.442695, %v2814_v33 }
 0x234   :  { %v4834_v17 = vpop.eup %4833  ;;  %4859 = vrcp.f32 %v3184_v9  ;;  %v3186_v18 = vadd.f32 1.0, %v4832_v13  ;;  %v2505_v37 = vadd.f32 %v6154_v29, %v4503_v16  ;;  %v2816_v49 = vsub.f32 0.0, %v2490_v34 }
 0x235   :  { %v4836_v20 = vpop.eup %4835  ;;  %3564 = vst.msk [vmem:[%s6676_s5 + $0x1c8] sm:$0xff] %vm3506_vm12, %v4834_v17  ;;  %4861 = vrcp.f32 %v3187_v51  ;;  %v2499_v23 = vpop.f32.mrf.mxu1  ;;  %v3024_v54 = vmul.f32 1.442695, %v2817_v36 }
 0x236   :  { %v4838_v24 = vpop.eup %4837  ;;  %4863 = vrcp.f32 %v3186_v18  ;;  %v3189_v25 = vadd.f32 1.0, %v4836_v20  ;;  %v2500_v42 = vadd.f32 %v6154_v29, %v2499_v23  ;;  %v2819_v11 = vsub.f32 0.0, %v2505_v37 }
 0x237   :  { %v4840_v27 = vpop.eup %4839  ;;  %3563 = vst.msk [vmem:[%s6676_s5 + $0x1c0] sm:$0xff] %vm3506_vm12, %v4838_v24  ;;  %4865 = vpow2.f32 %v3012_v10  ;;  %v4506_v31 = vpop.f32.mrf.mxu1  ;;  %v3022_v63 = vmul.f32 1.442695, %v2816_v49 }
 0x238   :  { %v4842_v32 = vpop.eup %4841  ;;  %4867 = vrcp.f32 %v3189_v25  ;;  %v3188_v40 = vadd.f32 1.0, %v4840_v27  ;;  %v2515_v50 = vadd.f32 %v6154_v29, %v4506_v31  ;;  %v2818_v57 = vsub.f32 0.0, %v2500_v42 }
 0x239   :  { %v4844_v35 = vpop.eup %4843  ;;  %3566 = vst.msk [vmem:[%s6676_s5 + $0x1d8] sm:$0xff] %vm3506_vm12, %v4842_v32  ;;  %4869 = vpow2.f32 %v3010_v21  ;;  %v2509_v38 = vpop.f32.mrf.mxu1  ;;  %v3028_v3 = vmul.f32 1.442695, %v2819_v11 }
 0x23a   :  { %v4846_v39 = vpop.eup %4845  ;;  %3565 = vst.msk [vmem:[%s6676_s5 + $0x1d0] sm:$0xff] %vm3506_vm12, %v4844_v35  ;;  %4871 = vrcp.f32 %v3188_v40  ;;  %v2510_v58 = vadd.f32 %v6154_v29, %v2509_v38  ;;  %v2821_v0 = vsub.f32 0.0, %v2515_v50  ;;  %v3026_v8 = vmul.f32 1.442695, %v2818_v57 }
 0x23b   :  { %v4848_v43 = vpop.eup %4847  ;;  %v3191_v44 = vadd.f32 1.0, %v4846_v39  ;;  %4873 = vpow2.f32 %v3016_v28  ;;  %v4509_v45 = vpop.f32.mrf.mxu1 }
 0x23c   :  { %v4850_v46 = vpop.eup %4849  ;;  %3568 = vst.msk [vmem:[%s6676_s5 + $0x1e8] sm:$0xff] %vm3506_vm12, %v4848_v43  ;;  %4875 = vpow2.f32 %v3014_v30  ;;  %v2525_v4 = vadd.f32 %v6154_v29, %v4509_v45  ;;  %v2820_v62 = vsub.f32 0.0, %v2510_v58  ;;  %v3032_v13 = vmul.f32 1.442695, %v2821_v0 }
 0x23d   :  { %v4852_v52 = vpop.eup %4851  ;;  %4877 = vrcp.f32 %v3191_v44  ;;  %v3190_v53 = vadd.f32 1.0, %v4850_v46  ;;  %v2519_v55 = vpop.f32.mrf.mxu1 }
 0x23e   :  { %v4854_v56 = vpop.eup %4853  ;;  %3567 = vst.msk [vmem:[%s6676_s5 + $0x1e0] sm:$0xff] %vm3506_vm12, %v4852_v52  ;;  %4879 = vpow2.f32 %v3020_v41  ;;  %v2520_v9 = vadd.f32 %v6154_v29, %v2519_v55  ;;  %v2823_v15 = vsub.f32 0.0, %v2525_v4  ;;  %v3030_v19 = vmul.f32 1.442695, %v2820_v62 }
 0x23f   :  { %v4856_v60 = vpop.eup %4855  ;;  %3570 = vst.msk [vmem:[%s6676_s5 + $0x1f8] sm:$0xff] %vm3506_vm12, %v4854_v56  ;;  %4881 = vrcp.f32 %v3190_v53  ;;  %v4512_v61 = vpop.f32.mrf.mxu1 }
 0x240   :  { %v4858_v59 = vpop.eup %4857  ;;  %v3193_v47 = vadd.f32 1.0, %v4856_v60  ;;  %4883 = vpow2.f32 %v3018_v48  ;;  %v2535_v16 = vadd.f32 %v6154_v29, %v4512_v61  ;;  %v2822_v23 = vsub.f32 0.0, %v2520_v9 }
 0x241   :  { %v4860_v1 = vpop.eup %4859  ;;  %v3192_v2 = vadd.f32 1.0, %v4858_v59  ;;  %4885 = vpow2.f32 %v3024_v54  ;;  %v2529_v6 = vpop.f32.mrf.mxu1  ;;  %v3036_v28 = vmul.f32 1.442695, %v2823_v15 }
 0x242   :  { %v4862_v7 = vpop.eup %4861  ;;  %3569 = vst.msk [vmem:[%s6676_s5 + $0x1f0] sm:$0xff] %vm3506_vm12, %v4860_v1  ;;  %4887 = vrcp.f32 %v3193_v47  ;;  %v2530_v20 = vadd.f32 %v6154_v29, %v2529_v6  ;;  %v2825_v30 = vsub.f32 0.0, %v2535_v16  ;;  %v3034_v36 = vmul.f32 1.442695, %v2822_v23 }
 0x243   :  { %v4864_v5 = vpop.eup %4863  ;;  %3572 = vst.msk [vmem:[%s6676_s5 + $0x208] sm:$0xff] %vm3506_vm12, %v4862_v7  ;;  %4889 = vrcp.f32 %v3192_v2  ;;  %v4515_v10 = vpop.f32.mrf.mxu1 }
 0x244   :  { %v4866_v12 = vpop.eup %4865  ;;  %3571 = vst.msk [vmem:[%s6676_s5 + $0x200] sm:$0xff] %vm3506_vm12, %v4864_v5  ;;  %4891 = vpow2.f32 %v3022_v63  ;;  %v2824_v33 = vsub.f32 0.0, %v2530_v20  ;;  %v2545_v34 = vadd.f32 %v6154_v29, %v4515_v10  ;;  %v3040_v42 = vmul.f32 1.442695, %v2825_v30 }
 0x245   :  { %v4868_v51 = vpop.eup %4867  ;;  %v3195_v14 = vadd.f32 1.0, %v4866_v12  ;;  %4893 = vpow2.f32 %v3028_v3  ;;  %v2539_v17 = vpop.f32.mrf.mxu1 }
 0x246   :  { %v4870_v18 = vpop.eup %4869  ;;  %3574 = vst.msk [vmem:[%s6676_s5 + $0x218] sm:$0xff] %vm3506_vm12, %v4868_v51  ;;  %4895 = vpow2.f32 %v3026_v8  ;;  %v2540_v43 = vadd.f32 %v6154_v29, %v2539_v17  ;;  %v3038_v48 = vmul.f32 1.442695, %v2824_v33  ;;  %v2827_v49 = vsub.f32 0.0, %v2545_v34 }
 0x247   :  { %v4872_v21 = vpop.eup %4871  ;;  %4897 = vrcp.f32 %v3195_v14  ;;  %v3194_v22 = vadd.f32 1.0, %v4870_v18  ;;  %v4518_v24 = vpop.f32.mrf.mxu1 }
 0x248   :  { %v4874_v25 = vpop.eup %4873  ;;  %3573 = vst.msk [vmem:[%s6676_s5 + $0x210] sm:$0xff] %vm3506_vm12, %v4872_v21  ;;  %4899 = vpow2.f32 %v3032_v13  ;;  %v2555_v53 = vadd.f32 %v6154_v29, %v4518_v24  ;;  %v2826_v57 = vsub.f32 0.0, %v2540_v43  ;;  %v3044_v59 = vmul.f32 1.442695, %v2827_v49 }
 0x249   :  { %v4876_v26 = vpop.eup %4875  ;;  %4901 = vrcp.f32 %v3194_v22  ;;  %v3197_v27 = vadd.f32 1.0, %v4874_v25  ;;  %v2549_v31 = vpop.f32.mrf.mxu1 }
 0x24a   :  { %v4878_v32 = vpop.eup %4877  ;;  %v3196_v40 = vadd.f32 1.0, %v4876_v26  ;;  %4903 = vpow2.f32 %v3030_v19  ;;  %v2550_v54 = vadd.f32 %v6154_v29, %v2549_v31  ;;  %v2829_v1 = vsub.f32 0.0, %v2555_v53 }
 0x24b   :  { %v4880_v35 = vpop.eup %4879  ;;  %3576 = vst.msk [vmem:[%s6676_s5 + $0x228] sm:$0xff] %vm3506_vm12, %v4878_v32  ;;  %4905 = vrcp.f32 %v3197_v27  ;;  %v4521_v37 = vpop.f32.mrf.mxu1  ;;  %v3042_v62 = vmul.f32 1.442695, %v2826_v57 }
 0x24c   :  { %v4882_v38 = vpop.eup %4881  ;;  %4907 = vrcp.f32 %v3196_v40  ;;  %v3199_v39 = vadd.f32 1.0, %v4880_v35  ;;  %v2565_v47 = vadd.f32 %v6154_v29, %v4521_v37  ;;  %v2828_v2 = vsub.f32 0.0, %v2550_v54 }
 0x24d   :  { %v4884_v41 = vpop.eup %4883  ;;  %3575 = vst.msk [vmem:[%s6676_s5 + $0x220] sm:$0xff] %vm3506_vm12, %v4882_v38  ;;  %4909 = vpow2.f32 %v3036_v28  ;;  %v2559_v44 = vpop.f32.mrf.mxu1  ;;  %v3048_v14 = vmul.f32 1.442695, %v2829_v1 }
 0x24e   :  { %v4886_v45 = vpop.eup %4885  ;;  %4911 = vrcp.f32 %v3199_v39  ;;  %v3198_v46 = vadd.f32 1.0, %v4884_v41  ;;  %v2560_v7 = vadd.f32 %v6154_v29, %v2559_v44  ;;  %v2831_v13 = vsub.f32 0.0, %v2565_v47 }
 0x24f   :  { %v4888_v50 = vpop.eup %4887  ;;  %v3201_v52 = vadd.f32 1.0, %v4886_v45  ;;  %4913 = vpow2.f32 %v3034_v36  ;;  %v4524_v11 = vpop.f32.mrf.mxu1  ;;  %v3046_v15 = vmul.f32 1.442695, %v2828_v2 }
 0x250   :  { %v4890_v55 = vpop.eup %4889  ;;  %3578 = vst.msk [vmem:[%s6676_s5 + $0x238] sm:$0xff] %vm3506_vm12, %v4888_v50  ;;  %4915 = vrcp.f32 %v3198_v46  ;;  %v2575_v5 = vadd.f32 %v6154_v29, %v4524_v11  ;;  %v2830_v19 = vsub.f32 0.0, %v2560_v7  ;;  %v6420_v29 = vld [vmem:[%s6675_s4] ss:$0 sm:$0xff]  ;;  %v3052_v26 = vmul.f32 1.442695, %v2831_v13 }
 0x251   :  { %v4892_v56 = vpop.eup %4891  ;;  %3577 = vst.msk [vmem:[%s6676_s5 + $0x230] sm:$0xff] %vm3506_vm12, %v4890_v55  ;;  %4917 = vrcp.f32 %v3201_v52  ;;  %v2569_v58 = vpop.f32.mrf.mxu1 }
 0x252   :  { %v4894_v60 = vpop.eup %4893  ;;  %v3200_v61 = vadd.f32 1.0, %v4892_v56  ;;  %4919 = vpow2.f32 %v3040_v42  ;;  %v2570_v20 = vadd.f32 %v6420_v29, %v2569_v58  ;;  %v2833_v22 = vsub.f32 0.0, %v2575_v5 }
 0x253   :  { %v4896_v63 = vpop.eup %4895  ;;  %v3203_v0 = vadd.f32 1.0, %v4894_v60  ;;  %4921 = vpow2.f32 %v3038_v48  ;;  %v4527_v3 = vpop.f32.mrf.mxu1  ;;  %v3050_v40 = vmul.f32 1.442695, %v2830_v19 }
 0x254   :  { %v4898_v4 = vpop.eup %4897  ;;  %4923 = vrcp.f32 %v3200_v61  ;;  %v3202_v6 = vadd.f32 1.0, %v4896_v63  ;;  %v2585_v23 = vadd.f32 %v6420_v29, %v4527_v3  ;;  %v2832_v33 = vsub.f32 0.0, %v2570_v20 }
 0x255   :  { %v4900_v8 = vpop.eup %4899  ;;  %3580 = vst.msk [vmem:[%s6676_s5 + $0x248] sm:$0xff] %vm3506_vm12, %v4898_v4  ;;  %4925 = vrcp.f32 %v3203_v0  ;;  %v2579_v9 = vpop.f32.mrf.mxu1  ;;  %v3056_v37 = vmul.f32 1.442695, %v2833_v22 }
 0x256   :  { %v4902_v10 = vpop.eup %4901  ;;  %4927 = vrcp.f32 %v3202_v6  ;;  %v3205_v12 = vadd.f32 1.0, %v4900_v8  ;;  %v2580_v27 = vadd.f32 %v6420_v29, %v2579_v9  ;;  %v2835_v38 = vsub.f32 0.0, %v2585_v23 }
 0x257   :  { %v4904_v51 = vpop.eup %4903  ;;  %3579 = vst.msk [vmem:[%s6676_s5 + $0x240] sm:$0xff] %vm3506_vm12, %v4902_v10  ;;  %4929 = vpow2.f32 %v3044_v59  ;;  %v4530_v16 = vpop.f32.mrf.mxu1  ;;  %v3054_v49 = vmul.f32 1.442695, %v2832_v33 }
 0x258   :  { %v4906_v17 = vpop.eup %4905  ;;  %4931 = vrcp.f32 %v3205_v12  ;;  %v3204_v18 = vadd.f32 1.0, %v4904_v51  ;;  %v2595_v34 = vadd.f32 %v6420_v29, %v4530_v16  ;;  %v2834_v42 = vsub.f32 0.0, %v2580_v27 }
 0x259   :  { %v4908_v21 = vpop.eup %4907  ;;  %3582 = vst.msk [vmem:[%s6676_s5 + $0x258] sm:$0xff] %vm3506_vm12, %v4906_v17  ;;  %4933 = vpow2.f32 %v3042_v62  ;;  %v2589_v24 = vpop.f32.mrf.mxu1  ;;  %v3060_v54 = vmul.f32 1.442695, %v2835_v38 }
 0x25a   :  { %v4910_v25 = vpop.eup %4909  ;;  %3581 = vst.msk [vmem:[%s6676_s5 + $0x250] sm:$0xff] %vm3506_vm12, %v4908_v21  ;;  %4935 = vrcp.f32 %v3204_v18  ;;  %v2590_v43 = vadd.f32 %v6420_v29, %v2589_v24  ;;  %v2837_v50 = vsub.f32 0.0, %v2595_v34  ;;  %v3058_v57 = vmul.f32 1.442695, %v2834_v42 }
 0x25b   :  { %v4912_v28 = vpop.eup %4911  ;;  %v3207_v30 = vadd.f32 1.0, %v4910_v25  ;;  %4937 = vpow2.f32 %v3048_v14  ;;  %v4533_v31 = vpop.f32.mrf.mxu1 }
 0x25c   :  { %v4914_v32 = vpop.eup %4913  ;;  %3584 = vst.msk [vmem:[%s6676_s5 + $0x268] sm:$0xff] %vm3506_vm12, %v4912_v28  ;;  %4939 = vpow2.f32 %v3046_v15  ;;  %v2605_v11 = vadd.f32 %v6420_v29, %v4533_v31  ;;  %v2836_v58 = vsub.f32 0.0, %v2590_v43  ;;  %v3064_v63 = vmul.f32 1.442695, %v2837_v50 }
 0x25d   :  { %v4916_v35 = vpop.eup %4915  ;;  %4941 = vrcp.f32 %v3207_v30  ;;  %v3206_v36 = vadd.f32 1.0, %v4914_v32  ;;  %v2599_v39 = vpop.f32.mrf.mxu1 }
 0x25e   :  { %v4918_v41 = vpop.eup %4917  ;;  %3583 = vst.msk [vmem:[%s6676_s5 + $0x260] sm:$0xff] %vm3506_vm12, %v4916_v35  ;;  %4943 = vpow2.f32 %v3052_v26  ;;  %v2600_v61 = vadd.f32 %v6420_v29, %v2599_v39  ;;  %v2839_v2 = vsub.f32 0.0, %v2605_v11  ;;  %v3062_v6 = vmul.f32 1.442695, %v2836_v58 }
 0x25f   :  { %v4920_v44 = vpop.eup %4919  ;;  %3586 = vst.msk [vmem:[%s6676_s5 + $0x278] sm:$0xff] %vm3506_vm12, %v4918_v41  ;;  %4945 = vrcp.f32 %v3206_v36  ;;  %v4536_v45 = vpop.f32.mrf.mxu1 }
 0x260   :  { %v4922_v46 = vpop.eup %4921  ;;  %v3209_v48 = vadd.f32 1.0, %v4920_v44  ;;  %4947 = vpow2.f32 %v3050_v40  ;;  %v2615_v7 = vadd.f32 %v6420_v29, %v4536_v45  ;;  %v2838_v5 = vsub.f32 0.0, %v2600_v61 }
 0x261   :  { %v4924_v52 = vpop.eup %4923  ;;  %v3208_v53 = vadd.f32 1.0, %v4922_v46  ;;  %4949 = vpow2.f32 %v3056_v37  ;;  %v2609_v55 = vpop.f32.mrf.mxu1  ;;  %v3068_v14 = vmul.f32 1.442695, %v2839_v2 }
 0x262   :  { %v4926_v56 = vpop.eup %4925  ;;  %3585 = vst.msk [vmem:[%s6676_s5 + $0x270] sm:$0xff] %vm3506_vm12, %v4924_v52  ;;  %4951 = vrcp.f32 %v3209_v48  ;;  %v2610_v9 = vadd.f32 %v6420_v29, %v2609_v55  ;;  %v2841_v19 = vsub.f32 0.0, %v2615_v7  ;;  %v3066_v21 = vmul.f32 1.442695, %v2838_v5 }
 0x263   :  { %v4928_v60 = vpop.eup %4927  ;;  %3588 = vst.msk [vmem:[%s6676_s5 + $0x288] sm:$0xff] %vm3506_vm12, %v4926_v56  ;;  %4953 = vrcp.f32 %v3208_v53  ;;  %v4539_v59 = vpop.f32.mrf.mxu1 }
 0x264   :  { %v4930_v47 = vpop.eup %4929  ;;  %3587 = vst.msk [vmem:[%s6676_s5 + $0x280] sm:$0xff] %vm3506_vm12, %v4928_v60  ;;  %4955 = vpow2.f32 %v3054_v49  ;;  %v2625_v15 = vadd.f32 %v6420_v29, %v4539_v59  ;;  %v2840_v22 = vsub.f32 0.0, %v2610_v9  ;;  %v3072_v32 = vmul.f32 1.442695, %v2841_v19 }
 0x265   :  { %v4932_v0 = vpop.eup %4931  ;;  %v3211_v1 = vadd.f32 1.0, %v4930_v47  ;;  %4957 = vpow2.f32 %v3060_v54  ;;  %v2619_v3 = vpop.f32.mrf.mxu1 }
 0x266   :  { %v4934_v4 = vpop.eup %4933  ;;  %3590 = vst.msk [vmem:[%s6676_s5 + $0x298] sm:$0xff] %vm3506_vm12, %v4932_v0  ;;  %4959 = vpow2.f32 %v3058_v57  ;;  %v2843_v27 = vsub.f32 0.0, %v2625_v15  ;;  %v2620_v28 = vadd.f32 %v6420_v29, %v2619_v3  ;;  %v3070_v35 = vmul.f32 1.442695, %v2840_v22 }
 0x267   :  { %v4936_v8 = vpop.eup %4935  ;;  %4961 = vrcp.f32 %v3211_v1  ;;  %v3210_v62 = vadd.f32 1.0, %v4934_v4  ;;  %v4542_v10 = vpop.f32.mrf.mxu1 }
 0x268   :  { %v4938_v12 = vpop.eup %4937  ;;  %3589 = vst.msk [vmem:[%s6676_s5 + $0x290] sm:$0xff] %vm3506_vm12, %v4936_v8  ;;  %4963 = vpow2.f32 %v3064_v63  ;;  %v2635_v40 = vadd.f32 %v6420_v29, %v4542_v10  ;;  %v3076_v41 = vmul.f32 1.442695, %v2843_v27  ;;  %v2842_v42 = vsub.f32 0.0, %v2620_v28 }
 0x269   :  { %v4940_v13 = vpop.eup %4939  ;;  %4965 = vrcp.f32 %v3210_v62  ;;  %v3213_v51 = vadd.f32 1.0, %v4938_v12  ;;  %v2629_v16 = vpop.f32.mrf.mxu1 }
 0x26a   :  { %v4942_v17 = vpop.eup %4941  ;;  %v3212_v18 = vadd.f32 1.0, %v4940_v13  ;;  %4967 = vpow2.f32 %v3062_v6  ;;  %v2630_v36 = vadd.f32 %v6420_v29, %v2629_v16  ;;  %v2845_v45 = vsub.f32 0.0, %v2635_v40 }
 0x26b   :  { %v4944_v20 = vpop.eup %4943  ;;  %3592 = vst.msk [vmem:[%s6676_s5 + $0x2a8] sm:$0xff] %vm3506_vm12, %v4942_v17  ;;  %4969 = vrcp.f32 %v3213_v51  ;;  %v4545_v23 = vpop.f32.mrf.mxu1  ;;  %v3074_v57 = vmul.f32 1.442695, %v2842_v42 }
 0x26c   :  { %v4946_v24 = vpop.eup %4945  ;;  %4971 = vrcp.f32 %v3212_v18  ;;  %v3215_v25 = vadd.f32 1.0, %v4944_v20  ;;  %v2645_v46 = vadd.f32 %v6420_v29, %v4545_v23  ;;  %v2844_v50 = vsub.f32 0.0, %v2630_v36 }
 0x26d   :  { %v4948_v26 = vpop.eup %4947  ;;  %3591 = vst.msk [vmem:[%s6676_s5 + $0x2a0] sm:$0xff] %vm3506_vm12, %v4946_v24  ;;  %4973 = vpow2.f32 %v3068_v14  ;;  %v2639_v37 = vpop.f32.mrf.mxu1  ;;  %v3080_v63 = vmul.f32 1.442695, %v2845_v45 }
 0x26e   :  { %v4950_v30 = vpop.eup %4949  ;;  %4975 = vrcp.f32 %v3215_v25  ;;  %v3214_v31 = vadd.f32 1.0, %v4948_v26  ;;  %v2640_v52 = vadd.f32 %v6420_v29, %v2639_v37  ;;  %v2847_v59 = vsub.f32 0.0, %v2645_v46 }
 0x26f   :  { %v4952_v33 = vpop.eup %4951  ;;  %v3217_v34 = vadd.f32 1.0, %v4950_v30  ;;  %4977 = vpow2.f32 %v3066_v21  ;;  %v3078_v0 = vmul.f32 1.442695, %v2844_v50 }
 0x270   :  { %v4954_v38 = vpop.eup %4953  ;;  %3594 = vst.msk [vmem:[%s6676_s5 + $0x2b8] sm:$0xff] %vm3506_vm12, %v4952_v33  ;;  %4979 = vrcp.f32 %v3214_v31  ;;  %v2846_v1 = vsub.f32 0.0, %v2640_v52  ;;  %v3084_v62 = vmul.f32 1.442695, %v2847_v59 }
 0x271   :  { %v4956_v39 = vpop.eup %4955  ;;  %3593 = vst.msk [vmem:[%s6676_s5 + $0x2b0] sm:$0xff] %vm3506_vm12, %v4954_v38  ;;  %4981 = vrcp.f32 %v3217_v34 }
 0x272   :  { %v4958_v43 = vpop.eup %4957  ;;  %v3216_v44 = vadd.f32 1.0, %v4956_v39  ;;  %4983 = vpow2.f32 %v3072_v32  ;;  %v3082_v51 = vmul.f32 1.442695, %v2846_v1 }
 0x273   :  { %v4960_v48 = vpop.eup %4959  ;;  %v3219_v49 = vadd.f32 1.0, %v4958_v43  ;;  %4985 = vpow2.f32 %v3070_v35  ;;  %v4548_v53 = vpop.f32.mrf.mxu1 }
 0x274   :  { %v4962_v54 = vpop.eup %4961  ;;  %4987 = vrcp.f32 %v3216_v44  ;;  %v3218_v11 = vadd.f32 1.0, %v4960_v48  ;;  %v2655_v55 = vadd.f32 %v6420_v29, %v4548_v53 }
 0x275   :  { %v4964_v56 = vpop.eup %4963  ;;  %3596 = vst.msk [vmem:[%s6676_s5 + $0x2c8] sm:$0xff] %vm3506_vm12, %v4962_v54  ;;  %4989 = vrcp.f32 %v3219_v49  ;;  %v2649_v58 = vpop.f32.mrf.mxu1 }
 0x276   :  { %v4966_v60 = vpop.eup %4965  ;;  %4991 = vrcp.f32 %v3218_v11  ;;  %v3221_v61 = vadd.f32 1.0, %v4964_v56  ;;  %v2849_v4 = vsub.f32 0.0, %v2655_v55  ;;  %v2650_v6 = vadd.f32 %v6420_v29, %v2649_v58 }
 0x277   :  { %v4968_v47 = vpop.eup %4967  ;;  %3595 = vst.msk [vmem:[%s6676_s5 + $0x2c0] sm:$0xff] %vm3506_vm12, %v4966_v60  ;;  %4993 = vpow2.f32 %v3076_v41 }
 0x278   :  { %v4970_v2 = vpop.eup %4969  ;;  %4995 = vrcp.f32 %v3221_v61  ;;  %v3220_v3 = vadd.f32 1.0, %v4968_v47  ;;  %v3088_v14 = vmul.f32 1.442695, %v2849_v4  ;;  %v2848_v15 = vsub.f32 0.0, %v2650_v6 }
 0x279   :  { %v4972_v7 = vpop.eup %4971  ;;  %3598 = vst.msk [vmem:[%s6676_s5 + $0x2d8] sm:$0xff] %vm3506_vm12, %v4970_v2  ;;  %4997 = vpow2.f32 %v3074_v57 }
 0x27a   :  { %v4974_v8 = vpop.eup %4973  ;;  %3597 = vst.msk [vmem:[%s6676_s5 + $0x2d0] sm:$0xff] %vm3506_vm12, %v4972_v7  ;;  %4999 = vrcp.f32 %v3220_v3  ;;  %v4551_v5 = vpop.f32.mrf.mxu1  ;;  %v3086_v27 = vmul.f32 1.442695, %v2848_v15 }
 0x27b   :  { %v4976_v9 = vpop.eup %4975  ;;  %v3223_v10 = vadd.f32 1.0, %v4974_v8  ;;  %5001 = vpow2.f32 %v3080_v63  ;;  %v2665_v12 = vadd.f32 %v6420_v29, %v4551_v5 }
 0x27c   :  { %v4978_v13 = vpop.eup %4977  ;;  %3600 = vst.msk [vmem:[%s6676_s5 + $0x2e8] sm:$0xff] %vm3506_vm12, %v4976_v9  ;;  %5003 = vpow2.f32 %v3078_v0  ;;  %v2659_v16 = vpop.f32.mrf.mxu1 }
 0x27d   :  { %v4980_v17 = vpop.eup %4979  ;;  %5005 = vrcp.f32 %v3223_v10  ;;  %v3222_v18 = vadd.f32 1.0, %v4978_v13  ;;  %v2851_v19 = vsub.f32 0.0, %v2665_v12  ;;  %v2660_v20 = vadd.f32 %v6420_v29, %v2659_v16 }
 0x27e   :  { %v4982_v21 = vpop.eup %4981  ;;  %3599 = vst.msk [vmem:[%s6676_s5 + $0x2e0] sm:$0xff] %vm3506_vm12, %v4980_v17  ;;  %5007 = vpow2.f32 %v3084_v62 }
 0x27f   :  { %v4984_v22 = vpop.eup %4983  ;;  %3602 = vst.msk [vmem:[%s6676_s5 + $0x2f8] sm:$0xff] %vm3506_vm12, %v4982_v21  ;;  %5009 = vrcp.f32 %v3222_v18  ;;  %v2850_v23 = vsub.f32 0.0, %v2660_v20  ;;  %v4554_v24 = vpop.f32.mrf.mxu1  ;;  %v3092_v32 = vmul.f32 1.442695, %v2851_v19 }
 0x280   :  { %v4986_v25 = vpop.eup %4985  ;;  %v3225_v26 = vadd.f32 1.0, %v4984_v22  ;;  %5011 = vpow2.f32 %v3082_v51  ;;  %v2675_v28 = vadd.f32 %v6420_v29, %v4554_v24 }
 0x281   :  { %v4988_v30 = vpop.eup %4987  ;;  %v3224_v31 = vadd.f32 1.0, %v4986_v25  ;;  %5013 = vpow2.f32 %v3088_v14  ;;  %v2669_v40 = vpop.f32.mrf.mxu1  ;;  %v3090_v34 = vmul.f32 1.442695, %v2850_v23 }
 0x282   :  { %v4990_v33 = vpop.eup %4989  ;;  %3601 = vst.msk [vmem:[%s6676_s5 + $0x2f0] sm:$0xff] %vm3506_vm12, %v4988_v30  ;;  %5015 = vrcp.f32 %v3225_v26  ;;  %v2853_v35 = vsub.f32 0.0, %v2675_v28  ;;  %v2670_v36 = vadd.f32 %v6420_v29, %v2669_v40 }
 0x283   :  { %v4992_v37 = vpop.eup %4991  ;;  %3604 = vst.msk [vmem:[%s6676_s5 + $0x308] sm:$0xff] %vm3506_vm12, %v4990_v33  ;;  %5017 = vrcp.f32 %v3224_v31 }
 0x284   :  { %v4994_v38 = vpop.eup %4993  ;;  %3603 = vst.msk [vmem:[%s6676_s5 + $0x300] sm:$0xff] %vm3506_vm12, %v4992_v37  ;;  %5019 = vpow2.f32 %v3086_v27  ;;  %v3096_v39 = vmul.f32 1.442695, %v2853_v35  ;;  %v2852_v41 = vsub.f32 0.0, %v2670_v36  ;;  %v4557_v42 = vpop.f32.mrf.mxu1 }
 0x285   :  { %v4996_v43 = vpop.eup %4995  ;;  %v3227_v44 = vadd.f32 1.0, %v4994_v38  ;;  %5021 = vpow2.f32 %v3092_v32  ;;  %v2685_v45 = vadd.f32 %v6420_v29, %v4557_v42 }
 0x286   :  { %v4998_v46 = vpop.eup %4997  ;;  %3606 = vst.msk [vmem:[%s6676_s5 + $0x318] sm:$0xff] %vm3506_vm12, %v4996_v43  ;;  %5023 = vpow2.f32 %v3090_v34  ;;  %v3094_v48 = vmul.f32 1.442695, %v2852_v41  ;;  %v2679_v49 = vpop.f32.mrf.mxu1 }
 0x287   :  { %v5000_v50 = vpop.eup %4999  ;;  %5025 = vrcp.f32 %v3227_v44  ;;  %v3226_v52 = vadd.f32 1.0, %v4998_v46  ;;  %v2855_v53 = vsub.f32 0.0, %v2685_v45  ;;  %v2680_v54 = vadd.f32 %v6420_v29, %v2679_v49 }
 0x288   :  { %v5002_v11 = vpop.eup %5001  ;;  %3605 = vst.msk [vmem:[%s6676_s5 + $0x310] sm:$0xff] %vm3506_vm12, %v5000_v50  ;;  %5027 = vpow2.f32 %v3096_v39 }
 0x289   :  { %v5004_v55 = vpop.eup %5003  ;;  %5029 = vrcp.f32 %v3226_v52  ;;  %v3229_v56 = vadd.f32 1.0, %v5002_v11  ;;  %v3100_v57 = vmul.f32 1.442695, %v2855_v53  ;;  %v2854_v58 = vsub.f32 0.0, %v2680_v54  ;;  %v4560_v60 = vpop.f32.mrf.mxu1 }
 0x28a   :  { %v5006_v61 = vpop.eup %5005  ;;  %v3228_v59 = vadd.f32 1.0, %v5004_v55  ;;  %5031 = vpow2.f32 %v3094_v48  ;;  %v2695_v47 = vadd.f32 %v6420_v29, %v4560_v60 }
 0x28b   :  { %v5008_v63 = vpop.eup %5007  ;;  %3608 = vst.msk [vmem:[%s6676_s5 + $0x328] sm:$0xff] %vm3506_vm12, %v5006_v61  ;;  %5033 = vrcp.f32 %v3229_v56  ;;  %v3098_v0 = vmul.f32 1.442695, %v2854_v58  ;;  %v2689_v1 = vpop.f32.mrf.mxu1 }
 0x28c   :  { %v5010_v2 = vpop.eup %5009  ;;  %5035 = vrcp.f32 %v3228_v59  ;;  %v3231_v3 = vadd.f32 1.0, %v5008_v63  ;;  %v2857_v4 = vsub.f32 0.0, %v2695_v47  ;;  %v2690_v6 = vadd.f32 %v6420_v29, %v2689_v1 }
 0x28d   :  { %v5012_v7 = vpop.eup %5011  ;;  %3607 = vst.msk [vmem:[%s6676_s5 + $0x320] sm:$0xff] %vm3506_vm12, %v5010_v2  ;;  %5037 = vpow2.f32 %v3100_v57 }
 0x28e   :  { %v5014_v8 = vpop.eup %5013  ;;  %5039 = vrcp.f32 %v3231_v3  ;;  %v3230_v62 = vadd.f32 1.0, %v5012_v7  ;;  %v3104_v5 = vmul.f32 1.442695, %v2857_v4  ;;  %v2856_v9 = vsub.f32 0.0, %v2690_v6  ;;  %v4563_v10 = vpop.f32.mrf.mxu1 }
 0x28f   :  { %v5016_v12 = vpop.eup %5015  ;;  %v3233_v13 = vadd.f32 1.0, %v5014_v8  ;;  %5041 = vpow2.f32 %v3098_v0  ;;  %v2705_v51 = vadd.f32 %v6420_v29, %v4563_v10 }
 0x290   :  { %v5018_v14 = vpop.eup %5017  ;;  %3610 = vst.msk [vmem:[%s6676_s5 + $0x338] sm:$0xff] %vm3506_vm12, %v5016_v12  ;;  %5043 = vrcp.f32 %v3230_v62  ;;  %v3102_v15 = vmul.f32 1.442695, %v2856_v9  ;;  %v2699_v16 = vpop.f32.mrf.mxu1 }
 0x291   :  { %v5020_v17 = vpop.eup %5019  ;;  %3609 = vst.msk [vmem:[%s6676_s5 + $0x330] sm:$0xff] %vm3506_vm12, %v5018_v14  ;;  %5045 = vrcp.f32 %v3233_v13  ;;  %v2859_v18 = vsub.f32 0.0, %v2705_v51  ;;  %v2700_v19 = vadd.f32 %v6420_v29, %v2699_v16 }
 0x292   :  { %v5022_v20 = vpop.eup %5021  ;;  %v3232_v21 = vadd.f32 1.0, %v5020_v17  ;;  %5047 = vpow2.f32 %v3104_v5 }
 0x293   :  { %v5024_v22 = vpop.eup %5023  ;;  %v3235_v23 = vadd.f32 1.0, %v5022_v20  ;;  %5049 = vpow2.f32 %v3102_v15  ;;  %v3108_v24 = vmul.f32 1.442695, %v2859_v18  ;;  %v2858_v25 = vsub.f32 0.0, %v2700_v19  ;;  %v4566_v26 = vpop.f32.mrf.mxu1 }
 0x294   :  { %v5026_v27 = vpop.eup %5025  ;;  %5051 = vrcp.f32 %v3232_v21  ;;  %v3234_v28 = vadd.f32 1.0, %v5024_v22  ;;  %v2715_v30 = vadd.f32 %v6420_v29, %v4566_v26 }
 0x295   :  { %v5028_v31 = vpop.eup %5027  ;;  %3612 = vst.msk [vmem:[%s6676_s5 + $0x348] sm:$0xff] %vm3506_vm12, %v5026_v27  ;;  %5053 = vrcp.f32 %v3235_v23  ;;  %v3106_v32 = vmul.f32 1.442695, %v2858_v25  ;;  %v2709_v40 = vpop.f32.mrf.mxu1 }
 0x296   :  { %v5030_v33 = vpop.eup %5029  ;;  %5055 = vrcp.f32 %v3234_v28  ;;  %v3237_v34 = vadd.f32 1.0, %v5028_v31  ;;  %v2861_v35 = vsub.f32 0.0, %v2715_v30  ;;  %v2710_v36 = vadd.f32 %v6420_v29, %v2709_v40 }
 0x297   :  { %v5032_v37 = vpop.eup %5031  ;;  %3611 = vst.msk [vmem:[%s6676_s5 + $0x340] sm:$0xff] %vm3506_vm12, %v5030_v33  ;;  %5057 = vpow2.f32 %v3108_v24  ;;  %v4569_v38 = vpop.f32.mrf.mxu1 }
 0x298   :  { %v5034_v39 = vpop.eup %5033  ;;  %5059 = vrcp.f32 %v3237_v34  ;;  %v3236_v41 = vadd.f32 1.0, %v5032_v37  ;;  %v3112_v42 = vmul.f32 1.442695, %v2861_v35  ;;  %v2860_v43 = vsub.f32 0.0, %v2710_v36 }
 0x299   :  { %v5036_v44 = vpop.eup %5035  ;;  %3614 = vst.msk [vmem:[%s6676_s5 + $0x358] sm:$0xff] %vm3506_vm12, %v5034_v39  ;;  %5061 = vpow2.f32 %v3106_v32  ;;  %v2725_v45 = vadd.f32 %v6420_v29, %v4569_v38  ;;  %v2719_v46 = vpop.f32.mrf.mxu1 }
 0x29a   :  { %v5038_v48 = vpop.eup %5037  ;;  %3613 = vst.msk [vmem:[%s6676_s5 + $0x350] sm:$0xff] %vm3506_vm12, %v5036_v44  ;;  %5063 = vrcp.f32 %v3236_v41  ;;  %v3110_v49 = vmul.f32 1.442695, %v2860_v43  ;;  %v2720_v50 = vadd.f32 %v6420_v29, %v2719_v46 }
 0x29b   :  { %v5040_v52 = vpop.eup %5039  ;;  %v3239_v53 = vadd.f32 1.0, %v5038_v48  ;;  %5065 = vpow2.f32 %v3112_v42  ;;  %v2863_v54 = vsub.f32 0.0, %v2725_v45  ;;  %v4572_v11 = vpop.f32.mrf.mxu1 }
 0x29c   :  { %v5042_v55 = vpop.eup %5041  ;;  %3616 = vst.msk [vmem:[%s6676_s5 + $0x368] sm:$0xff] %vm3506_vm12, %v5040_v52  ;;  %5067 = vpow2.f32 %v3110_v49  ;;  %v2862_v56 = vsub.f32 0.0, %v2720_v50  ;;  %v2735_v57 = vadd.f32 %v6420_v29, %v4572_v11 }
 0x29d   :  { %v5044_v58 = vpop.eup %5043  ;;  %5069 = vrcp.f32 %v3239_v53  ;;  %v3238_v60 = vadd.f32 1.0, %v5042_v55  ;;  %v3116_v61 = vmul.f32 1.442695, %v2863_v54  ;;  %v2729_v59 = vpop.f32.mrf.mxu1 }
 0x29e   :  { %v5046_v47 = vpop.eup %5045  ;;  %3615 = vst.msk [vmem:[%s6676_s5 + $0x360] sm:$0xff] %vm3506_vm12, %v5044_v58  ;;  %v3114_v63 = vmul.f32 1.442695, %v2862_v56  ;;  %v2865_v0 = vsub.f32 0.0, %v2735_v57  ;;  %v2730_v1 = vadd.f32 %v6420_v29, %v2729_v59 }
 0x29f   :  { %v5048_v2 = vpop.eup %5047  ;;  %3618 = vst.msk [vmem:[%s6676_s5 + $0x378] sm:$0xff] %vm3506_vm12, %v5046_v47  ;;  %5071 = vrcp.f32 %v3238_v60 }
 0x2a0   :  { %v5050_v3 = vpop.eup %5049  ;;  %v3241_v4 = vadd.f32 1.0, %v5048_v2  ;;  %5073 = vpow2.f32 %v3116_v61  ;;  %v3120_v6 = vmul.f32 1.442695, %v2865_v0  ;;  %v2864_v7 = vsub.f32 0.0, %v2730_v1 }
 0x2a1   :  { %v5052_v8 = vpop.eup %5051  ;;  %v3240_v62 = vadd.f32 1.0, %v5050_v3  ;;  %5075 = vpow2.f32 %v3114_v63 }
 0x2a2   :  { %v5054_v5 = vpop.eup %5053  ;;  %3617 = vst.msk [vmem:[%s6676_s5 + $0x370] sm:$0xff] %vm3506_vm12, %v5052_v8  ;;  %5077 = vrcp.f32 %v3241_v4  ;;  %v3118_v29 = vmul.f32 1.442695, %v2864_v7 }
 0x2a3   :  { %v5056_v9 = vpop.eup %5055  ;;  %3620 = vst.msk [vmem:[%s6676_s5 + $0x388] sm:$0xff] %vm3506_vm12, %v5054_v5  ;;  %5079 = vrcp.f32 %v3240_v62 }
 0x2a4   :  { %v5058_v10 = vpop.eup %5057  ;;  %3619 = vst.msk [vmem:[%s6676_s5 + $0x380] sm:$0xff] %vm3506_vm12, %v5056_v9  ;;  %5081 = vpow2.f32 %v3120_v6 }
 0x2a5   :  { %v5060_v12 = vpop.eup %5059  ;;  %v3243_v13 = vadd.f32 1.0, %v5058_v10  ;;  %5083 = vpow2.f32 %v3118_v29 }
 0x2a6   :  { %v5062_v51 = vpop.eup %5061  ;;  %3622 = vst.msk [vmem:[%s6676_s5 + $0x398] sm:$0xff] %vm3506_vm12, %v5060_v12 }
 0x2a7   :  { %v5064_v14 = vpop.eup %5063  ;;  %5085 = vrcp.f32 %v3243_v13  ;;  %v3242_v15 = vadd.f32 1.0, %v5062_v51 }
 0x2a8   :  { %v5066_v16 = vpop.eup %5065  ;;  %3621 = vst.msk [vmem:[%s6676_s5 + $0x390] sm:$0xff] %vm3506_vm12, %v5064_v14 }
 0x2a9   :  { %v5068_v17 = vpop.eup %5067  ;;  %5087 = vrcp.f32 %v3242_v15  ;;  %v3245_v18 = vadd.f32 1.0, %v5066_v16 }
 0x2aa   :  { %v5070_v19 = vpop.eup %5069  ;;  %v3244_v20 = vadd.f32 1.0, %v5068_v17 }
 0x2ab   :  { %3624 = vst.msk [vmem:[%s6676_s5 + $0x3a8] sm:$0xff] %vm3506_vm12, %v5070_v19  ;;  %5089 = vrcp.f32 %v3245_v18 }
 0x2ac   :  { %v5072_v21 = vpop.eup %5071  ;;  %5091 = vrcp.f32 %v3244_v20 }
 0x2ad   :  { %v5074_v22 = vpop.eup %5073  ;;  %3623 = vst.msk [vmem:[%s6676_s5 + $0x3a0] sm:$0xff] %vm3506_vm12, %v5072_v21 }
 0x2ae   :  { %v5076_v23 = vpop.eup %5075  ;;  %v3247_v24 = vadd.f32 1.0, %v5074_v22 }
 0x2af   :  { %v5078_v25 = vpop.eup %5077  ;;  %v3246_v26 = vadd.f32 1.0, %v5076_v23 }
 0x2b0   :  { %v5080_v27 = vpop.eup %5079  ;;  %3626 = vst.msk [vmem:[%s6676_s5 + $0x3b8] sm:$0xff] %vm3506_vm12, %v5078_v25  ;;  %5093 = vrcp.f32 %v3247_v24 }
 0x2b1   :  { %v5082_v28 = vpop.eup %5081  ;;  %3625 = vst.msk [vmem:[%s6676_s5 + $0x3b0] sm:$0xff] %vm3506_vm12, %v5080_v27  ;;  %5095 = vrcp.f32 %v3246_v26 }
 0x2b2   :  { %v5084_v30 = vpop.eup %5083  ;;  %v3249_v31 = vadd.f32 1.0, %v5082_v28 }
 0x2b3   :  { %v3248_v32 = vadd.f32 1.0, %v5084_v30 }
 0x2b4   :  { %v5086_v40 = vpop.eup %5085  ;;  %5097 = vrcp.f32 %v3249_v31 }
 0x2b5   :  { %3628 = vst.msk [vmem:[%s6676_s5 + $0x3c8] sm:$0xff] %vm3506_vm12, %v5086_v40  ;;  %5099 = vrcp.f32 %v3248_v32 }
 0x2b6   :  { %v5088_v33 = vpop.eup %5087 }
 0x2b7   :  { %3627 = vst.msk [vmem:[%s6676_s5 + $0x3c0] sm:$0xff] %vm3506_vm12, %v5088_v33 }
 0x2b8   :  { %v5090_v34 = vpop.eup %5089 }
 0x2b9   :  { %v5092_v35 = vpop.eup %5091  ;;  %3630 = vst.msk [vmem:[%s6676_s5 + $0x3d8] sm:$0xff] %vm3506_vm12, %v5090_v34 }
 0x2ba   :  { %3629 = vst.msk [vmem:[%s6676_s5 + $0x3d0] sm:$0xff] %vm3506_vm12, %v5092_v35 }
 0x2bd   :  { %v5094_v36 = vpop.eup %5093 }
 0x2be   :  { %v5096_v37 = vpop.eup %5095  ;;  %3632 = vst.msk [vmem:[%s6676_s5 + $0x3e8] sm:$0xff] %vm3506_vm12, %v5094_v36 }
 0x2bf   :  { %3631 = vst.msk [vmem:[%s6676_s5 + $0x3e0] sm:$0xff] %vm3506_vm12, %v5096_v37 }
 0x2c1   :  { %v5098_v38 = vpop.eup %5097 }
 0x2c2   :  { %v5100_v39 = vpop.eup %5099  ;;  %3634 = vst.msk [vmem:[%s6676_s5 + $0x3f8] sm:$0xff] %vm3506_vm12, %v5098_v38 }
 0x2c3   :  { %3633 = vst.msk [vmem:[%s6676_s5 + $0x3f0] sm:$0xff] %vm3506_vm12, %v5100_v39 }

</bundles_post_ra>
